<compile_context>
chip_gen: v7x
topology: tpu7x:2x2x1
jax: 0.10.0
libtpu: 0.0.40
codegen_flags: <defaults>
</compile_context>

<pallas_src>
import functools

import jax
import jax.numpy as jnp
from jax.experimental import pallas as pl
from jax.experimental.pallas import tpu as pltpu

K = 5  # kernel size of every (de)conv in the module


# --------------------------------------------------------------------------
# Fused forward kernel (one grid step == one tile of TB samples)
#   conv1 -> conv2 -> pool -> [fc ⊕ q_fc ⊕ dec_fc, pre-composed]
#   -> deconvT1 -> upsample -> deconvT2 -> sigmoid
# --------------------------------------------------------------------------
def _fused_kernel(x_ref, q_ref, w1_ref, b1_ref, mask_ref, w2_ref, b2_ref,
                  sdown_ref, wfcw_ref, wdw_ref, wqw_ref, bdew_ref,
                  segsel_ref, segexp_ref, wd1_ref, bd1_ref, upm_ref,
                  wd2_ref, bd2_ref, out_ref, scA_ref, scB_ref,
                  *, W, Wh, half, nq):
    f32 = jnp.float32
    C1 = w1_ref.shape[0]     # 32
    C2 = w2_ref.shape[0]     # 64

    # Zero the 2-column global guard bands of the shift-scratch buffers once
    # per step (all other columns are fully overwritten below).
    zA = jnp.zeros((C1, 2), f32)
    zB = jnp.zeros((C2, 2), f32)
    scA_ref[:, 0:2] = zA
    scA_ref[:, W + 2:W + 4] = zA
    scB_ref[:, 0:2] = zB
    scB_ref[:, Wh + 2:Wh + 4] = zB

    x = x_ref[0]                       # (1, W + 4), per-segment zero padded
    maskv = mask_ref[...]              # (1, W), 1 on segment interiors

    # ---- conv1 (1->32, pad=2) + ReLU: 5 VPU broadcast taps, whole tile ----
    w1v = w1_ref[...]
    acc1 = jnp.zeros((C1, W), f32)
    for k in range(K):
        acc1 = acc1 + w1v[:, k:k + 1] * x[:, k:k + W]
    h1 = jnp.maximum(acc1 + b1_ref[...], 0.0) * maskv            # (C1, W)
    scA_ref[:, 2:W + 2] = h1

    # ---- conv2 (32->64, pad=2) + ReLU: one im2col MXU matmul -------------
    x2 = jnp.concatenate([scA_ref[:, k:k + W] for k in range(K)], axis=0)
    h2 = jnp.maximum(
        jnp.dot(w2_ref[...], x2, preferred_element_type=f32) + b2_ref[...],
        0.0)                                                      # (C2, W)

    # ---- MaxPool1d(2,2): pairwise max + 0/1 down-selector matmul ---------
    # The selector also re-lays the tile out with half-length segments and
    # leaves the new pad columns exactly zero.
    h2n = jnp.concatenate([h2[:, 1:], h2[:, :1]], axis=1)         # h2 shifted by 1
    p = jnp.dot(jnp.maximum(h2, h2n), sdown_ref[...],
                preferred_element_type=f32)                       # (C2, Wh)

    # ---- encoder-fc ⊕ q_fc ⊕ decoder-fc, pre-composed rank-(half+nq) -----
    # TODO(synk): torch reference indexes x_cnn[:, 40 // 2] (out of bounds for
    # latent_dim=20); as before we use cnn_latent[:, :latent_dim//2].
    pps = [jnp.sum(wfcw_ref[j] * p, axis=0, keepdims=True) for j in range(half)]
    lat = jnp.dot(jnp.concatenate(pps, axis=0), segsel_ref[...],
                  preferred_element_type=f32)                     # (half, TB)
    latw = jnp.dot(lat, segexp_ref[...], preferred_element_type=f32)  # (half, Wh)
    qw = jnp.dot(q_ref[0], segexp_ref[...], preferred_element_type=f32)  # (nq, Wh)

    h = bdew_ref[...]                                             # (C2, Wh)
    for j in range(half):
        h = h + latw[j:j + 1, :] * wdw_ref[j]
    for m in range(nq):
        h = h + qw[m:m + 1, :] * wqw_ref[m]
    scB_ref[:, 2:Wh + 2] = h

    # ---- deconvT1 (== flipped conv, pad=2) + ReLU: one im2col matmul -----
    xh = jnp.concatenate([scB_ref[:, k:k + Wh] for k in range(K)], axis=0)
    r1 = jnp.maximum(
        jnp.dot(wd1_ref[...], xh, preferred_element_type=f32) + bd1_ref[...],
        0.0)                                                      # (32, Wh)

    # ---- Upsample(size=L, nearest) == right-multiply by 0/1 matrix -------
    up = jnp.dot(r1, upm_ref[...], preferred_element_type=f32)    # (32, W)
    scA_ref[:, 2:W + 2] = up

    # ---- deconvT2 (32->1, pad=2) + sigmoid: one im2col matmul ------------
    xu = jnp.concatenate([scA_ref[:, k:k + W] for k in range(K)], axis=0)
    y = jnp.dot(wd2_ref[...], xu, preferred_element_type=f32) + bd2_ref[...]
    out_ref[0] = jax.nn.sigmoid(y)                                # (1, W)


# --------------------------------------------------------------------------
# Quantum branch: 4-qubit statevector simulation (plain JAX glue)
#   AngleEmbedding(rotation='X') + BasicEntanglerLayers(RX + CNOT ring) + <Z_i>
# TODO(synk): no clean Pallas equivalent for the PennyLane circuit; simulated
# as a tiny (2^4) statevector in plain JAX outside the kernel.
# --------------------------------------------------------------------------
def quantum_layer_sim(weights, x):
    n = x.shape[0]
    shape = (2,) * n
    st_r = jnp.zeros(shape, jnp.float32).at[(0,) * n].set(1.0)
    st_i = jnp.zeros(shape, jnp.float32)

    def rx(sr, si, theta, wire):
        c = jnp.cos(theta / 2.0)
        s = jnp.sin(theta / 2.0)
        xr = jnp.flip(sr, axis=wire)
        xi = jnp.flip(si, axis=wire)
        return c * sr + s * xi, c * si - s * xr

    def cnot(st, ctrl, tgt):
        moved = jnp.moveaxis(st, ctrl, 0)
        tgt_sub = tgt if tgt < ctrl else tgt - 1
        c0 = moved[0]
        c1 = jnp.flip(moved[1], axis=tgt_sub)
        return jnp.moveaxis(jnp.stack([c0, c1], axis=0), 0, ctrl)

    for w in range(n):                                # AngleEmbedding (RX)
        st_r, st_i = rx(st_r, st_i, x[w], w)
    for l in range(weights.shape[0]):                 # BasicEntanglerLayers
        for w in range(n):
            st_r, st_i = rx(st_r, st_i, weights[l, w], w)
        if n == 2:
            st_r = cnot(st_r, 0, 1)
            st_i = cnot(st_i, 0, 1)
        else:
            for w in range(n):
                st_r = cnot(st_r, w, (w + 1) % n)
                st_i = cnot(st_i, w, (w + 1) % n)
    probs = st_r * st_r + st_i * st_i
    ez = []
    for w in range(n):
        pw = jnp.moveaxis(probs, w, 0)
        ez.append(jnp.sum(pw[0]) - jnp.sum(pw[1]))
    return jnp.stack(ez)


# --------------------------------------------------------------------------
# Parameters (deterministic, synthetic)
# --------------------------------------------------------------------------
def init_params(key, input_length=64, latent_dim=20, quantum_dim=4, n_layers=2):
    L = input_length
    ks = jax.random.split(key, 12)

    def nrm(k, shape, scale=0.05):
        return scale * jax.random.normal(k, shape, dtype=jnp.float32)

    p = {}
    p["conv1_w"] = nrm(ks[0], (32, 1, K))
    p["conv1_b"] = nrm(ks[1], (32,))
    p["conv2_w"] = nrm(ks[2], (64, 32, K))
    p["conv2_b"] = nrm(ks[3], (64,))
    p["fc_w"] = nrm(ks[4], (latent_dim, 64 * (L // 2)))
    p["fc_b"] = nrm(ks[5], (latent_dim,))
    p["q_weights"] = 0.01 * jax.random.normal(ks[6], (n_layers, quantum_dim),
                                              dtype=jnp.float32)
    p["qfc_w"] = nrm(ks[7], (latent_dim // 2, quantum_dim))
    p["qfc_b"] = nrm(ks[8], (latent_dim // 2,))
    p["dfc_w"] = nrm(ks[9], (L // 2 * 64, latent_dim))
    p["dfc_b"] = nrm(ks[10], (L // 2 * 64,))
    k11, k12, k13, k14 = jax.random.split(ks[11], 4)
    p["deconv1_w"] = nrm(k11, (64, 32, K))   # ConvTranspose1d weight: (in, out, K)
    p["deconv1_b"] = nrm(k12, (32,))
    p["deconv2_w"] = nrm(k13, (32, 1, K))
    p["deconv2_b"] = nrm(k14, (1,))
    return p


# --------------------------------------------------------------------------
# Full forward pass
# --------------------------------------------------------------------------
def forward(params, x_cnn, x_qcnn, *, latent_dim=20, tile_b=8):
    B, _, L = x_cnn.shape
    Lh = L // 2
    half = latent_dim // 2
    nq = params["qfc_w"].shape[1]
    f32 = jnp.float32

    # ---- quantum branch (plain-JAX statevector sim of the PennyLane circuit)
    q_in = x_qcnn.reshape(-1, nq)
    q_enc = jax.vmap(quantum_layer_sim, in_axes=(None, 0))(params["q_weights"],
                                                           q_in)
    q_enc = q_enc.astype(f32).reshape(B, nq)

    # ---- batch tiling / lane-concatenated segment layout ----
    TB = min(tile_b, B)
    NB = -(-B // TB)
    Bp = NB * TB
    SL, SLh = L + 4, Lh + 4
    W, Wh = TB * SL, TB * SLh

    # ---- TPU-friendly weight layouts (one-time XLA glue) ----
    w1 = params["conv1_w"][:, 0, :]                                   # (32, K)
    b1 = params["conv1_b"].reshape(-1, 1)
    w2im = jnp.transpose(params["conv2_w"], (0, 2, 1)).reshape(64, K * 32)
    b2 = params["conv2_b"].reshape(-1, 1)

    wfc_r = params["fc_w"][:half].reshape(half, 64, Lh)               # (half,64,Lh)
    bfc_h = params["fc_b"][:half]
    wq = params["qfc_w"]                                              # (half, nq)
    bq = params["qfc_b"]

    wd_r = jnp.transpose(params["dfc_w"].reshape(64, Lh, latent_dim), (2, 0, 1))
    bd_r = params["dfc_b"].reshape(64, Lh)
    wd_cnn = wd_r[:half]                                              # (half,64,Lh)
    wd_q = wd_r[half:]                                                # (half,64,Lh)
    # fold q_fc into the decoder fc, and fold both fc biases into its bias
    wq_comp = jnp.einsum("jm,jcl->mcl", wq, wd_q)                     # (nq,64,Lh)
    bd_eff = (bd_r + jnp.einsum("j,jcl->cl", bfc_h, wd_cnn)
                    + jnp.einsum("j,jcl->cl", bq, wd_q))              # (64, Lh)

    # ConvTranspose1d(stride=1,pad=2,K=5) == Conv1d(pad=2) with
    # W_eq[co, ci, k] = W[ci, co, K-1-k]; then im2col-concatenate over k.
    wd1eq = jnp.transpose(jnp.flip(params["deconv1_w"], -1), (1, 0, 2))
    wd1im = jnp.transpose(wd1eq, (0, 2, 1)).reshape(32, K * 64)
    bd1 = params["deconv1_b"].reshape(-1, 1)
    wd2eq = jnp.transpose(jnp.flip(params["deconv2_w"], -1), (1, 0, 2))
    wd2im = jnp.transpose(wd2eq, (0, 2, 1)).reshape(1, K * 32)
    bd2 = params["deconv2_b"].reshape(1, 1)

    # ---- "wide" per-column constants: segment-padded and tiled over TB ----
    def widen(a):
        pad = [(0, 0)] * (a.ndim - 1) + [(2, 2)]
        return jnp.tile(jnp.pad(a, pad), (1,) * (a.ndim - 1) + (TB,))

    wfcw = widen(wfc_r)                                               # (half,64,Wh)
    wdw = widen(wd_cnn)                                               # (half,64,Wh)
    wqw = widen(wq_comp)                                              # (nq,64,Wh)
    bdew = widen(bd_eff)                                              # (64, Wh)

    colw = jnp.arange(W)
    offw = colw % SL
    mask1 = ((offw >= 2) & (offw < L + 2)).astype(f32)[None, :]       # (1, W)

    colh = jnp.arange(Wh)
    offh = colh % SLh
    segh = colh // SLh
    in_h = (offh >= 2) & (offh < Lh + 2)
    segsel = (in_h[:, None]
              & (segh[:, None] == jnp.arange(TB)[None, :])).astype(f32)  # (Wh,TB)
    segexp = segsel.T                                                    # (TB,Wh)

    s_i = jnp.arange(TB)[:, None]
    j_i = jnp.arange(Lh)[None, :]
    rows = (s_i * SL + 2 + 2 * j_i).reshape(-1)
    cols = (s_i * SLh + 2 + j_i).reshape(-1)
    sdown = jnp.zeros((W, Wh), f32).at[rows, cols].set(1.0)              # (W, Wh)
    upm = (jnp.zeros((Wh, W), f32).at[cols, rows].set(1.0)
           .at[cols, rows + 1].set(1.0))                                 # (Wh, W)

    # ---- inputs in lane-concatenated layout ----
    x2d = jnp.pad(x_cnn[:, 0, :], ((0, Bp - B), (2, 2)))                 # (Bp, L+4)
    xw3 = jnp.pad(x2d.reshape(NB, 1, W), ((0, 0), (0, 0), (2, 2)))       # (NB,1,W+4)
    qpad = jnp.pad(q_enc, ((0, Bp - B), (0, 0)))                         # (Bp, nq)
    q3 = jnp.transpose(qpad.reshape(NB, TB, nq), (0, 2, 1))              # (NB,nq,TB)

    def full(a):
        nd = a.ndim
        return pl.BlockSpec(a.shape, lambda i, _nd=nd: (0,) * _nd)

    out = pl.pallas_call(
        functools.partial(_fused_kernel, W=W, Wh=Wh, half=half, nq=nq),
        out_shape=jax.ShapeDtypeStruct((NB, 1, W), f32),
        grid=(NB,),
        in_specs=[
            pl.BlockSpec((1, 1, W + 4), lambda i: (i, 0, 0)),
            pl.BlockSpec((1, nq, TB), lambda i: (i, 0, 0)),
            full(w1), full(b1), full(mask1), full(w2im), full(b2),
            full(sdown), full(wfcw), full(wdw), full(wqw), full(bdew),
            full(segsel), full(segexp), full(wd1im), full(bd1), full(upm),
            full(wd2im), full(bd2),
        ],
        out_specs=pl.BlockSpec((1, 1, W), lambda i: (i, 0, 0)),
        scratch_shapes=[
            pltpu.VMEM((32, W + 4), f32),    # shifted views for conv2 / deconv2
            pltpu.VMEM((64, Wh + 4), f32),   # shifted views for deconv1
        ],
        compiler_params=pltpu.CompilerParams(dimension_semantics=("parallel",)),
    )(xw3, q3, w1, b1, mask1, w2im, b2, sdown, wfcw, wdw, wqw, bdew,
      segsel, segexp, wd1im, bd1, upm, wd2im, bd2)

    y = out.reshape(Bp, L + 4)[:, 2:2 + L]
    return y[:B].reshape(B, 1, L)


if __name__ == "__main__":
    B, L, LATENT, NQ = 2, 64, 20, 4
    key = jax.random.PRNGKey(0)
    kx, kq = jax.random.split(key)
    x_cnn = jax.random.normal(kx, (B, 1, L), dtype=jnp.float32)
    x_qcnn = jax.random.normal(kq, (B, NQ), dtype=jnp.float32)

    params = init_params(jax.random.PRNGKey(0), input_length=L,
                         latent_dim=LATENT, quantum_dim=NQ, n_layers=2)

    out = jax.jit(forward)(params, x_cnn, x_qcnn)
    out = jax.block_until_ready(out)
    assert out.shape == (B, 1, L), out.shape
    assert bool(jnp.all(jnp.isfinite(out)))
    print("KERNEL_OK")
</pallas_src>

<mosaic_0001>
module attributes {stable_mosaic.version = 11 : i64} {
  func.func @_fused_kernel(%arg0: i32, %arg1: memref<1x1x140xf32, #tpu.memory_space<vmem>>, %arg2: memref<1x4x2xf32, #tpu.memory_space<vmem>>, %arg3: memref<32x5xf32, #tpu.memory_space<vmem>>, %arg4: memref<32x1xf32, #tpu.memory_space<vmem>>, %arg5: memref<1x136xf32, #tpu.memory_space<vmem>>, %arg6: memref<64x160xf32, #tpu.memory_space<vmem>>, %arg7: memref<64x1xf32, #tpu.memory_space<vmem>>, %arg8: memref<136x72xf32, #tpu.memory_space<vmem>>, %arg9: memref<10x64x72xf32, #tpu.memory_space<vmem>>, %arg10: memref<10x64x72xf32, #tpu.memory_space<vmem>>, %arg11: memref<4x64x72xf32, #tpu.memory_space<vmem>>, %arg12: memref<64x72xf32, #tpu.memory_space<vmem>>, %arg13: memref<72x2xf32, #tpu.memory_space<vmem>>, %arg14: memref<2x72xf32, #tpu.memory_space<vmem>>, %arg15: memref<32x320xf32, #tpu.memory_space<vmem>>, %arg16: memref<32x1xf32, #tpu.memory_space<vmem>>, %arg17: memref<72x136xf32, #tpu.memory_space<vmem>>, %arg18: memref<1x160xf32, #tpu.memory_space<vmem>>, %arg19: memref<1x1xf32, #tpu.memory_space<vmem>>, %arg20: memref<1x1x136xf32, #tpu.memory_space<vmem>>, %arg21: memref<32x140xf32, #tpu.memory_space<vmem>>, %arg22: memref<64x76xf32, #tpu.memory_space<vmem>>) attributes {dimension_semantics = [#tpu.dimension_semantics<parallel>], iteration_bounds = array<i64: 1>, scalar_prefetch = 0 : i64, scratch_operands = 2 : i64, tpu.core_type = #tpu.core_type<tc>, window_params = [{transform_indices = @transform_0, window_bounds = array<i64: 1, 1, 140>}, {transform_indices = @transform_1, window_bounds = array<i64: 1, 4, 2>}, {pipeline_mode = #tpu.pipeline_mode<synchronous>, transform_indices = @transform_2, window_bounds = array<i64: 32, 5>}, {pipeline_mode = #tpu.pipeline_mode<synchronous>, transform_indices = @transform_3, window_bounds = array<i64: 32, 1>}, {pipeline_mode = #tpu.pipeline_mode<synchronous>, transform_indices = @transform_4, window_bounds = array<i64: 1, 136>}, {pipeline_mode = #tpu.pipeline_mode<synchronous>, transform_indices = @transform_5, window_bounds = array<i64: 64, 160>}, {pipeline_mode = #tpu.pipeline_mode<synchronous>, transform_indices = @transform_6, window_bounds = array<i64: 64, 1>}, {pipeline_mode = #tpu.pipeline_mode<synchronous>, transform_indices = @transform_7, window_bounds = array<i64: 136, 72>}, {pipeline_mode = #tpu.pipeline_mode<synchronous>, transform_indices = @transform_8, window_bounds = array<i64: 10, 64, 72>}, {pipeline_mode = #tpu.pipeline_mode<synchronous>, transform_indices = @transform_9, window_bounds = array<i64: 10, 64, 72>}, {pipeline_mode = #tpu.pipeline_mode<synchronous>, transform_indices = @transform_10, window_bounds = array<i64: 4, 64, 72>}, {pipeline_mode = #tpu.pipeline_mode<synchronous>, transform_indices = @transform_11, window_bounds = array<i64: 64, 72>}, {pipeline_mode = #tpu.pipeline_mode<synchronous>, transform_indices = @transform_12, window_bounds = array<i64: 72, 2>}, {pipeline_mode = #tpu.pipeline_mode<synchronous>, transform_indices = @transform_13, window_bounds = array<i64: 2, 72>}, {pipeline_mode = #tpu.pipeline_mode<synchronous>, transform_indices = @transform_14, window_bounds = array<i64: 32, 320>}, {pipeline_mode = #tpu.pipeline_mode<synchronous>, transform_indices = @transform_15, window_bounds = array<i64: 32, 1>}, {pipeline_mode = #tpu.pipeline_mode<synchronous>, transform_indices = @transform_16, window_bounds = array<i64: 72, 136>}, {pipeline_mode = #tpu.pipeline_mode<synchronous>, transform_indices = @transform_17, window_bounds = array<i64: 1, 160>}, {pipeline_mode = #tpu.pipeline_mode<synchronous>, transform_indices = @transform_18, window_bounds = array<i64: 1, 1>}, {transform_indices = @transform_19, window_bounds = array<i64: 1, 1, 136>}]} {
    %cst = arith.constant 0.000000e+00 : f32
    %0 = vector.broadcast %cst : f32 to vector<32x2xf32>
    %cst_0 = arith.constant 0.000000e+00 : f32
    %1 = vector.broadcast %cst_0 : f32 to vector<64x2xf32>
    %c0 = arith.constant 0 : index
    %c0_1 = arith.constant 0 : index
    %2 = vector.load %arg21[%c0, %c0_1] : memref<32x140xf32, #tpu.memory_space<vmem>>, vector<32x2xf32>
    tpu.vector_store %arg21[%c0, %c0_1], %0 {strides = array<i32>} : memref<32x140xf32, #tpu.memory_space<vmem>>, vector<32x2xf32>,
    %c0_2 = arith.constant 0 : index
    %c138 = arith.constant 138 : index
    %3 = vector.load %arg21[%c0_2, %c138] : memref<32x140xf32, #tpu.memory_space<vmem>>, vector<32x2xf32>
    tpu.vector_store %arg21[%c0_2, %c138], %0 {strides = array<i32>} : memref<32x140xf32, #tpu.memory_space<vmem>>, vector<32x2xf32>,
    %c0_3 = arith.constant 0 : index
    %c0_4 = arith.constant 0 : index
    %4 = vector.load %arg22[%c0_3, %c0_4] : memref<64x76xf32, #tpu.memory_space<vmem>>, vector<64x2xf32>
    tpu.vector_store %arg22[%c0_3, %c0_4], %1 {strides = array<i32>} : memref<64x76xf32, #tpu.memory_space<vmem>>, vector<64x2xf32>,
    %c0_5 = arith.constant 0 : index
    %c74 = arith.constant 74 : index
    %5 = vector.load %arg22[%c0_5, %c74] : memref<64x76xf32, #tpu.memory_space<vmem>>, vector<64x2xf32>
    tpu.vector_store %arg22[%c0_5, %c74], %1 {strides = array<i32>} : memref<64x76xf32, #tpu.memory_space<vmem>>, vector<64x2xf32>,
    %c0_6 = arith.constant 0 : index
    %c0_7 = arith.constant 0 : index
    %c0_8 = arith.constant 0 : index
    %6 = vector.load %arg1[%c0_6, %c0_7, %c0_8] : memref<1x1x140xf32, #tpu.memory_space<vmem>>, vector<1x1x140xf32>
    %7 = vector.shape_cast %6 : vector<1x1x140xf32> to vector<1x140xf32>
    %c0_9 = arith.constant 0 : index
    %c0_10 = arith.constant 0 : index
    %8 = vector.load %arg5[%c0_9, %c0_10] : memref<1x136xf32, #tpu.memory_space<vmem>>, vector<1x136xf32>
    %c0_11 = arith.constant 0 : index
    %c0_12 = arith.constant 0 : index
    %9 = vector.load %arg3[%c0_11, %c0_12] : memref<32x5xf32, #tpu.memory_space<vmem>>, vector<32x5xf32>
    %cst_13 = arith.constant 0.000000e+00 : f32
    %10 = vector.broadcast %cst_13 : f32 to vector<32x136xf32>
    %11 = vector.extract_strided_slice %9 {offsets = [0, 0], sizes = [32, 1], strides = [1, 1]} : vector<32x5xf32> to vector<32x1xf32>
    %12 = vector.extract_strided_slice %7 {offsets = [0, 0], sizes = [1, 136], strides = [1, 1]} : vector<1x140xf32> to vector<1x136xf32>
    %13 = vector.broadcast %11 : vector<32x1xf32> to vector<32x136xf32>
    %14 = vector.broadcast %12 : vector<1x136xf32> to vector<32x136xf32>
    %15 = arith.mulf %13, %14 : vector<32x136xf32>
    %16 = arith.addf %10, %15 : vector<32x136xf32>
    %17 = vector.extract_strided_slice %9 {offsets = [0, 1], sizes = [32, 1], strides = [1, 1]} : vector<32x5xf32> to vector<32x1xf32>
    %18 = vector.extract_strided_slice %7 {offsets = [0, 1], sizes = [1, 136], strides = [1, 1]} : vector<1x140xf32> to vector<1x136xf32>
    %19 = vector.broadcast %17 : vector<32x1xf32> to vector<32x136xf32>
    %20 = vector.broadcast %18 : vector<1x136xf32> to vector<32x136xf32>
    %21 = arith.mulf %19, %20 : vector<32x136xf32>
    %22 = arith.addf %16, %21 : vector<32x136xf32>
    %23 = vector.extract_strided_slice %9 {offsets = [0, 2], sizes = [32, 1], strides = [1, 1]} : vector<32x5xf32> to vector<32x1xf32>
    %24 = vector.extract_strided_slice %7 {offsets = [0, 2], sizes = [1, 136], strides = [1, 1]} : vector<1x140xf32> to vector<1x136xf32>
    %25 = vector.broadcast %23 : vector<32x1xf32> to vector<32x136xf32>
    %26 = vector.broadcast %24 : vector<1x136xf32> to vector<32x136xf32>
    %27 = arith.mulf %25, %26 : vector<32x136xf32>
    %28 = arith.addf %22, %27 : vector<32x136xf32>
    %29 = vector.extract_strided_slice %9 {offsets = [0, 3], sizes = [32, 1], strides = [1, 1]} : vector<32x5xf32> to vector<32x1xf32>
    %30 = vector.extract_strided_slice %7 {offsets = [0, 3], sizes = [1, 136], strides = [1, 1]} : vector<1x140xf32> to vector<1x136xf32>
    %31 = vector.broadcast %29 : vector<32x1xf32> to vector<32x136xf32>
    %32 = vector.broadcast %30 : vector<1x136xf32> to vector<32x136xf32>
    %33 = arith.mulf %31, %32 : vector<32x136xf32>
    %34 = arith.addf %28, %33 : vector<32x136xf32>
    %35 = vector.extract_strided_slice %9 {offsets = [0, 4], sizes = [32, 1], strides = [1, 1]} : vector<32x5xf32> to vector<32x1xf32>
    %36 = vector.extract_strided_slice %7 {offsets = [0, 4], sizes = [1, 136], strides = [1, 1]} : vector<1x140xf32> to vector<1x136xf32>
    %37 = vector.broadcast %35 : vector<32x1xf32> to vector<32x136xf32>
    %38 = vector.broadcast %36 : vector<1x136xf32> to vector<32x136xf32>
    %39 = arith.mulf %37, %38 : vector<32x136xf32>
    %40 = arith.addf %34, %39 : vector<32x136xf32>
    %c0_14 = arith.constant 0 : index
    %c0_15 = arith.constant 0 : index
    %41 = vector.load %arg4[%c0_14, %c0_15] : memref<32x1xf32, #tpu.memory_space<vmem>>, vector<32x1xf32>
    %42 = vector.broadcast %41 : vector<32x1xf32> to vector<32x136xf32>
    %43 = arith.addf %40, %42 : vector<32x136xf32>
    %cst_16 = arith.constant 0.000000e+00 : f32
    %44 = vector.broadcast %cst_16 : f32 to vector<32x136xf32>
    %45 = arith.maximumf %43, %44 : vector<32x136xf32>
    %46 = vector.broadcast %8 : vector<1x136xf32> to vector<32x136xf32>
    %47 = arith.mulf %45, %46 : vector<32x136xf32>
    %c0_17 = arith.constant 0 : index
    %c2 = arith.constant 2 : index
    %48 = vector.load %arg21[%c0_17, %c2] : memref<32x140xf32, #tpu.memory_space<vmem>>, vector<32x136xf32>
    tpu.vector_store %arg21[%c0_17, %c2], %47 {strides = array<i32>} : memref<32x140xf32, #tpu.memory_space<vmem>>, vector<32x136xf32>,
    %c0_18 = arith.constant 0 : index
    %c0_19 = arith.constant 0 : index
    %49 = vector.load %arg21[%c0_18, %c0_19] : memref<32x140xf32, #tpu.memory_space<vmem>>, vector<32x136xf32>
    %c0_20 = arith.constant 0 : index
    %c1 = arith.constant 1 : index
    %50 = vector.load %arg21[%c0_20, %c1] : memref<32x140xf32, #tpu.memory_space<vmem>>, vector<32x136xf32>
    %c0_21 = arith.constant 0 : index
    %c2_22 = arith.constant 2 : index
    %51 = vector.load %arg21[%c0_21, %c2_22] : memref<32x140xf32, #tpu.memory_space<vmem>>, vector<32x136xf32>
    %c0_23 = arith.constant 0 : index
    %c3 = arith.constant 3 : index
    %52 = vector.load %arg21[%c0_23, %c3] : memref<32x140xf32, #tpu.memory_space<vmem>>, vector<32x136xf32>
    %c0_24 = arith.constant 0 : index
    %c4 = arith.constant 4 : index
    %53 = vector.load %arg21[%c0_24, %c4] : memref<32x140xf32, #tpu.memory_space<vmem>>, vector<32x136xf32>
    %54 = tpu.concatenate %49, %50, %51, %52, %53 in 0 : vector<32x136xf32>, vector<32x136xf32>, vector<32x136xf32>, vector<32x136xf32>, vector<32x136xf32> -> vector<160x136xf32>
    %c0_25 = arith.constant 0 : index
    %c0_26 = arith.constant 0 : index
    %55 = vector.load %arg6[%c0_25, %c0_26] : memref<64x160xf32, #tpu.memory_space<vmem>>, vector<64x160xf32>
    %cst_27 = arith.constant dense<0.000000e+00> : vector<64x136xf32>
    %56 = tpu.matmul %55, %54, %cst_27 {dimension_numbers = #tpu.dot_dimension_numbers<[1], [0], [0], [1], [0, 0, 1, 1], [], []>} : vector<64x160xf32>, vector<160x136xf32>, vector<64x136xf32> -> vector<64x136xf32>
    %c0_28 = arith.constant 0 : index
    %c0_29 = arith.constant 0 : index
    %57 = vector.load %arg7[%c0_28, %c0_29] : memref<64x1xf32, #tpu.memory_space<vmem>>, vector<64x1xf32>
    %58 = vector.broadcast %57 : vector<64x1xf32> to vector<64x136xf32>
    %59 = arith.addf %56, %58 : vector<64x136xf32>
    %cst_30 = arith.constant 0.000000e+00 : f32
    %60 = vector.broadcast %cst_30 : f32 to vector<64x136xf32>
    %61 = arith.maximumf %59, %60 : vector<64x136xf32>
    %62 = vector.extract_strided_slice %61 {offsets = [0, 1], sizes = [64, 135], strides = [1, 1]} : vector<64x136xf32> to vector<64x135xf32>
    %63 = vector.extract_strided_slice %61 {offsets = [0, 0], sizes = [64, 1], strides = [1, 1]} : vector<64x136xf32> to vector<64x1xf32>
    %64 = tpu.concatenate %62, %63 in 1 : vector<64x135xf32>, vector<64x1xf32> -> vector<64x136xf32>
    %65 = arith.maximumf %61, %64 : vector<64x136xf32>
    %c0_31 = arith.constant 0 : index
    %c0_32 = arith.constant 0 : index
    %66 = vector.load %arg8[%c0_31, %c0_32] : memref<136x72xf32, #tpu.memory_space<vmem>>, vector<136x72xf32>
    %cst_33 = arith.constant dense<0.000000e+00> : vector<64x72xf32>
    %67 = tpu.matmul %65, %66, %cst_33 {dimension_numbers = #tpu.dot_dimension_numbers<[1], [0], [0], [1], [0, 0, 1, 1], [], []>} : vector<64x136xf32>, vector<136x72xf32>, vector<64x72xf32> -> vector<64x72xf32>
    %c0_34 = arith.constant 0 : index
    %c0_35 = arith.constant 0 : index
    %c0_36 = arith.constant 0 : index
    %68 = vector.load %arg9[%c0_34, %c0_35, %c0_36] : memref<10x64x72xf32, #tpu.memory_space<vmem>>, vector<1x64x72xf32>
    %69 = vector.shape_cast %68 : vector<1x64x72xf32> to vector<64x72xf32>
    %70 = arith.mulf %69, %67 : vector<64x72xf32>
    %cst_37 = arith.constant dense<0.000000e+00> : vector<72xf32>
    %71 = vector.multi_reduction <add>, %70, %cst_37 [0] : vector<64x72xf32> to vector<72xf32>
    %72 = vector.shape_cast %71 : vector<72xf32> to vector<1x72xf32>
    %c1_38 = arith.constant 1 : index
    %c0_39 = arith.constant 0 : index
    %c0_40 = arith.constant 0 : index
    %73 = vector.load %arg9[%c1_38, %c0_39, %c0_40] : memref<10x64x72xf32, #tpu.memory_space<vmem>>, vector<1x64x72xf32>
    %74 = vector.shape_cast %73 : vector<1x64x72xf32> to vector<64x72xf32>
    %75 = arith.mulf %74, %67 : vector<64x72xf32>
    %cst_41 = arith.constant dense<0.000000e+00> : vector<72xf32>
    %76 = vector.multi_reduction <add>, %75, %cst_41 [0] : vector<64x72xf32> to vector<72xf32>
    %77 = vector.shape_cast %76 : vector<72xf32> to vector<1x72xf32>
    %c2_42 = arith.constant 2 : index
    %c0_43 = arith.constant 0 : index
    %c0_44 = arith.constant 0 : index
    %78 = vector.load %arg9[%c2_42, %c0_43, %c0_44] : memref<10x64x72xf32, #tpu.memory_space<vmem>>, vector<1x64x72xf32>
    %79 = vector.shape_cast %78 : vector<1x64x72xf32> to vector<64x72xf32>
    %80 = arith.mulf %79, %67 : vector<64x72xf32>
    %cst_45 = arith.constant dense<0.000000e+00> : vector<72xf32>
    %81 = vector.multi_reduction <add>, %80, %cst_45 [0] : vector<64x72xf32> to vector<72xf32>
    %82 = vector.shape_cast %81 : vector<72xf32> to vector<1x72xf32>
    %c3_46 = arith.constant 3 : index
    %c0_47 = arith.constant 0 : index
    %c0_48 = arith.constant 0 : index
    %83 = vector.load %arg9[%c3_46, %c0_47, %c0_48] : memref<10x64x72xf32, #tpu.memory_space<vmem>>, vector<1x64x72xf32>
    %84 = vector.shape_cast %83 : vector<1x64x72xf32> to vector<64x72xf32>
    %85 = arith.mulf %84, %67 : vector<64x72xf32>
    %cst_49 = arith.constant dense<0.000000e+00> : vector<72xf32>
    %86 = vector.multi_reduction <add>, %85, %cst_49 [0] : vector<64x72xf32> to vector<72xf32>
    %87 = vector.shape_cast %86 : vector<72xf32> to vector<1x72xf32>
    %c4_50 = arith.constant 4 : index
    %c0_51 = arith.constant 0 : index
    %c0_52 = arith.constant 0 : index
    %88 = vector.load %arg9[%c4_50, %c0_51, %c0_52] : memref<10x64x72xf32, #tpu.memory_space<vmem>>, vector<1x64x72xf32>
    %89 = vector.shape_cast %88 : vector<1x64x72xf32> to vector<64x72xf32>
    %90 = arith.mulf %89, %67 : vector<64x72xf32>
    %cst_53 = arith.constant dense<0.000000e+00> : vector<72xf32>
    %91 = vector.multi_reduction <add>, %90, %cst_53 [0] : vector<64x72xf32> to vector<72xf32>
    %92 = vector.shape_cast %91 : vector<72xf32> to vector<1x72xf32>
    %c5 = arith.constant 5 : index
    %c0_54 = arith.constant 0 : index
    %c0_55 = arith.constant 0 : index
    %93 = vector.load %arg9[%c5, %c0_54, %c0_55] : memref<10x64x72xf32, #tpu.memory_space<vmem>>, vector<1x64x72xf32>
    %94 = vector.shape_cast %93 : vector<1x64x72xf32> to vector<64x72xf32>
    %95 = arith.mulf %94, %67 : vector<64x72xf32>
    %cst_56 = arith.constant dense<0.000000e+00> : vector<72xf32>
    %96 = vector.multi_reduction <add>, %95, %cst_56 [0] : vector<64x72xf32> to vector<72xf32>
    %97 = vector.shape_cast %96 : vector<72xf32> to vector<1x72xf32>
    %c6 = arith.constant 6 : index
    %c0_57 = arith.constant 0 : index
    %c0_58 = arith.constant 0 : index
    %98 = vector.load %arg9[%c6, %c0_57, %c0_58] : memref<10x64x72xf32, #tpu.memory_space<vmem>>, vector<1x64x72xf32>
    %99 = vector.shape_cast %98 : vector<1x64x72xf32> to vector<64x72xf32>
    %100 = arith.mulf %99, %67 : vector<64x72xf32>
    %cst_59 = arith.constant dense<0.000000e+00> : vector<72xf32>
    %101 = vector.multi_reduction <add>, %100, %cst_59 [0] : vector<64x72xf32> to vector<72xf32>
    %102 = vector.shape_cast %101 : vector<72xf32> to vector<1x72xf32>
    %c7 = arith.constant 7 : index
    %c0_60 = arith.constant 0 : index
    %c0_61 = arith.constant 0 : index
    %103 = vector.load %arg9[%c7, %c0_60, %c0_61] : memref<10x64x72xf32, #tpu.memory_space<vmem>>, vector<1x64x72xf32>
    %104 = vector.shape_cast %103 : vector<1x64x72xf32> to vector<64x72xf32>
    %105 = arith.mulf %104, %67 : vector<64x72xf32>
    %cst_62 = arith.constant dense<0.000000e+00> : vector<72xf32>
    %106 = vector.multi_reduction <add>, %105, %cst_62 [0] : vector<64x72xf32> to vector<72xf32>
    %107 = vector.shape_cast %106 : vector<72xf32> to vector<1x72xf32>
    %c8 = arith.constant 8 : index
    %c0_63 = arith.constant 0 : index
    %c0_64 = arith.constant 0 : index
    %108 = vector.load %arg9[%c8, %c0_63, %c0_64] : memref<10x64x72xf32, #tpu.memory_space<vmem>>, vector<1x64x72xf32>
    %109 = vector.shape_cast %108 : vector<1x64x72xf32> to vector<64x72xf32>
    %110 = arith.mulf %109, %67 : vector<64x72xf32>
    %cst_65 = arith.constant dense<0.000000e+00> : vector<72xf32>
    %111 = vector.multi_reduction <add>, %110, %cst_65 [0] : vector<64x72xf32> to vector<72xf32>
    %112 = vector.shape_cast %111 : vector<72xf32> to vector<1x72xf32>
    %c9 = arith.constant 9 : index
    %c0_66 = arith.constant 0 : index
    %c0_67 = arith.constant 0 : index
    %113 = vector.load %arg9[%c9, %c0_66, %c0_67] : memref<10x64x72xf32, #tpu.memory_space<vmem>>, vector<1x64x72xf32>
    %114 = vector.shape_cast %113 : vector<1x64x72xf32> to vector<64x72xf32>
    %115 = arith.mulf %114, %67 : vector<64x72xf32>
    %cst_68 = arith.constant dense<0.000000e+00> : vector<72xf32>
    %116 = vector.multi_reduction <add>, %115, %cst_68 [0] : vector<64x72xf32> to vector<72xf32>
    %117 = vector.shape_cast %116 : vector<72xf32> to vector<1x72xf32>
    %118 = tpu.concatenate %72, %77, %82, %87, %92, %97, %102, %107, %112, %117 in 0 : vector<1x72xf32>, vector<1x72xf32>, vector<1x72xf32>, vector<1x72xf32>, vector<1x72xf32>, vector<1x72xf32>, vector<1x72xf32>, vector<1x72xf32>, vector<1x72xf32>, vector<1x72xf32> -> vector<10x72xf32>
    %c0_69 = arith.constant 0 : index
    %c0_70 = arith.constant 0 : index
    %119 = vector.load %arg13[%c0_69, %c0_70] : memref<72x2xf32, #tpu.memory_space<vmem>>, vector<72x2xf32>
    %cst_71 = arith.constant dense<0.000000e+00> : vector<10x2xf32>
    %120 = tpu.matmul %118, %119, %cst_71 {dimension_numbers = #tpu.dot_dimension_numbers<[1], [0], [0], [1], [0, 0, 1, 1], [], []>} : vector<10x72xf32>, vector<72x2xf32>, vector<10x2xf32> -> vector<10x2xf32>
    %c0_72 = arith.constant 0 : index
    %c0_73 = arith.constant 0 : index
    %121 = vector.load %arg14[%c0_72, %c0_73] : memref<2x72xf32, #tpu.memory_space<vmem>>, vector<2x72xf32>
    %cst_74 = arith.constant dense<0.000000e+00> : vector<10x72xf32>
    %122 = tpu.matmul %120, %121, %cst_74 {dimension_numbers = #tpu.dot_dimension_numbers<[1], [0], [0], [1], [0, 0, 1, 1], [], []>} : vector<10x2xf32>, vector<2x72xf32>, vector<10x72xf32> -> vector<10x72xf32>
    %c0_75 = arith.constant 0 : index
    %c0_76 = arith.constant 0 : index
    %c0_77 = arith.constant 0 : index
    %123 = vector.load %arg2[%c0_75, %c0_76, %c0_77] : memref<1x4x2xf32, #tpu.memory_space<vmem>>, vector<1x4x2xf32>
    %124 = vector.shape_cast %123 : vector<1x4x2xf32> to vector<4x2xf32>
    %c0_78 = arith.constant 0 : index
    %c0_79 = arith.constant 0 : index
    %125 = vector.load %arg14[%c0_78, %c0_79] : memref<2x72xf32, #tpu.memory_space<vmem>>, vector<2x72xf32>
    %cst_80 = arith.constant dense<0.000000e+00> : vector<4x72xf32>
    %126 = tpu.matmul %124, %125, %cst_80 {dimension_numbers = #tpu.dot_dimension_numbers<[1], [0], [0], [1], [0, 0, 1, 1], [], []>} : vector<4x2xf32>, vector<2x72xf32>, vector<4x72xf32> -> vector<4x72xf32>
    %c0_81 = arith.constant 0 : index
    %c0_82 = arith.constant 0 : index
    %127 = vector.load %arg12[%c0_81, %c0_82] : memref<64x72xf32, #tpu.memory_space<vmem>>, vector<64x72xf32>
    %128 = vector.extract_strided_slice %122 {offsets = [0, 0], sizes = [1, 72], strides = [1, 1]} : vector<10x72xf32> to vector<1x72xf32>
    %c0_83 = arith.constant 0 : index
    %c0_84 = arith.constant 0 : index
    %c0_85 = arith.constant 0 : index
    %129 = vector.load %arg10[%c0_83, %c0_84, %c0_85] : memref<10x64x72xf32, #tpu.memory_space<vmem>>, vector<1x64x72xf32>
    %130 = vector.shape_cast %129 : vector<1x64x72xf32> to vector<64x72xf32>
    %131 = vector.broadcast %128 : vector<1x72xf32> to vector<64x72xf32>
    %132 = arith.mulf %131, %130 : vector<64x72xf32>
    %133 = arith.addf %127, %132 : vector<64x72xf32>
    %134 = vector.extract_strided_slice %122 {offsets = [1, 0], sizes = [1, 72], strides = [1, 1]} : vector<10x72xf32> to vector<1x72xf32>
    %c1_86 = arith.constant 1 : index
    %c0_87 = arith.constant 0 : index
    %c0_88 = arith.constant 0 : index
    %135 = vector.load %arg10[%c1_86, %c0_87, %c0_88] : memref<10x64x72xf32, #tpu.memory_space<vmem>>, vector<1x64x72xf32>
    %136 = vector.shape_cast %135 : vector<1x64x72xf32> to vector<64x72xf32>
    %137 = vector.broadcast %134 : vector<1x72xf32> to vector<64x72xf32>
    %138 = arith.mulf %137, %136 : vector<64x72xf32>
    %139 = arith.addf %133, %138 : vector<64x72xf32>
    %140 = vector.extract_strided_slice %122 {offsets = [2, 0], sizes = [1, 72], strides = [1, 1]} : vector<10x72xf32> to vector<1x72xf32>
    %c2_89 = arith.constant 2 : index
    %c0_90 = arith.constant 0 : index
    %c0_91 = arith.constant 0 : index
    %141 = vector.load %arg10[%c2_89, %c0_90, %c0_91] : memref<10x64x72xf32, #tpu.memory_space<vmem>>, vector<1x64x72xf32>
    %142 = vector.shape_cast %141 : vector<1x64x72xf32> to vector<64x72xf32>
    %143 = vector.broadcast %140 : vector<1x72xf32> to vector<64x72xf32>
    %144 = arith.mulf %143, %142 : vector<64x72xf32>
    %145 = arith.addf %139, %144 : vector<64x72xf32>
    %146 = vector.extract_strided_slice %122 {offsets = [3, 0], sizes = [1, 72], strides = [1, 1]} : vector<10x72xf32> to vector<1x72xf32>
    %c3_92 = arith.constant 3 : index
    %c0_93 = arith.constant 0 : index
    %c0_94 = arith.constant 0 : index
    %147 = vector.load %arg10[%c3_92, %c0_93, %c0_94] : memref<10x64x72xf32, #tpu.memory_space<vmem>>, vector<1x64x72xf32>
    %148 = vector.shape_cast %147 : vector<1x64x72xf32> to vector<64x72xf32>
    %149 = vector.broadcast %146 : vector<1x72xf32> to vector<64x72xf32>
    %150 = arith.mulf %149, %148 : vector<64x72xf32>
    %151 = arith.addf %145, %150 : vector<64x72xf32>
    %152 = vector.extract_strided_slice %122 {offsets = [4, 0], sizes = [1, 72], strides = [1, 1]} : vector<10x72xf32> to vector<1x72xf32>
    %c4_95 = arith.constant 4 : index
    %c0_96 = arith.constant 0 : index
    %c0_97 = arith.constant 0 : index
    %153 = vector.load %arg10[%c4_95, %c0_96, %c0_97] : memref<10x64x72xf32, #tpu.memory_space<vmem>>, vector<1x64x72xf32>
    %154 = vector.shape_cast %153 : vector<1x64x72xf32> to vector<64x72xf32>
    %155 = vector.broadcast %152 : vector<1x72xf32> to vector<64x72xf32>
    %156 = arith.mulf %155, %154 : vector<64x72xf32>
    %157 = arith.addf %151, %156 : vector<64x72xf32>
    %158 = vector.extract_strided_slice %122 {offsets = [5, 0], sizes = [1, 72], strides = [1, 1]} : vector<10x72xf32> to vector<1x72xf32>
    %c5_98 = arith.constant 5 : index
    %c0_99 = arith.constant 0 : index
    %c0_100 = arith.constant 0 : index
    %159 = vector.load %arg10[%c5_98, %c0_99, %c0_100] : memref<10x64x72xf32, #tpu.memory_space<vmem>>, vector<1x64x72xf32>
    %160 = vector.shape_cast %159 : vector<1x64x72xf32> to vector<64x72xf32>
    %161 = vector.broadcast %158 : vector<1x72xf32> to vector<64x72xf32>
    %162 = arith.mulf %161, %160 : vector<64x72xf32>
    %163 = arith.addf %157, %162 : vector<64x72xf32>
    %164 = vector.extract_strided_slice %122 {offsets = [6, 0], sizes = [1, 72], strides = [1, 1]} : vector<10x72xf32> to vector<1x72xf32>
    %c6_101 = arith.constant 6 : index
    %c0_102 = arith.constant 0 : index
    %c0_103 = arith.constant 0 : index
    %165 = vector.load %arg10[%c6_101, %c0_102, %c0_103] : memref<10x64x72xf32, #tpu.memory_space<vmem>>, vector<1x64x72xf32>
    %166 = vector.shape_cast %165 : vector<1x64x72xf32> to vector<64x72xf32>
    %167 = vector.broadcast %164 : vector<1x72xf32> to vector<64x72xf32>
    %168 = arith.mulf %167, %166 : vector<64x72xf32>
    %169 = arith.addf %163, %168 : vector<64x72xf32>
    %170 = vector.extract_strided_slice %122 {offsets = [7, 0], sizes = [1, 72], strides = [1, 1]} : vector<10x72xf32> to vector<1x72xf32>
    %c7_104 = arith.constant 7 : index
    %c0_105 = arith.constant 0 : index
    %c0_106 = arith.constant 0 : index
    %171 = vector.load %arg10[%c7_104, %c0_105, %c0_106] : memref<10x64x72xf32, #tpu.memory_space<vmem>>, vector<1x64x72xf32>
    %172 = vector.shape_cast %171 : vector<1x64x72xf32> to vector<64x72xf32>
    %173 = vector.broadcast %170 : vector<1x72xf32> to vector<64x72xf32>
    %174 = arith.mulf %173, %172 : vector<64x72xf32>
    %175 = arith.addf %169, %174 : vector<64x72xf32>
    %176 = vector.extract_strided_slice %122 {offsets = [8, 0], sizes = [1, 72], strides = [1, 1]} : vector<10x72xf32> to vector<1x72xf32>
    %c8_107 = arith.constant 8 : index
    %c0_108 = arith.constant 0 : index
    %c0_109 = arith.constant 0 : index
    %177 = vector.load %arg10[%c8_107, %c0_108, %c0_109] : memref<10x64x72xf32, #tpu.memory_space<vmem>>, vector<1x64x72xf32>
    %178 = vector.shape_cast %177 : vector<1x64x72xf32> to vector<64x72xf32>
    %179 = vector.broadcast %176 : vector<1x72xf32> to vector<64x72xf32>
    %180 = arith.mulf %179, %178 : vector<64x72xf32>
    %181 = arith.addf %175, %180 : vector<64x72xf32>
    %182 = vector.extract_strided_slice %122 {offsets = [9, 0], sizes = [1, 72], strides = [1, 1]} : vector<10x72xf32> to vector<1x72xf32>
    %c9_110 = arith.constant 9 : index
    %c0_111 = arith.constant 0 : index
    %c0_112 = arith.constant 0 : index
    %183 = vector.load %arg10[%c9_110, %c0_111, %c0_112] : memref<10x64x72xf32, #tpu.memory_space<vmem>>, vector<1x64x72xf32>
    %184 = vector.shape_cast %183 : vector<1x64x72xf32> to vector<64x72xf32>
    %185 = vector.broadcast %182 : vector<1x72xf32> to vector<64x72xf32>
    %186 = arith.mulf %185, %184 : vector<64x72xf32>
    %187 = arith.addf %181, %186 : vector<64x72xf32>
    %188 = vector.extract_strided_slice %126 {offsets = [0, 0], sizes = [1, 72], strides = [1, 1]} : vector<4x72xf32> to vector<1x72xf32>
    %c0_113 = arith.constant 0 : index
    %c0_114 = arith.constant 0 : index
    %c0_115 = arith.constant 0 : index
    %189 = vector.load %arg11[%c0_113, %c0_114, %c0_115] : memref<4x64x72xf32, #tpu.memory_space<vmem>>, vector<1x64x72xf32>
    %190 = vector.shape_cast %189 : vector<1x64x72xf32> to vector<64x72xf32>
    %191 = vector.broadcast %188 : vector<1x72xf32> to vector<64x72xf32>
    %192 = arith.mulf %191, %190 : vector<64x72xf32>
    %193 = arith.addf %187, %192 : vector<64x72xf32>
    %194 = vector.extract_strided_slice %126 {offsets = [1, 0], sizes = [1, 72], strides = [1, 1]} : vector<4x72xf32> to vector<1x72xf32>
    %c1_116 = arith.constant 1 : index
    %c0_117 = arith.constant 0 : index
    %c0_118 = arith.constant 0 : index
    %195 = vector.load %arg11[%c1_116, %c0_117, %c0_118] : memref<4x64x72xf32, #tpu.memory_space<vmem>>, vector<1x64x72xf32>
    %196 = vector.shape_cast %195 : vector<1x64x72xf32> to vector<64x72xf32>
    %197 = vector.broadcast %194 : vector<1x72xf32> to vector<64x72xf32>
    %198 = arith.mulf %197, %196 : vector<64x72xf32>
    %199 = arith.addf %193, %198 : vector<64x72xf32>
    %200 = vector.extract_strided_slice %126 {offsets = [2, 0], sizes = [1, 72], strides = [1, 1]} : vector<4x72xf32> to vector<1x72xf32>
    %c2_119 = arith.constant 2 : index
    %c0_120 = arith.constant 0 : index
    %c0_121 = arith.constant 0 : index
    %201 = vector.load %arg11[%c2_119, %c0_120, %c0_121] : memref<4x64x72xf32, #tpu.memory_space<vmem>>, vector<1x64x72xf32>
    %202 = vector.shape_cast %201 : vector<1x64x72xf32> to vector<64x72xf32>
    %203 = vector.broadcast %200 : vector<1x72xf32> to vector<64x72xf32>
    %204 = arith.mulf %203, %202 : vector<64x72xf32>
    %205 = arith.addf %199, %204 : vector<64x72xf32>
    %206 = vector.extract_strided_slice %126 {offsets = [3, 0], sizes = [1, 72], strides = [1, 1]} : vector<4x72xf32> to vector<1x72xf32>
    %c3_122 = arith.constant 3 : index
    %c0_123 = arith.constant 0 : index
    %c0_124 = arith.constant 0 : index
    %207 = vector.load %arg11[%c3_122, %c0_123, %c0_124] : memref<4x64x72xf32, #tpu.memory_space<vmem>>, vector<1x64x72xf32>
    %208 = vector.shape_cast %207 : vector<1x64x72xf32> to vector<64x72xf32>
    %209 = vector.broadcast %206 : vector<1x72xf32> to vector<64x72xf32>
    %210 = arith.mulf %209, %208 : vector<64x72xf32>
    %211 = arith.addf %205, %210 : vector<64x72xf32>
    %c0_125 = arith.constant 0 : index
    %c2_126 = arith.constant 2 : index
    %212 = vector.load %arg22[%c0_125, %c2_126] : memref<64x76xf32, #tpu.memory_space<vmem>>, vector<64x72xf32>
    tpu.vector_store %arg22[%c0_125, %c2_126], %211 {strides = array<i32>} : memref<64x76xf32, #tpu.memory_space<vmem>>, vector<64x72xf32>,
    %c0_127 = arith.constant 0 : index
    %c0_128 = arith.constant 0 : index
    %213 = vector.load %arg22[%c0_127, %c0_128] : memref<64x76xf32, #tpu.memory_space<vmem>>, vector<64x72xf32>
    %c0_129 = arith.constant 0 : index
    %c1_130 = arith.constant 1 : index
    %214 = vector.load %arg22[%c0_129, %c1_130] : memref<64x76xf32, #tpu.memory_space<vmem>>, vector<64x72xf32>
    %c0_131 = arith.constant 0 : index
    %c2_132 = arith.constant 2 : index
    %215 = vector.load %arg22[%c0_131, %c2_132] : memref<64x76xf32, #tpu.memory_space<vmem>>, vector<64x72xf32>
    %c0_133 = arith.constant 0 : index
    %c3_134 = arith.constant 3 : index
    %216 = vector.load %arg22[%c0_133, %c3_134] : memref<64x76xf32, #tpu.memory_space<vmem>>, vector<64x72xf32>
    %c0_135 = arith.constant 0 : index
    %c4_136 = arith.constant 4 : index
    %217 = vector.load %arg22[%c0_135, %c4_136] : memref<64x76xf32, #tpu.memory_space<vmem>>, vector<64x72xf32>
    %218 = tpu.concatenate %213, %214, %215, %216, %217 in 0 : vector<64x72xf32>, vector<64x72xf32>, vector<64x72xf32>, vector<64x72xf32>, vector<64x72xf32> -> vector<320x72xf32>
    %c0_137 = arith.constant 0 : index
    %c0_138 = arith.constant 0 : index
    %219 = vector.load %arg15[%c0_137, %c0_138] : memref<32x320xf32, #tpu.memory_space<vmem>>, vector<32x320xf32>
    %cst_139 = arith.constant dense<0.000000e+00> : vector<32x72xf32>
    %220 = tpu.matmul %219, %218, %cst_139 {dimension_numbers = #tpu.dot_dimension_numbers<[1], [0], [0], [1], [0, 0, 1, 1], [], []>} : vector<32x320xf32>, vector<320x72xf32>, vector<32x72xf32> -> vector<32x72xf32>
    %c0_140 = arith.constant 0 : index
    %c0_141 = arith.constant 0 : index
    %221 = vector.load %arg16[%c0_140, %c0_141] : memref<32x1xf32, #tpu.memory_space<vmem>>, vector<32x1xf32>
    %222 = vector.broadcast %221 : vector<32x1xf32> to vector<32x72xf32>
    %223 = arith.addf %220, %222 : vector<32x72xf32>
    %cst_142 = arith.constant 0.000000e+00 : f32
    %224 = vector.broadcast %cst_142 : f32 to vector<32x72xf32>
    %225 = arith.maximumf %223, %224 : vector<32x72xf32>
    %c0_143 = arith.constant 0 : index
    %c0_144 = arith.constant 0 : index
    %226 = vector.load %arg17[%c0_143, %c0_144] : memref<72x136xf32, #tpu.memory_space<vmem>>, vector<72x136xf32>
    %cst_145 = arith.constant dense<0.000000e+00> : vector<32x136xf32>
    %227 = tpu.matmul %225, %226, %cst_145 {dimension_numbers = #tpu.dot_dimension_numbers<[1], [0], [0], [1], [0, 0, 1, 1], [], []>} : vector<32x72xf32>, vector<72x136xf32>, vector<32x136xf32> -> vector<32x136xf32>
    %c0_146 = arith.constant 0 : index
    %c2_147 = arith.constant 2 : index
    %228 = vector.load %arg21[%c0_146, %c2_147] : memref<32x140xf32, #tpu.memory_space<vmem>>, vector<32x136xf32>
    tpu.vector_store %arg21[%c0_146, %c2_147], %227 {strides = array<i32>} : memref<32x140xf32, #tpu.memory_space<vmem>>, vector<32x136xf32>,
    %c0_148 = arith.constant 0 : index
    %c0_149 = arith.constant 0 : index
    %229 = vector.load %arg21[%c0_148, %c0_149] : memref<32x140xf32, #tpu.memory_space<vmem>>, vector<32x136xf32>
    %c0_150 = arith.constant 0 : index
    %c1_151 = arith.constant 1 : index
    %230 = vector.load %arg21[%c0_150, %c1_151] : memref<32x140xf32, #tpu.memory_space<vmem>>, vector<32x136xf32>
    %c0_152 = arith.constant 0 : index
    %c2_153 = arith.constant 2 : index
    %231 = vector.load %arg21[%c0_152, %c2_153] : memref<32x140xf32, #tpu.memory_space<vmem>>, vector<32x136xf32>
    %c0_154 = arith.constant 0 : index
    %c3_155 = arith.constant 3 : index
    %232 = vector.load %arg21[%c0_154, %c3_155] : memref<32x140xf32, #tpu.memory_space<vmem>>, vector<32x136xf32>
    %c0_156 = arith.constant 0 : index
    %c4_157 = arith.constant 4 : index
    %233 = vector.load %arg21[%c0_156, %c4_157] : memref<32x140xf32, #tpu.memory_space<vmem>>, vector<32x136xf32>
    %234 = tpu.concatenate %229, %230, %231, %232, %233 in 0 : vector<32x136xf32>, vector<32x136xf32>, vector<32x136xf32>, vector<32x136xf32>, vector<32x136xf32> -> vector<160x136xf32>
    %c0_158 = arith.constant 0 : index
    %c0_159 = arith.constant 0 : index
    %235 = vector.load %arg18[%c0_158, %c0_159] : memref<1x160xf32, #tpu.memory_space<vmem>>, vector<1x160xf32>
    %cst_160 = arith.constant dense<0.000000e+00> : vector<1x136xf32>
    %236 = tpu.matmul %235, %234, %cst_160 {dimension_numbers = #tpu.dot_dimension_numbers<[1], [0], [0], [1], [0, 0, 1, 1], [], []>} : vector<1x160xf32>, vector<160x136xf32>, vector<1x136xf32> -> vector<1x136xf32>
    %c0_161 = arith.constant 0 : index
    %c0_162 = arith.constant 0 : index
    %237 = vector.load %arg19[%c0_161, %c0_162] : memref<1x1xf32, #tpu.memory_space<vmem>>, vector<1x1xf32>
    %238 = vector.broadcast %237 : vector<1x1xf32> to vector<1x136xf32>
    %239 = arith.addf %236, %238 : vector<1x136xf32>
    %240 = arith.negf %239 : vector<1x136xf32>
    %241 = math.exp %240 : vector<1x136xf32>
    %cst_163 = arith.constant 1.000000e+00 : f32
    %242 = vector.broadcast %cst_163 : f32 to vector<1x136xf32>
    %243 = arith.addf %242, %241 : vector<1x136xf32>
    %244 = arith.divf %242, %243 : vector<1x136xf32>
    %c0_164 = arith.constant 0 : index
    %c0_165 = arith.constant 0 : index
    %c0_166 = arith.constant 0 : index
    %245 = vector.load %arg20[%c0_164, %c0_165, %c0_166] : memref<1x1x136xf32, #tpu.memory_space<vmem>>, vector<1x1x136xf32>
    %246 = vector.shape_cast %245 : vector<1x1x136xf32> to vector<1x136xf32>
    %247 = vector.shape_cast %244 : vector<1x136xf32> to vector<1x1x136xf32>
    tpu.vector_store %arg20[%c0_164, %c0_165, %c0_166], %247 {strides = array<i32>} : memref<1x1x136xf32, #tpu.memory_space<vmem>>, vector<1x1x136xf32>,
    return
  }
  func.func @transform_0(%arg0: i32) -> (i32, i32, i32) {
    %c0_i32 = arith.constant 0 : i32
    %c0_i32_0 = arith.constant 0 : i32
    %c0_i32_1 = arith.constant 0 : i32
    return %arg0, %c0_i32, %c0_i32_0 : i32, i32, i32
  }
  func.func @transform_1(%arg0: i32) -> (i32, i32, i32) {
    %c0_i32 = arith.constant 0 : i32
    %c0_i32_0 = arith.constant 0 : i32
    %c0_i32_1 = arith.constant 0 : i32
    return %arg0, %c0_i32, %c0_i32_0 : i32, i32, i32
  }
  func.func @transform_2(%arg0: i32) -> (i32, i32) {
    %c0_i32 = arith.constant 0 : i32
    %c0_i32_0 = arith.constant 0 : i32
    %c0_i32_1 = arith.constant 0 : i32
    return %c0_i32, %c0_i32_0 : i32, i32
  }
  func.func @transform_3(%arg0: i32) -> (i32, i32) {
    %c0_i32 = arith.constant 0 : i32
    %c0_i32_0 = arith.constant 0 : i32
    %c0_i32_1 = arith.constant 0 : i32
    return %c0_i32, %c0_i32_0 : i32, i32
  }
  func.func @transform_4(%arg0: i32) -> (i32, i32) {
    %c0_i32 = arith.constant 0 : i32
    %c0_i32_0 = arith.constant 0 : i32
    %c0_i32_1 = arith.constant 0 : i32
    return %c0_i32, %c0_i32_0 : i32, i32
  }
  func.func @transform_5(%arg0: i32) -> (i32, i32) {
    %c0_i32 = arith.constant 0 : i32
    %c0_i32_0 = arith.constant 0 : i32
    %c0_i32_1 = arith.constant 0 : i32
    return %c0_i32, %c0_i32_0 : i32, i32
  }
  func.func @transform_6(%arg0: i32) -> (i32, i32) {
    %c0_i32 = arith.constant 0 : i32
    %c0_i32_0 = arith.constant 0 : i32
    %c0_i32_1 = arith.constant 0 : i32
    return %c0_i32, %c0_i32_0 : i32, i32
  }
  func.func @transform_7(%arg0: i32) -> (i32, i32) {
    %c0_i32 = arith.constant 0 : i32
    %c0_i32_0 = arith.constant 0 : i32
    %c0_i32_1 = arith.constant 0 : i32
    return %c0_i32, %c0_i32_0 : i32, i32
  }
  func.func @transform_8(%arg0: i32) -> (i32, i32, i32) {
    %c0_i32 = arith.constant 0 : i32
    %c0_i32_0 = arith.constant 0 : i32
    %c0_i32_1 = arith.constant 0 : i32
    %c0_i32_2 = arith.constant 0 : i32
    return %c0_i32, %c0_i32_0, %c0_i32_1 : i32, i32, i32
  }
  func.func @transform_9(%arg0: i32) -> (i32, i32, i32) {
    %c0_i32 = arith.constant 0 : i32
    %c0_i32_0 = arith.constant 0 : i32
    %c0_i32_1 = arith.constant 0 : i32
    %c0_i32_2 = arith.constant 0 : i32
    return %c0_i32, %c0_i32_0, %c0_i32_1 : i32, i32, i32
  }
  func.func @transform_10(%arg0: i32) -> (i32, i32, i32) {
    %c0_i32 = arith.constant 0 : i32
    %c0_i32_0 = arith.constant 0 : i32
    %c0_i32_1 = arith.constant 0 : i32
    %c0_i32_2 = arith.constant 0 : i32
    return %c0_i32, %c0_i32_0, %c0_i32_1 : i32, i32, i32
  }
  func.func @transform_11(%arg0: i32) -> (i32, i32) {
    %c0_i32 = arith.constant 0 : i32
    %c0_i32_0 = arith.constant 0 : i32
    %c0_i32_1 = arith.constant 0 : i32
    return %c0_i32, %c0_i32_0 : i32, i32
  }
  func.func @transform_12(%arg0: i32) -> (i32, i32) {
    %c0_i32 = arith.constant 0 : i32
    %c0_i32_0 = arith.constant 0 : i32
    %c0_i32_1 = arith.constant 0 : i32
    return %c0_i32, %c0_i32_0 : i32, i32
  }
  func.func @transform_13(%arg0: i32) -> (i32, i32) {
    %c0_i32 = arith.constant 0 : i32
    %c0_i32_0 = arith.constant 0 : i32
    %c0_i32_1 = arith.constant 0 : i32
    return %c0_i32, %c0_i32_0 : i32, i32
  }
  func.func @transform_14(%arg0: i32) -> (i32, i32) {
    %c0_i32 = arith.constant 0 : i32
    %c0_i32_0 = arith.constant 0 : i32
    %c0_i32_1 = arith.constant 0 : i32
    return %c0_i32, %c0_i32_0 : i32, i32
  }
  func.func @transform_15(%arg0: i32) -> (i32, i32) {
    %c0_i32 = arith.constant 0 : i32
    %c0_i32_0 = arith.constant 0 : i32
    %c0_i32_1 = arith.constant 0 : i32
    return %c0_i32, %c0_i32_0 : i32, i32
  }
  func.func @transform_16(%arg0: i32) -> (i32, i32) {
    %c0_i32 = arith.constant 0 : i32
    %c0_i32_0 = arith.constant 0 : i32
    %c0_i32_1 = arith.constant 0 : i32
    return %c0_i32, %c0_i32_0 : i32, i32
  }
  func.func @transform_17(%arg0: i32) -> (i32, i32) {
    %c0_i32 = arith.constant 0 : i32
    %c0_i32_0 = arith.constant 0 : i32
    %c0_i32_1 = arith.constant 0 : i32
    return %c0_i32, %c0_i32_0 : i32, i32
  }
  func.func @transform_18(%arg0: i32) -> (i32, i32) {
    %c0_i32 = arith.constant 0 : i32
    %c0_i32_0 = arith.constant 0 : i32
    %c0_i32_1 = arith.constant 0 : i32
    return %c0_i32, %c0_i32_0 : i32, i32
  }
  func.func @transform_19(%arg0: i32) -> (i32, i32, i32) {
    %c0_i32 = arith.constant 0 : i32
    %c0_i32_0 = arith.constant 0 : i32
    %c0_i32_1 = arith.constant 0 : i32
    return %arg0, %c0_i32, %c0_i32_0 : i32, i32, i32
  }
}

</mosaic_0001>

<bundles_post_ra>
// kernel: tile.39
= control target key start
LH: loop header
LB: loop body
LE: loop exit
PB: predicated region body
PF: predicated region fallthrough
CT: control target
= control target key end

     0   :  { %vm3_vm0 = vcmask 523264   ;;  %s148_s0 = inlined_call_operand.vmem [shape: f32[64,2,36], index: 0, kind: input, shape index: {}]   ;;  %s149_s1 = inlined_call_operand.vmem [shape: f32[64,72], index: 1, kind: output, shape index: {}]  }
   0x1   :  { %v2_v0 = vld [vmem:[%s148_s0] sm:$0xff]   ;;  %v50_v1 = vld [vmem:[%s148_s0 + $0x8] sm:$0xff]   ;;  %v52_v2 = vld [vmem:[%s148_s0 + $0x10] sm:$0xff]  }
   0x2   :  { %4 = vst.msk [vmem:[%s149_s1] sm:$0xff] %vm3_vm0, %v2_v0   ;;  %51 = vst.msk [vmem:[%s149_s1 + $0x8] sm:$0xff] %vm3_vm0, %v50_v1   ;;  %v54_v3 = vld [vmem:[%s148_s0 + $0x18] sm:$0xff]   ;;  %v56_v4 = vld [vmem:[%s148_s0 + $0x20] sm:$0xf]  }
   0x3   :  { %53 = vst.msk [vmem:[%s149_s1 + $0x10] sm:$0xff] %vm3_vm0, %v52_v2   ;;  %v58_v5 = vld [vmem:[%s148_s0 + $0x28] sm:$0xff]   ;;  %55 = vst.msk [vmem:[%s149_s1 + $0x18] sm:$0xff] %vm3_vm0, %v54_v3   ;;  %v60_v6 = vld [vmem:[%s148_s0 + $0x30] sm:$0xff]  }
   0x4   :  { %57 = vst.msk [vmem:[%s149_s1 + $0x20] sm:$0xf] %vm3_vm0, %v56_v4   ;;  %59 = vst.msk [vmem:[%s149_s1 + $0x24] sm:$0xff] %vm3_vm0, %v58_v5   ;;  %v62_v7 = vld [vmem:[%s148_s0 + $0x38] sm:$0xff]   ;;  %v64_v8 = vld [vmem:[%s148_s0 + $0x40] sm:$0xff]  }
   0x5   :  { %61 = vst.msk [vmem:[%s149_s1 + $0x2c] sm:$0xff] %vm3_vm0, %v60_v6   ;;  %63 = vst.msk [vmem:[%s149_s1 + $0x34] sm:$0xff] %vm3_vm0, %v62_v7   ;;  %v66_v9 = vld [vmem:[%s148_s0 + $0x48] sm:$0xf]  }
   0x6   :  { %65 = vst.msk [vmem:[%s149_s1 + $0x3c] sm:$0xff] %vm3_vm0, %v64_v8   ;;  %67 = vst.msk [vmem:[%s149_s1 + $0x44] sm:$0xf] %vm3_vm0, %v66_v9  }

// kernel: tile.29
= control target key start
LH: loop header
LB: loop body
LE: loop exit
PB: predicated region body
PF: predicated region fallthrough
CT: control target
= control target key end

     0   :  { %vm3_vm0 = vcmask 523264   ;;  %s1408_s0 = inlined_call_operand.vmem [shape: f32[10,64,2,36], index: 0, kind: input, shape index: {}]   ;;  %s1409_s1 = inlined_call_operand.vmem [shape: f32[10,64,72], index: 1, kind: output, shape index: {}]  }
   0x1   :  { %v2_v0 = vld [vmem:[%s1408_s0] sm:$0xff]   ;;  %v500_v1 = vld [vmem:[%s1408_s0 + $0x8] sm:$0xff]   ;;  %v502_v2 = vld [vmem:[%s1408_s0 + $0x10] sm:$0xff]  }
   0x2   :  { %4 = vst.msk [vmem:[%s1409_s1] sm:$0xff] %vm3_vm0, %v2_v0   ;;  %501 = vst.msk [vmem:[%s1409_s1 + $0x8] sm:$0xff] %vm3_vm0, %v500_v1   ;;  %v504_v3 = vld [vmem:[%s1408_s0 + $0x18] sm:$0xff]   ;;  %v506_v4 = vld [vmem:[%s1408_s0 + $0x20] sm:$0xf]  }
   0x3   :  { %503 = vst.msk [vmem:[%s1409_s1 + $0x10] sm:$0xff] %vm3_vm0, %v502_v2   ;;  %v508_v5 = vld [vmem:[%s1408_s0 + $0x28] sm:$0xff]   ;;  %505 = vst.msk [vmem:[%s1409_s1 + $0x18] sm:$0xff] %vm3_vm0, %v504_v3   ;;  %v510_v6 = vld [vmem:[%s1408_s0 + $0x30] sm:$0xff]  }
   0x4   :  { %507 = vst.msk [vmem:[%s1409_s1 + $0x20] sm:$0xf] %vm3_vm0, %v506_v4   ;;  %509 = vst.msk [vmem:[%s1409_s1 + $0x24] sm:$0xff] %vm3_vm0, %v508_v5   ;;  %v512_v7 = vld [vmem:[%s1408_s0 + $0x38] sm:$0xff]   ;;  %v514_v8 = vld [vmem:[%s1408_s0 + $0x40] sm:$0xff]  }
   0x5   :  { %511 = vst.msk [vmem:[%s1409_s1 + $0x2c] sm:$0xff] %vm3_vm0, %v510_v6   ;;  %513 = vst.msk [vmem:[%s1409_s1 + $0x34] sm:$0xff] %vm3_vm0, %v512_v7   ;;  %v516_v9 = vld [vmem:[%s1408_s0 + $0x48] sm:$0xf]   ;;  %v518_v10 = vld [vmem:[%s1408_s0 + $0x50] sm:$0xff]  }
   0x6   :  { %515 = vst.msk [vmem:[%s1409_s1 + $0x3c] sm:$0xff] %vm3_vm0, %v514_v8   ;;  %v520_v11 = vld [vmem:[%s1408_s0 + $0x58] sm:$0xff]   ;;  %517 = vst.msk [vmem:[%s1409_s1 + $0x44] sm:$0xf] %vm3_vm0, %v516_v9   ;;  %v522_v12 = vld [vmem:[%s1408_s0 + $0x60] sm:$0xff]  }
   0x7   :  { %519 = vst.msk [vmem:[%s1409_s1 + $0x48] sm:$0xff] %vm3_vm0, %v518_v10   ;;  %521 = vst.msk [vmem:[%s1409_s1 + $0x50] sm:$0xff] %vm3_vm0, %v520_v11   ;;  %v524_v13 = vld [vmem:[%s1408_s0 + $0x68] sm:$0xff]   ;;  %v526_v14 = vld [vmem:[%s1408_s0 + $0x70] sm:$0xf]  }
   0x8   :  { %523 = vst.msk [vmem:[%s1409_s1 + $0x58] sm:$0xff] %vm3_vm0, %v522_v12   ;;  %525 = vst.msk [vmem:[%s1409_s1 + $0x60] sm:$0xff] %vm3_vm0, %v524_v13   ;;  %v528_v15 = vld [vmem:[%s1408_s0 + $0x78] sm:$0xff]   ;;  %v530_v16 = vld [vmem:[%s1408_s0 + $0x80] sm:$0xff]  }
   0x9   :  { %527 = vst.msk [vmem:[%s1409_s1 + $0x68] sm:$0xf] %vm3_vm0, %v526_v14   ;;  %v532_v17 = vld [vmem:[%s1408_s0 + $0x88] sm:$0xff]   ;;  %529 = vst.msk [vmem:[%s1409_s1 + $0x6c] sm:$0xff] %vm3_vm0, %v528_v15   ;;  %v534_v18 = vld [vmem:[%s1408_s0 + $0x90] sm:$0xff]  }
   0xa   :  { %531 = vst.msk [vmem:[%s1409_s1 + $0x74] sm:$0xff] %vm3_vm0, %v530_v16   ;;  %533 = vst.msk [vmem:[%s1409_s1 + $0x7c] sm:$0xff] %vm3_vm0, %v532_v17   ;;  %v536_v19 = vld [vmem:[%s1408_s0 + $0x98] sm:$0xf]   ;;  %v538_v20 = vld [vmem:[%s1408_s0 + $0xa0] sm:$0xff]  }
   0xb   :  { %535 = vst.msk [vmem:[%s1409_s1 + $0x84] sm:$0xff] %vm3_vm0, %v534_v18   ;;  %537 = vst.msk [vmem:[%s1409_s1 + $0x8c] sm:$0xf] %vm3_vm0, %v536_v19   ;;  %v540_v21 = vld [vmem:[%s1408_s0 + $0xa8] sm:$0xff]   ;;  %v542_v22 = vld [vmem:[%s1408_s0 + $0xb0] sm:$0xff]  }
   0xc   :  { %539 = vst.msk [vmem:[%s1409_s1 + $0x90] sm:$0xff] %vm3_vm0, %v538_v20   ;;  %v544_v23 = vld [vmem:[%s1408_s0 + $0xb8] sm:$0xff]   ;;  %541 = vst.msk [vmem:[%s1409_s1 + $0x98] sm:$0xff] %vm3_vm0, %v540_v21   ;;  %v546_v24 = vld [vmem:[%s1408_s0 + $0xc0] sm:$0xf]  }
   0xd   :  { %543 = vst.msk [vmem:[%s1409_s1 + $0xa0] sm:$0xff] %vm3_vm0, %v542_v22   ;;  %545 = vst.msk [vmem:[%s1409_s1 + $0xa8] sm:$0xff] %vm3_vm0, %v544_v23   ;;  %v548_v25 = vld [vmem:[%s1408_s0 + $0xc8] sm:$0xff]   ;;  %v550_v26 = vld [vmem:[%s1408_s0 + $0xd0] sm:$0xff]  }
   0xe   :  { %547 = vst.msk [vmem:[%s1409_s1 + $0xb0] sm:$0xf] %vm3_vm0, %v546_v24   ;;  %549 = vst.msk [vmem:[%s1409_s1 + $0xb4] sm:$0xff] %vm3_vm0, %v548_v25   ;;  %v552_v27 = vld [vmem:[%s1408_s0 + $0xd8] sm:$0xff]   ;;  %v554_v28 = vld [vmem:[%s1408_s0 + $0xe0] sm:$0xff]  }
   0xf   :  { %551 = vst.msk [vmem:[%s1409_s1 + $0xbc] sm:$0xff] %vm3_vm0, %v550_v26   ;;  %v556_v29 = vld [vmem:[%s1408_s0 + $0xe8] sm:$0xf]   ;;  %553 = vst.msk [vmem:[%s1409_s1 + $0xc4] sm:$0xff] %vm3_vm0, %v552_v27   ;;  %v558_v30 = vld [vmem:[%s1408_s0 + $0xf0] sm:$0xff]  }
  0x10   :  { %555 = vst.msk [vmem:[%s1409_s1 + $0xcc] sm:$0xff] %vm3_vm0, %v554_v28   ;;  %557 = vst.msk [vmem:[%s1409_s1 + $0xd4] sm:$0xf] %vm3_vm0, %v556_v29   ;;  %v560_v31 = vld [vmem:[%s1408_s0 + $0xf8] sm:$0xff]   ;;  %v562_v32 = vld [vmem:[%s1408_s0 + $0x100] sm:$0xff]  }
  0x11   :  { %559 = vst.msk [vmem:[%s1409_s1 + $0xd8] sm:$0xff] %vm3_vm0, %v558_v30   ;;  %561 = vst.msk [vmem:[%s1409_s1 + $0xe0] sm:$0xff] %vm3_vm0, %v560_v31   ;;  %v564_v33 = vld [vmem:[%s1408_s0 + $0x108] sm:$0xff]   ;;  %v566_v34 = vld [vmem:[%s1408_s0 + $0x110] sm:$0xf]  }
  0x12   :  { %563 = vst.msk [vmem:[%s1409_s1 + $0xe8] sm:$0xff] %vm3_vm0, %v562_v32   ;;  %v568_v35 = vld [vmem:[%s1408_s0 + $0x118] sm:$0xff]   ;;  %565 = vst.msk [vmem:[%s1409_s1 + $0xf0] sm:$0xff] %vm3_vm0, %v564_v33   ;;  %v570_v36 = vld [vmem:[%s1408_s0 + $0x120] sm:$0xff]  }
  0x13   :  { %567 = vst.msk [vmem:[%s1409_s1 + $0xf8] sm:$0xf] %vm3_vm0, %v566_v34   ;;  %569 = vst.msk [vmem:[%s1409_s1 + $0xfc] sm:$0xff] %vm3_vm0, %v568_v35   ;;  %v572_v37 = vld [vmem:[%s1408_s0 + $0x128] sm:$0xff]   ;;  %v574_v38 = vld [vmem:[%s1408_s0 + $0x130] sm:$0xff]  }
  0x14   :  { %571 = vst.msk [vmem:[%s1409_s1 + $0x104] sm:$0xff] %vm3_vm0, %v570_v36   ;;  %573 = vst.msk [vmem:[%s1409_s1 + $0x10c] sm:$0xff] %vm3_vm0, %v572_v37   ;;  %v576_v39 = vld [vmem:[%s1408_s0 + $0x138] sm:$0xf]   ;;  %v578_v40 = vld [vmem:[%s1408_s0 + $0x140] sm:$0xff]  }
  0x15   :  { %575 = vst.msk [vmem:[%s1409_s1 + $0x114] sm:$0xff] %vm3_vm0, %v574_v38   ;;  %v580_v41 = vld [vmem:[%s1408_s0 + $0x148] sm:$0xff]   ;;  %577 = vst.msk [vmem:[%s1409_s1 + $0x11c] sm:$0xf] %vm3_vm0, %v576_v39   ;;  %v582_v42 = vld [vmem:[%s1408_s0 + $0x150] sm:$0xff]  }
  0x16   :  { %579 = vst.msk [vmem:[%s1409_s1 + $0x120] sm:$0xff] %vm3_vm0, %v578_v40   ;;  %581 = vst.msk [vmem:[%s1409_s1 + $0x128] sm:$0xff] %vm3_vm0, %v580_v41   ;;  %v584_v43 = vld [vmem:[%s1408_s0 + $0x158] sm:$0xff]   ;;  %v586_v44 = vld [vmem:[%s1408_s0 + $0x160] sm:$0xf]  }
  0x17   :  { %583 = vst.msk [vmem:[%s1409_s1 + $0x130] sm:$0xff] %vm3_vm0, %v582_v42   ;;  %585 = vst.msk [vmem:[%s1409_s1 + $0x138] sm:$0xff] %vm3_vm0, %v584_v43   ;;  %v588_v45 = vld [vmem:[%s1408_s0 + $0x168] sm:$0xff]   ;;  %v590_v46 = vld [vmem:[%s1408_s0 + $0x170] sm:$0xff]  }
  0x18   :  { %587 = vst.msk [vmem:[%s1409_s1 + $0x140] sm:$0xf] %vm3_vm0, %v586_v44   ;;  %v592_v47 = vld [vmem:[%s1408_s0 + $0x178] sm:$0xff]   ;;  %589 = vst.msk [vmem:[%s1409_s1 + $0x144] sm:$0xff] %vm3_vm0, %v588_v45   ;;  %v594_v48 = vld [vmem:[%s1408_s0 + $0x180] sm:$0xff]  }
  0x19   :  { %591 = vst.msk [vmem:[%s1409_s1 + $0x14c] sm:$0xff] %vm3_vm0, %v590_v46   ;;  %593 = vst.msk [vmem:[%s1409_s1 + $0x154] sm:$0xff] %vm3_vm0, %v592_v47   ;;  %v596_v49 = vld [vmem:[%s1408_s0 + $0x188] sm:$0xf]   ;;  %v598_v50 = vld [vmem:[%s1408_s0 + $0x190] sm:$0xff]  }
  0x1a   :  { %595 = vst.msk [vmem:[%s1409_s1 + $0x15c] sm:$0xff] %vm3_vm0, %v594_v48   ;;  %597 = vst.msk [vmem:[%s1409_s1 + $0x164] sm:$0xf] %vm3_vm0, %v596_v49   ;;  %v600_v51 = vld [vmem:[%s1408_s0 + $0x198] sm:$0xff]   ;;  %v602_v52 = vld [vmem:[%s1408_s0 + $0x1a0] sm:$0xff]  }
  0x1b   :  { %599 = vst.msk [vmem:[%s1409_s1 + $0x168] sm:$0xff] %vm3_vm0, %v598_v50   ;;  %v604_v53 = vld [vmem:[%s1408_s0 + $0x1a8] sm:$0xff]   ;;  %601 = vst.msk [vmem:[%s1409_s1 + $0x170] sm:$0xff] %vm3_vm0, %v600_v51   ;;  %v606_v54 = vld [vmem:[%s1408_s0 + $0x1b0] sm:$0xf]  }
  0x1c   :  { %603 = vst.msk [vmem:[%s1409_s1 + $0x178] sm:$0xff] %vm3_vm0, %v602_v52   ;;  %605 = vst.msk [vmem:[%s1409_s1 + $0x180] sm:$0xff] %vm3_vm0, %v604_v53   ;;  %v608_v55 = vld [vmem:[%s1408_s0 + $0x1b8] sm:$0xff]   ;;  %v610_v56 = vld [vmem:[%s1408_s0 + $0x1c0] sm:$0xff]  }
  0x1d   :  { %607 = vst.msk [vmem:[%s1409_s1 + $0x188] sm:$0xf] %vm3_vm0, %v606_v54   ;;  %609 = vst.msk [vmem:[%s1409_s1 + $0x18c] sm:$0xff] %vm3_vm0, %v608_v55   ;;  %v612_v57 = vld [vmem:[%s1408_s0 + $0x1c8] sm:$0xff]   ;;  %v614_v58 = vld [vmem:[%s1408_s0 + $0x1d0] sm:$0xff]  }
  0x1e   :  { %611 = vst.msk [vmem:[%s1409_s1 + $0x194] sm:$0xff] %vm3_vm0, %v610_v56   ;;  %v616_v59 = vld [vmem:[%s1408_s0 + $0x1d8] sm:$0xf]   ;;  %613 = vst.msk [vmem:[%s1409_s1 + $0x19c] sm:$0xff] %vm3_vm0, %v612_v57   ;;  %v618_v60 = vld [vmem:[%s1408_s0 + $0x1e0] sm:$0xff]  }
  0x1f   :  { %615 = vst.msk [vmem:[%s1409_s1 + $0x1a4] sm:$0xff] %vm3_vm0, %v614_v58   ;;  %617 = vst.msk [vmem:[%s1409_s1 + $0x1ac] sm:$0xf] %vm3_vm0, %v616_v59   ;;  %v620_v61 = vld [vmem:[%s1408_s0 + $0x1e8] sm:$0xff]   ;;  %v622_v62 = vld [vmem:[%s1408_s0 + $0x1f0] sm:$0xff]  }
  0x20   :  { %619 = vst.msk [vmem:[%s1409_s1 + $0x1b0] sm:$0xff] %vm3_vm0, %v618_v60   ;;  %621 = vst.msk [vmem:[%s1409_s1 + $0x1b8] sm:$0xff] %vm3_vm0, %v620_v61   ;;  %v624_v63 = vld [vmem:[%s1408_s0 + $0x1f8] sm:$0xff]   ;;  %v626_v0 = vld [vmem:[%s1408_s0 + $0x200] sm:$0xf]  }
  0x21   :  { %623 = vst.msk [vmem:[%s1409_s1 + $0x1c0] sm:$0xff] %vm3_vm0, %v622_v62   ;;  %v628_v1 = vld [vmem:[%s1408_s0 + $0x208] sm:$0xff]   ;;  %625 = vst.msk [vmem:[%s1409_s1 + $0x1c8] sm:$0xff] %vm3_vm0, %v624_v63   ;;  %v630_v2 = vld [vmem:[%s1408_s0 + $0x210] sm:$0xff]  }
  0x22   :  { %627 = vst.msk [vmem:[%s1409_s1 + $0x1d0] sm:$0xf] %vm3_vm0, %v626_v0   ;;  %629 = vst.msk [vmem:[%s1409_s1 + $0x1d4] sm:$0xff] %vm3_vm0, %v628_v1   ;;  %v632_v3 = vld [vmem:[%s1408_s0 + $0x218] sm:$0xff]   ;;  %v634_v4 = vld [vmem:[%s1408_s0 + $0x220] sm:$0xff]  }
  0x23   :  { %631 = vst.msk [vmem:[%s1409_s1 + $0x1dc] sm:$0xff] %vm3_vm0, %v630_v2   ;;  %633 = vst.msk [vmem:[%s1409_s1 + $0x1e4] sm:$0xff] %vm3_vm0, %v632_v3   ;;  %v636_v5 = vld [vmem:[%s1408_s0 + $0x228] sm:$0xf]   ;;  %v638_v6 = vld [vmem:[%s1408_s0 + $0x230] sm:$0xff]  }
  0x24   :  { %635 = vst.msk [vmem:[%s1409_s1 + $0x1ec] sm:$0xff] %vm3_vm0, %v634_v4   ;;  %v640_v7 = vld [vmem:[%s1408_s0 + $0x238] sm:$0xff]   ;;  %637 = vst.msk [vmem:[%s1409_s1 + $0x1f4] sm:$0xf] %vm3_vm0, %v636_v5   ;;  %v642_v8 = vld [vmem:[%s1408_s0 + $0x240] sm:$0xff]  }
  0x25   :  { %639 = vst.msk [vmem:[%s1409_s1 + $0x1f8] sm:$0xff] %vm3_vm0, %v638_v6   ;;  %641 = vst.msk [vmem:[%s1409_s1 + $0x200] sm:$0xff] %vm3_vm0, %v640_v7   ;;  %v644_v9 = vld [vmem:[%s1408_s0 + $0x248] sm:$0xff]   ;;  %v646_v10 = vld [vmem:[%s1408_s0 + $0x250] sm:$0xf]  }
  0x26   :  { %643 = vst.msk [vmem:[%s1409_s1 + $0x208] sm:$0xff] %vm3_vm0, %v642_v8   ;;  %645 = vst.msk [vmem:[%s1409_s1 + $0x210] sm:$0xff] %vm3_vm0, %v644_v9   ;;  %v648_v11 = vld [vmem:[%s1408_s0 + $0x258] sm:$0xff]   ;;  %v650_v12 = vld [vmem:[%s1408_s0 + $0x260] sm:$0xff]  }
  0x27   :  { %647 = vst.msk [vmem:[%s1409_s1 + $0x218] sm:$0xf] %vm3_vm0, %v646_v10   ;;  %v652_v13 = vld [vmem:[%s1408_s0 + $0x268] sm:$0xff]   ;;  %649 = vst.msk [vmem:[%s1409_s1 + $0x21c] sm:$0xff] %vm3_vm0, %v648_v11   ;;  %v654_v14 = vld [vmem:[%s1408_s0 + $0x270] sm:$0xff]  }
  0x28   :  { %651 = vst.msk [vmem:[%s1409_s1 + $0x224] sm:$0xff] %vm3_vm0, %v650_v12   ;;  %653 = vst.msk [vmem:[%s1409_s1 + $0x22c] sm:$0xff] %vm3_vm0, %v652_v13   ;;  %v656_v15 = vld [vmem:[%s1408_s0 + $0x278] sm:$0xf]   ;;  %v658_v16 = vld [vmem:[%s1408_s0 + $0x280] sm:$0xff]  }
  0x29   :  { %655 = vst.msk [vmem:[%s1409_s1 + $0x234] sm:$0xff] %vm3_vm0, %v654_v14   ;;  %657 = vst.msk [vmem:[%s1409_s1 + $0x23c] sm:$0xf] %vm3_vm0, %v656_v15   ;;  %v660_v17 = vld [vmem:[%s1408_s0 + $0x288] sm:$0xff]   ;;  %v662_v18 = vld [vmem:[%s1408_s0 + $0x290] sm:$0xff]  }
  0x2a   :  { %659 = vst.msk [vmem:[%s1409_s1 + $0x240] sm:$0xff] %vm3_vm0, %v658_v16   ;;  %v664_v19 = vld [vmem:[%s1408_s0 + $0x298] sm:$0xff]   ;;  %661 = vst.msk [vmem:[%s1409_s1 + $0x248] sm:$0xff] %vm3_vm0, %v660_v17   ;;  %v666_v20 = vld [vmem:[%s1408_s0 + $0x2a0] sm:$0xf]  }
  0x2b   :  { %663 = vst.msk [vmem:[%s1409_s1 + $0x250] sm:$0xff] %vm3_vm0, %v662_v18   ;;  %665 = vst.msk [vmem:[%s1409_s1 + $0x258] sm:$0xff] %vm3_vm0, %v664_v19   ;;  %v668_v21 = vld [vmem:[%s1408_s0 + $0x2a8] sm:$0xff]   ;;  %v670_v22 = vld [vmem:[%s1408_s0 + $0x2b0] sm:$0xff]  }
  0x2c   :  { %667 = vst.msk [vmem:[%s1409_s1 + $0x260] sm:$0xf] %vm3_vm0, %v666_v20   ;;  %669 = vst.msk [vmem:[%s1409_s1 + $0x264] sm:$0xff] %vm3_vm0, %v668_v21   ;;  %v672_v23 = vld [vmem:[%s1408_s0 + $0x2b8] sm:$0xff]   ;;  %v674_v24 = vld [vmem:[%s1408_s0 + $0x2c0] sm:$0xff]  }
  0x2d   :  { %671 = vst.msk [vmem:[%s1409_s1 + $0x26c] sm:$0xff] %vm3_vm0, %v670_v22   ;;  %v676_v25 = vld [vmem:[%s1408_s0 + $0x2c8] sm:$0xf]   ;;  %673 = vst.msk [vmem:[%s1409_s1 + $0x274] sm:$0xff] %vm3_vm0, %v672_v23   ;;  %v678_v26 = vld [vmem:[%s1408_s0 + $0x2d0] sm:$0xff]  }
  0x2e   :  { %675 = vst.msk [vmem:[%s1409_s1 + $0x27c] sm:$0xff] %vm3_vm0, %v674_v24   ;;  %677 = vst.msk [vmem:[%s1409_s1 + $0x284] sm:$0xf] %vm3_vm0, %v676_v25   ;;  %v680_v27 = vld [vmem:[%s1408_s0 + $0x2d8] sm:$0xff]   ;;  %v682_v28 = vld [vmem:[%s1408_s0 + $0x2e0] sm:$0xff]  }
  0x2f   :  { %679 = vst.msk [vmem:[%s1409_s1 + $0x288] sm:$0xff] %vm3_vm0, %v678_v26   ;;  %681 = vst.msk [vmem:[%s1409_s1 + $0x290] sm:$0xff] %vm3_vm0, %v680_v27   ;;  %v684_v29 = vld [vmem:[%s1408_s0 + $0x2e8] sm:$0xff]   ;;  %v686_v30 = vld [vmem:[%s1408_s0 + $0x2f0] sm:$0xf]  }
  0x30   :  { %683 = vst.msk [vmem:[%s1409_s1 + $0x298] sm:$0xff] %vm3_vm0, %v682_v28   ;;  %v688_v31 = vld [vmem:[%s1408_s0 + $0x2f8] sm:$0xff]   ;;  %685 = vst.msk [vmem:[%s1409_s1 + $0x2a0] sm:$0xff] %vm3_vm0, %v684_v29   ;;  %v690_v32 = vld [vmem:[%s1408_s0 + $0x300] sm:$0xff]  }
  0x31   :  { %687 = vst.msk [vmem:[%s1409_s1 + $0x2a8] sm:$0xf] %vm3_vm0, %v686_v30   ;;  %689 = vst.msk [vmem:[%s1409_s1 + $0x2ac] sm:$0xff] %vm3_vm0, %v688_v31   ;;  %v692_v33 = vld [vmem:[%s1408_s0 + $0x308] sm:$0xff]   ;;  %v694_v34 = vld [vmem:[%s1408_s0 + $0x310] sm:$0xff]  }
  0x32   :  { %691 = vst.msk [vmem:[%s1409_s1 + $0x2b4] sm:$0xff] %vm3_vm0, %v690_v32   ;;  %693 = vst.msk [vmem:[%s1409_s1 + $0x2bc] sm:$0xff] %vm3_vm0, %v692_v33   ;;  %v696_v35 = vld [vmem:[%s1408_s0 + $0x318] sm:$0xf]  }
  0x33   :  { %695 = vst.msk [vmem:[%s1409_s1 + $0x2c4] sm:$0xff] %vm3_vm0, %v694_v34   ;;  %697 = vst.msk [vmem:[%s1409_s1 + $0x2cc] sm:$0xf] %vm3_vm0, %v696_v35  }

// kernel: forward.1
= control target key start
LH: loop header
LB: loop body
LE: loop exit
PB: predicated region body
PF: predicated region fallthrough
CT: control target
= control target key end

     0   :  { %v3815_v0 = vmov 1   ;;  %v3816_v2 = vmov 2   ;;  %v3817_v6 = vmov 3   ;;  %v3818_v7 = vmov 4   ;;  %s3821_s23 = smov 126   ;;  %s3822_s24 = smov 125   ;;  %s5830_s2 = inlined_call_operand.vmem [shape: f32[32,5], index: 2, kind: input, shape index: {}]   ;;  %s5831_s3 = inlined_call_operand.vmem [shape: f32[32,1], index: 3, kind: input, shape index: {}]   ;;  %s5832_s0 = inlined_call_operand.vmem [shape: f32[1,1,140], index: 0, kind: input, shape index: {}]   ;;  %s5833_s4 = inlined_call_operand.vmem [shape: f32[1,136], index: 4, kind: input, shape index: {}]   ;;  %s5834_s5 = inlined_call_operand.vmem [shape: f32[64,160], index: 5, kind: input, shape index: {}]   ;;  %s5835_s6 = inlined_call_operand.vmem [shape: f32[64,1], index: 6, kind: input, shape index: {}]   ;;  %s5836_s7 = inlined_call_operand.vmem [shape: f32[136,72], index: 7, kind: input, shape index: {}]   ;;  %s5837_s12 = inlined_call_operand.vmem [shape: f32[72,2], index: 12, kind: input, shape index: {}]   ;;  %s5838_s13 = inlined_call_operand.vmem [shape: f32[2,72], index: 13, kind: input, shape index: {}]   ;;  %s5839_s8 = inlined_call_operand.vmem [shape: f32[10,64,72], index: 8, kind: input, shape index: {}]   ;;  %s5840_s1 = inlined_call_operand.vmem [shape: f32[1,4,2], index: 1, kind: input, shape index: {}]   ;;  %s5841_s10 = inlined_call_operand.vmem [shape: f32[4,64,72], index: 10, kind: input, shape index: {}]   ;;  %s5842_s9 = inlined_call_operand.vmem [shape: f32[10,64,72], index: 9, kind: input, shape index: {}]   ;;  %s5843_s11 = inlined_call_operand.vmem [shape: f32[64,72], index: 11, kind: input, shape index: {}]   ;;  %s5844_s15 = inlined_call_operand.vmem [shape: f32[32,1], index: 15, kind: input, shape index: {}]   ;;  %s5845_s14 = inlined_call_operand.vmem [shape: f32[32,320], index: 14, kind: input, shape index: {}]   ;;  %s5846_s16 = inlined_call_operand.vmem [shape: f32[72,136], index: 16, kind: input, shape index: {}]   ;;  %s5847_s18 = inlined_call_operand.<no memory space> [shape: f32[1,1], index: 18, kind: input, shape index: {}]   ;;  %s5848_s17 = inlined_call_operand.vmem [shape: f32[1,160], index: 17, kind: input, shape index: {}]   ;;  %s5849_s19 = inlined_call_operand.vmem [shape: f32[1,1,136], index: 19, kind: output, shape index: {}]  }
   0x1   :  { %5863 = sst [smem:[#allocation11_spill]] %s5830_s2  ;;  %3539 = vset.pattern.permute.xlu0 %v3815_v0  ;;  %3540 = vset.pattern.permute.xlu1 %v3816_v2  ;;  %v3819_v8 = vmov 0   ;;  %v5852_v13 = vlaneseq  ;;  %s3823_s25 = smov 124   ;;  %vm192_vm0 = vcmask 1039360   ;;  %vm261_vm1 = vcmask 1031168  }
   0x2   :  { %5864 = sst [smem:[#allocation12_spill]] %s5831_s3  ;;  %s5867_s20 = sld [smem:[#allocation11_spill]]  ;;  %vm330_vm2 = vcmask 1022976   ;;  %vm64_vm3 = vcmask 15360   ;;  %vm69_vm4 = vcmask 97360   ;;  %vm399_vm5 = vcmask 1014784  }
   0x3   :  { %5865 = sst [smem:[#allocation13_spill]] %s5832_s0  ;;  %s5868_s26 = sld [smem:[#allocation12_spill]]  ;;  %v3955_v14 = vshrl.u32 %v5852_v13, 7  ;;  %vm515_vm6 = vcmask 1047568   ;;  %vm517_vm7 = vcmask 80896   ;;  %vm717_vm8 = vcmask 261120  }
   0x4   :  { %5866 = sst [smem:[#allocation14_spill]] %s5833_s4  ;;  %s5872_s22 = sld [smem:[#allocation13_spill]]  ;;  %vm967_vm9 = vcmask 56320   ;;  %vm1009_vm10 = vcmask 64512   ;;  %vm1521_vm11 = vcmask 1041408   ;;  %vm1155_vm12 = vcmask 588800  }
   0x5   :  { %5869 = vst [vmem:[#allocation5_spill] sm:$0xff] %v3955_v14  ;;  %v3958_v15 = vsub.s32 0, %v3955_v14  ;;  %v3961_v16 = vsub.s32 1, %v3955_v14  ;;  %s3820_s0 = smov 127   ;;  %s5873_s27 = sld [smem:[#allocation14_spill]]  ;;  %vm1519_vm13 = vcmask 1040384  }
   0x6   :  { %s3825_s28 = smov 2   ;;  %vm1523_vm14 = vcmask 1042432   ;;  %vm1525_vm15 = vcmask 1043456  }
   0x7   :  { %5870 = vst [vmem:[#allocation6_spill] sm:$0xff] %v3958_v15  ;;  %5871 = vst [vmem:[#allocation7_spill] sm:$0xff] %v3961_v16 }
   0x8   :  { %v93_v1 = vld [vmem:[%s5867_s20] sm:$0xff]  ;;  %v94_v3 = vld [vmem:[%s5867_s20 + $0x8] sm:$0xff]  ;;  %v95_v4 = vld [vmem:[%s5867_s20 + $0x10] sm:$0xff] }
   0x9   :  { %145 = vperm.xlu0 %3539, %v93_v1   ;;  %214 = vperm.xlu1 %3540, %v93_v1   ;;  %v96_v5 = vld [vmem:[%s5867_s20 + $0x18] sm:$0xff]  ;;  %v421_v9 = vld [vmem:[%s5868_s26 + $0x8] sm:$0xff]  ;;  %v420_v11 = vld [vmem:[%s5868_s26] sm:$0xff] }
   0xa   :  { %v423_v10 = vld [vmem:[%s5868_s26 + $0x18] sm:$0xff]  ;;  %v422_v12 = vld [vmem:[%s5868_s26 + $0x10] sm:$0xff]  ;;  %v91_v17 = vld [vmem:[%s5872_s22] sm:$0x3] }
   0xb   :  { %v3967_v18 = vrot.slane %v91_v17, %v3958_v15  ;;  %v3970_v19 = vrot.slane %v91_v17, %v3961_v16 }
   0xd   :  { %149 = vperm.xlu0 %3539, %v94_v3   ;;  %218 = vperm.xlu1 %3540, %v94_v3  }
  0x11   :  { %153 = vperm.xlu0 %3539, %v95_v4   ;;  %3541 = vset.pattern.permute.xlu1 %v3815_v0 }
  0x12   :  { %157 = vperm.xlu1 %3541, %v96_v5  }
  0x15   :  { %3544 = vset.pattern.permute.xlu0 %v3816_v2 }
  0x16   :  { %226 = vperm.xlu0 %3544, %v96_v5   ;;  %3542 = vset.pattern.permute.xlu1 %v3817_v6 }
  0x17   :  { %287 = vperm.xlu1 %3542, %v94_v3  }
  0x1a   :  { %3545 = vset.pattern.permute.xlu0 %v3817_v6 }
  0x1b   :  { %283 = vperm.xlu0 %3545, %v93_v1   ;;  %3543 = vset.pattern.permute.xlu1 %v3816_v2 }
  0x1c   :  { %222 = vperm.xlu1 %3543, %v95_v4  }
  0x1f   :  { %291 = vperm.xlu0 %3545, %v95_v4  }
  0x20   :  { %3546 = vset.pattern.permute.xlu1 %v3818_v7 }
  0x21   :  { %352 = vperm.xlu1 %3546, %v93_v1  }
  0x23   :  { %3549 = vset.pattern.permute.xlu0 %v3818_v7 }
  0x24   :  { %364 = vperm.xlu0 %3549, %v96_v5  }
  0x25   :  { %356 = vperm.xlu1 %3546, %v94_v3  }
  0x28   :  { %3551 = vset.pattern.permute.xlu0 %v3819_v8 }
  0x29   :  { %3547 = vset.pattern.permute.xlu1 %v3817_v6  ;;  %109 = vperm.xlu0 %3551, %v95_v4  }
  0x2a   :  { %295 = vperm.xlu1 %3547, %v96_v5  }
  0x2d   :  { %431 = vperm.xlu0 %3551, %v421_v9  }
  0x2e   :  { %3548 = vset.pattern.permute.xlu1 %v3818_v7 }
  0x2f   :  { %360 = vperm.xlu1 %3548, %v95_v4  }
  0x31   :  { %441 = vperm.xlu0 %3551, %v423_v10  }
  0x33   :  { %3550 = vset.pattern.permute.xlu1 %v3819_v8 }
  0x34   :  { %99 = vperm.xlu1 %3550, %v93_v1  }
  0x38   :  { %104 = vperm.xlu1 %3550, %v94_v3  }
  0x3c   :  { %114 = vperm.xlu1 %3550, %v96_v5  }
  0x40   :  { %426 = vperm.xlu1 %3550, %v420_v11  }
  0x44   :  { %436 = vperm.xlu1 %3550, %v422_v12  }
  0x88   :  { %v146_v20 = vpop.permute.xlu0 %145  ;;  %v215_v23 = vpop.permute.xlu1 %214 }
  0x89   :  { %v160_v21 = vmul.f32 %v146_v20, %v3967_v18  ;;  %v161_v22 = vmul.f32 %v146_v20, %v3970_v19  ;;  %v229_v27 = vmul.f32 %v215_v23, %v3967_v18  ;;  %v230_v28 = vmul.f32 %v215_v23, %v3970_v19 }
  0x8b   :  { %178 = vrot.lane.b32.xlu0 %v161_v22, %s3820_s0  ;;  %176 = vrot.lane.b32.xlu1 %v160_v21, %s3820_s0 }
  0x8c   :  { %v150_v24 = vpop.permute.xlu0 %149  ;;  %v219_v29 = vpop.permute.xlu1 %218 }
  0x8d   :  { %v162_v25 = vmul.f32 %v150_v24, %v3967_v18  ;;  %v163_v26 = vmul.f32 %v150_v24, %v3970_v19  ;;  %v231_v31 = vmul.f32 %v219_v29, %v3967_v18  ;;  %v232_v32 = vmul.f32 %v219_v29, %v3970_v19 }
  0x8f   :  { %182 = vrot.lane.b32.xlu0 %v163_v26, %s3820_s0  ;;  %180 = vrot.lane.b32.xlu1 %v162_v25, %s3820_s0 }
  0x90   :  { %v154_v30 = vpop.permute.xlu0 %153 }
  0x91   :  { %v158_v34 = vpop.permute.xlu1 %157  ;;  %v164_v35 = vmul.f32 %v154_v30, %v3967_v18  ;;  %v165_v36 = vmul.f32 %v154_v30, %v3970_v19 }
  0x92   :  { %v166_v37 = vmul.f32 %v158_v34, %v3967_v18  ;;  %v167_v38 = vmul.f32 %v158_v34, %v3970_v19 }
  0x93   :  { %247 = vrot.lane.b32.xlu0 %v230_v28, %s3821_s23  ;;  %245 = vrot.lane.b32.xlu1 %v229_v27, %s3821_s23 }
  0x95   :  { %v227_v33 = vpop.permute.xlu0 %226 }
  0x96   :  { %v288_v40 = vpop.permute.xlu1 %287  ;;  %v235_v49 = vmul.f32 %v227_v33, %v3967_v18  ;;  %v236_v50 = vmul.f32 %v227_v33, %v3970_v19 }
  0x97   :  { %251 = vrot.lane.b32.xlu0 %v232_v32, %s3821_s23  ;;  %249 = vrot.lane.b32.xlu1 %v231_v31, %s3821_s23  ;;  %v300_v43 = vmul.f32 %v288_v40, %v3967_v18  ;;  %v301_v44 = vmul.f32 %v288_v40, %v3970_v19 }
  0x9a   :  { %v284_v39 = vpop.permute.xlu0 %283 }
  0x9b   :  { %186 = vrot.lane.b32.xlu0 %v165_v36, %s3820_s0  ;;  %184 = vrot.lane.b32.xlu1 %v164_v35, %s3820_s0  ;;  %v298_v41 = vmul.f32 %v284_v39, %v3967_v18  ;;  %v299_v42 = vmul.f32 %v284_v39, %v3970_v19  ;;  %v223_v45 = vpop.permute.xlu1 %222 }
  0x9c   :  { %v233_v46 = vmul.f32 %v223_v45, %v3967_v18  ;;  %v234_v47 = vmul.f32 %v223_v45, %v3970_v19 }
  0x9e   :  { %v292_v56 = vpop.permute.xlu0 %291 }
  0x9f   :  { %190 = vrot.lane.b32.xlu0 %v167_v38, %s3820_s0  ;;  %188 = vrot.lane.b32.xlu1 %v166_v37, %s3820_s0  ;;  %v302_v58 = vmul.f32 %v292_v56, %v3967_v18  ;;  %v303_v59 = vmul.f32 %v292_v56, %v3970_v19 }
  0xa0   :  { %v353_v48 = vpop.permute.xlu1 %352 }
  0xa1   :  { %v367_v51 = vmul.f32 %v353_v48, %v3967_v18  ;;  %v368_v52 = vmul.f32 %v353_v48, %v3970_v19 }
  0xa3   :  { %316 = vrot.lane.b32.xlu0 %v299_v42, %s3822_s24  ;;  %314 = vrot.lane.b32.xlu1 %v298_v41, %s3822_s24  ;;  %v365_v1 = vpop.permute.xlu0 %364 }
  0xa4   :  { %v357_v53 = vpop.permute.xlu1 %356  ;;  %v373_v2 = vmul.f32 %v365_v1, %v3967_v18  ;;  %v374_v3 = vmul.f32 %v365_v1, %v3970_v19 }
  0xa5   :  { %v369_v54 = vmul.f32 %v357_v53, %v3967_v18  ;;  %v370_v55 = vmul.f32 %v357_v53, %v3970_v19 }
  0xa7   :  { %320 = vrot.lane.b32.xlu0 %v301_v44, %s3822_s24  ;;  %318 = vrot.lane.b32.xlu1 %v300_v43, %s3822_s24  ;;  %v5853_v44 = vmov 0.0  }
  0xa8   :  { %v4038_v7 = vpop.permute.xlu0 %109  ;;  %65 = vst.msk [vmem:[#allocation2] sm:$0xff] %vm64_vm3, %v5853_v44  ;;  %66 = vst.msk [vmem:[#allocation2 + $0x10] sm:$0xff] %vm64_vm3, %v5853_v44 }
  0xa9   :  { %v296_v57 = vpop.permute.xlu1 %295  ;;  %70 = vst.msk [vmem:[#allocation2 + $0x8] sm:$0xff] %vm69_vm4, %v5853_v44  ;;  %71 = vst.msk [vmem:[#allocation2 + $0x18] sm:$0xff] %vm69_vm4, %v5853_v44 }
  0xaa   :  { %v304_v60 = vmul.f32 %v296_v57, %v3967_v18  ;;  %v305_v61 = vmul.f32 %v296_v57, %v3970_v19  ;;  %67 = vst.msk [vmem:[#allocation2 + $0x20] sm:$0xff] %vm64_vm3, %v5853_v44  ;;  %68 = vst.msk [vmem:[#allocation2 + $0x30] sm:$0xff] %vm64_vm3, %v5853_v44 }
  0xab   :  { %255 = vrot.lane.b32.xlu0 %v234_v47, %s3821_s23  ;;  %253 = vrot.lane.b32.xlu1 %v233_v46, %s3821_s23  ;;  %72 = vst.msk [vmem:[#allocation2 + $0x28] sm:$0xff] %vm69_vm4, %v5853_v44  ;;  %73 = vst.msk [vmem:[#allocation2 + $0x38] sm:$0xff] %vm69_vm4, %v5853_v44  ;;  %vm1527_vm4 = vcmask 1044480  }
  0xac   :  { %v4042_v9 = vpop.permute.xlu0 %431  ;;  %74 = vst.msk [vmem:[#allocation3] sm:$0xff] %vm64_vm3, %v5853_v44  ;;  %75 = vst.msk [vmem:[#allocation3 + $0x8] sm:$0xff] %vm64_vm3, %v5853_v44 }
  0xad   :  { %76 = vst.msk [vmem:[#allocation3 + $0x10] sm:$0xff] %vm64_vm3, %v5853_v44  ;;  %77 = vst.msk [vmem:[#allocation3 + $0x18] sm:$0xff] %vm64_vm3, %v5853_v44 }
  0xae   :  { %v361_v62 = vpop.permute.xlu1 %360  ;;  %78 = vst.msk [vmem:[#allocation3 + $0x20] sm:$0xff] %vm64_vm3, %v5853_v44  ;;  %79 = vst.msk [vmem:[#allocation3 + $0x28] sm:$0xff] %vm64_vm3, %v5853_v44 }
  0xaf   :  { %259 = vrot.lane.b32.xlu0 %v236_v50, %s3821_s23  ;;  %257 = vrot.lane.b32.xlu1 %v235_v49, %s3821_s23  ;;  %v371_v63 = vmul.f32 %v361_v62, %v3967_v18  ;;  %v372_v0 = vmul.f32 %v361_v62, %v3970_v19  ;;  %80 = vst.msk [vmem:[#allocation3 + $0x30] sm:$0xff] %vm64_vm3, %v5853_v44  ;;  %81 = vst.msk [vmem:[#allocation3 + $0x38] sm:$0xff] %vm64_vm3, %v5853_v44 }
  0xb0   :  { %v4046_v11 = vpop.permute.xlu0 %441 }
  0xb3   :  { %385 = vrot.lane.b32.xlu0 %v368_v52, %s3823_s25  ;;  %383 = vrot.lane.b32.xlu1 %v367_v51, %s3823_s25  ;;  %v100_v4 = vpop.permute.xlu1 %99 }
  0xb4   :  { %v129_v34 = vmul.f32 %v3970_v19, %v100_v4  ;;  %v128_v38 = vmul.f32 %v3967_v18, %v100_v4 }
  0xb7   :  { %389 = vrot.lane.b32.xlu0 %v370_v55, %s3823_s25  ;;  %387 = vrot.lane.b32.xlu1 %v369_v54, %s3823_s25  ;;  %v105_v5 = vpop.permute.xlu1 %104 }
  0xb8   :  { %v131_v45 = vmul.f32 %v3970_v19, %v105_v5  ;;  %v130_v49 = vmul.f32 %v3967_v18, %v105_v5 }
  0xbb   :  { %324 = vrot.lane.b32.xlu0 %v303_v59, %s3822_s24  ;;  %322 = vrot.lane.b32.xlu1 %v302_v58, %s3822_s24  ;;  %v4036_v6 = vpop.permute.xlu1 %114  ;;  %v92_v58 = vld [vmem:[%s5873_s27] sm:$0x3] }
  0xbf   :  { %328 = vrot.lane.b32.xlu0 %v305_v61, %s3822_s24  ;;  %326 = vrot.lane.b32.xlu1 %v304_v60, %s3822_s24  ;;  %v4040_v8 = vpop.permute.xlu1 %426 }
  0xc3   :  { %393 = vrot.lane.b32.xlu0 %v372_v0, %s3823_s25  ;;  %391 = vrot.lane.b32.xlu1 %v371_v63, %s3823_s25  ;;  %v4044_v10 = vpop.permute.xlu1 %436 }
  0xc7   :  { %397 = vrot.lane.b32.xlu0 %v374_v3, %s3823_s25  ;;  %395 = vrot.lane.b32.xlu1 %v373_v2, %s3823_s25  ;;  %v4108_v3 = vrot.slane %v92_v58, %v3961_v16 }
  0xfd   :  { %v179_v12 = vpop.permute.xlu0 %178  ;;  %v177_v17 = vpop.permute.xlu1 %176 }
  0xfe   :  { %v193_v37 = vsel %vm192_vm0, %v177_v17, %v179_v12  ;;  %v206_v39 = vadd.f32 %v179_v12, %v129_v34 }
  0xff   :  { %v205_v41 = vadd.f32 %v193_v37, %v128_v38  ;;  %v133_v37 = vmul.f32 %v3970_v19, %v4038_v7 }
 0x101   :  { %v183_v20 = vpop.permute.xlu0 %182  ;;  %v181_v21 = vpop.permute.xlu1 %180 }
 0x102   :  { %v194_v46 = vsel %vm192_vm0, %v181_v21, %v183_v20  ;;  %v208_v51 = vadd.f32 %v183_v20, %v131_v45  ;;  %v4112_v20 = vrot.slane %v92_v58, %v3958_v15 }
 0x103   :  { %v207_v54 = vadd.f32 %v194_v46, %v130_v49 }
 0x105   :  { %v248_v22 = vpop.permute.xlu0 %247  ;;  %v246_v23 = vpop.permute.xlu1 %245 }
 0x106   :  { %v262_v40 = vsel %vm261_vm1, %v246_v23, %v248_v22  ;;  %v275_v47 = vadd.f32 %v248_v22, %v206_v39 }
 0x107   :  { %v274_v50 = vadd.f32 %v262_v40, %v205_v41  ;;  %v132_v40 = vmul.f32 %v3967_v18, %v4038_v7 }
 0x109   :  { %v252_v24 = vpop.permute.xlu0 %251  ;;  %v250_v25 = vpop.permute.xlu1 %249 }
 0x10a   :  { %v263_v52 = vsel %vm261_vm1, %v250_v25, %v252_v24  ;;  %v277_v59 = vadd.f32 %v252_v24, %v208_v51 }
 0x10b   :  { %v276_v63 = vadd.f32 %v263_v52, %v207_v54 }
 0x10d   :  { %v4048_v26 = vpop.permute.xlu0 %186  ;;  %v4050_v27 = vpop.permute.xlu1 %184 }
 0x10e   :  { %v195_v38 = vsel %vm192_vm0, %v4050_v27, %v4048_v26 }
 0x111   :  { %v4052_v28 = vpop.permute.xlu0 %190  ;;  %v4054_v29 = vpop.permute.xlu1 %188 }
 0x112   :  { %v196_v7 = vsel %vm192_vm0, %v4054_v29, %v4052_v28 }
 0x115   :  { %v317_v30 = vpop.permute.xlu0 %316  ;;  %v315_v31 = vpop.permute.xlu1 %314 }
 0x116   :  { %v331_v48 = vsel %vm330_vm2, %v315_v31, %v317_v30  ;;  %v344_v53 = vadd.f32 %v317_v30, %v275_v47  ;;  %v209_v47 = vadd.f32 %v195_v38, %v132_v40 }
 0x117   :  { %v343_v55 = vadd.f32 %v331_v48, %v274_v50  ;;  %v135_v50 = vmul.f32 %v3970_v19, %v4036_v6 }
 0x119   :  { %v321_v32 = vpop.permute.xlu0 %320  ;;  %v319_v33 = vpop.permute.xlu1 %318 }
 0x11a   :  { %v332_v60 = vsel %vm330_vm2, %v319_v33, %v321_v32  ;;  %v346_v1 = vadd.f32 %v321_v32, %v277_v59 }
 0x11b   :  { %v345_v4 = vadd.f32 %v332_v60, %v276_v63 }
 0x11d   :  { %v4057_v35 = vpop.permute.xlu0 %255  ;;  %v4059_v36 = vpop.permute.xlu1 %253 }
 0x11e   :  { %v264_v45 = vsel %vm261_vm1, %v4059_v36, %v4057_v35  ;;  %v134_v36 = vmul.f32 %v3967_v18, %v4036_v6 }
 0x11f   :  { %v278_v52 = vadd.f32 %v264_v45, %v209_v47 }
 0x120   :  { %v211_v29 = vadd.f32 %v196_v7, %v134_v36 }
 0x121   :  { %v4064_v42 = vpop.permute.xlu0 %259  ;;  %v4066_v43 = vpop.permute.xlu1 %257 }
 0x122   :  { %v265_v19 = vsel %vm261_vm1, %v4066_v43, %v4064_v42 }
 0x123   :  { %v280_v6 = vadd.f32 %v265_v19, %v211_v29  ;;  %v654_v19 = vld [vmem:[%s5834_s5 + $0x8] sm:$0xff] }
 0x124   :  { %2995 = vmatprep.mubr.msk.f32.mxu0 %vm717_vm8, %v654_v19  ;;  %v670_v29 = vld [vmem:[%s5835_s6 + $0x8] sm:$0xff] }
 0x125   :  { %v386_v56 = vpop.permute.xlu0 %385  ;;  %v384_v57 = vpop.permute.xlu1 %383 }
 0x126   :  { %v413_v61 = vadd.f32 %v386_v56, %v344_v53  ;;  %v400_v62 = vsel %vm399_vm5, %v384_v57, %v386_v56  ;;  %v212_v53 = vadd.f32 %v4052_v28, %v135_v50 }
 0x127   :  { %v412_v0 = vadd.f32 %v400_v62, %v343_v55 }
 0x128   :  { %v445_v2 = vadd.f32 %v4040_v8, %v413_v61  ;;  %v281_v57 = vadd.f32 %v4064_v42, %v212_v53 }
 0x129   :  { %v444_v5 = vadd.f32 %v4040_v8, %v412_v0  ;;  %v390_v12 = vpop.permute.xlu0 %389  ;;  %v388_v17 = vpop.permute.xlu1 %387 }
 0x12a   :  { %v415_v21 = vadd.f32 %v390_v12, %v346_v1  ;;  %v401_v22 = vsel %vm399_vm5, %v388_v17, %v390_v12  ;;  %v453_v23 = vmax.f32 %v445_v2, 0.0 }
 0x12b   :  { %v452_v24 = vmax.f32 %v444_v5, 0.0  ;;  %v414_v25 = vadd.f32 %v401_v22, %v345_v4 }
 0x12c   :  { %v447_v30 = vadd.f32 %v4042_v9, %v415_v21  ;;  %v472_v31 = vmul.f32 %v4108_v3, %v453_v23 }
 0x12d   :  { %v446_v32 = vadd.f32 %v4042_v9, %v414_v25  ;;  %v325_v33 = vpop.permute.xlu0 %324  ;;  %v323_v34 = vpop.permute.xlu1 %322  ;;  %v471_v8 = vmul.f32 %v4112_v20, %v452_v24  ;;  %v210_v9 = vadd.f32 %v4048_v26, %v133_v37 }
 0x12e   :  { %489 = vrot.lane.b32.xlu0 %v472_v31, %s3825_s28  ;;  %v455_v39 = vmax.f32 %v447_v30, 0.0  ;;  %v333_v51 = vsel %vm330_vm2, %v323_v34, %v325_v33 }
 0x12f   :  { %v454_v41 = vmax.f32 %v446_v32, 0.0  ;;  %487 = vrot.lane.b32.xlu1 %v471_v8, %s3825_s28  ;;  %v279_v26 = vadd.f32 %v4057_v35, %v210_v9  ;;  %v347_v55 = vadd.f32 %v333_v51, %v278_v52 }
 0x130   :  { %v474_v46 = vmul.f32 %v4108_v3, %v455_v39 }
 0x131   :  { %v329_v27 = vpop.permute.xlu0 %328  ;;  %v327_v48 = vpop.permute.xlu1 %326  ;;  %v473_v49 = vmul.f32 %v4112_v20, %v454_v41  ;;  %v348_v54 = vadd.f32 %v325_v33, %v279_v26 }
 0x132   :  { %493 = vrot.lane.b32.xlu0 %v474_v46, %s3825_s28  ;;  %v334_v58 = vsel %vm330_vm2, %v327_v48, %v329_v27  ;;  %v350_v61 = vadd.f32 %v329_v27, %v281_v57  ;;  %v675_v57 = vld [vmem:[%s5835_s6 + $0x30] sm:$0xff] }
 0x133   :  { %491 = vrot.lane.b32.xlu1 %v473_v49, %s3825_s28  ;;  %v349_v62 = vadd.f32 %v334_v58, %v280_v6  ;;  %v674_v58 = vld [vmem:[%s5835_s6 + $0x28] sm:$0xff] }
 0x135   :  { %v394_v35 = vpop.permute.xlu0 %393  ;;  %v392_v56 = vpop.permute.xlu1 %391 }
 0x136   :  { %v417_v59 = vadd.f32 %v394_v35, %v348_v54  ;;  %v402_v18 = vsel %vm399_vm5, %v392_v56, %v394_v35  ;;  %v669_v54 = vld [vmem:[%s5835_s6] sm:$0xff]  ;;  %v671_v35 = vld [vmem:[%s5835_s6 + $0x10] sm:$0xff] }
 0x137   :  { %v416_v60 = vadd.f32 %v402_v18, %v347_v55  ;;  %v672_v55 = vld [vmem:[%s5835_s6 + $0x18] sm:$0xff]  ;;  %v673_v56 = vld [vmem:[%s5835_s6 + $0x20] sm:$0xff] }
 0x138   :  { %v449_v28 = vadd.f32 %v4044_v10, %v417_v59  ;;  %v676_v59 = vld [vmem:[%s5835_s6 + $0x38] sm:$0xff] }
 0x139   :  { %v448_v43 = vadd.f32 %v4044_v10, %v416_v60  ;;  %v398_v63 = vpop.permute.xlu0 %397  ;;  %v396_v0 = vpop.permute.xlu1 %395 }
 0x13a   :  { %v419_v1 = vadd.f32 %v398_v63, %v350_v61  ;;  %v403_v2 = vsel %vm399_vm5, %v396_v0, %v398_v63  ;;  %v457_v4 = vmax.f32 %v449_v28, 0.0 }
 0x13b   :  { %v456_v42 = vmax.f32 %v448_v43, 0.0  ;;  %v418_v5 = vadd.f32 %v403_v2, %v349_v62 }
 0x13c   :  { %v451_v12 = vadd.f32 %v4046_v11, %v419_v1  ;;  %v476_v17 = vmul.f32 %v4108_v3, %v457_v4 }
 0x13d   :  { %v450_v21 = vadd.f32 %v4046_v11, %v418_v5  ;;  %v475_v22 = vmul.f32 %v4112_v20, %v456_v42 }
 0x13e   :  { %497 = vrot.lane.b32.xlu0 %v476_v17, %s3825_s28  ;;  %v459_v23 = vmax.f32 %v451_v12, 0.0 }
 0x13f   :  { %v458_v10 = vmax.f32 %v450_v21, 0.0  ;;  %495 = vrot.lane.b32.xlu1 %v475_v22, %s3825_s28 }
 0x140   :  { %v478_v24 = vmul.f32 %v4108_v3, %v459_v23 }
 0x141   :  { %v477_v25 = vmul.f32 %v4112_v20, %v458_v10 }
 0x142   :  { %501 = vrot.lane.b32.xlu0 %v478_v24, %s3825_s28 }
 0x143   :  { %499 = vrot.lane.b32.xlu1 %v477_v25, %s3825_s28 }
 0x1a0   :  { %v490_v30 = vpop.permute.xlu0 %489 }
 0x1a1   :  { %v488_v11 = vpop.permute.xlu1 %487 }
 0x1a2   :  { %v503_v31 = vsel %vm64_vm3, %v488_v11, %v490_v30  ;;  %516 = vst.msk [vmem:[#allocation2] sm:$0xff] %vm515_vm6, %v488_v11 }
 0x1a3   :  { %518 = vst.msk [vmem:[#allocation2 + $0x8] sm:$0xff] %vm517_vm7, %v503_v31 }
 0x1a4   :  { %v494_v32 = vpop.permute.xlu0 %493 }
 0x1a5   :  { %v492_v33 = vpop.permute.xlu1 %491 }
 0x1a6   :  { %v504_v3 = vsel %vm64_vm3, %v492_v33, %v494_v32  ;;  %519 = vst.msk [vmem:[#allocation2 + $0x10] sm:$0xff] %vm515_vm6, %v492_v33 }
 0x1a7   :  { %520 = vst.msk [vmem:[#allocation2 + $0x18] sm:$0xff] %vm517_vm7, %v504_v3 }
 0x1a9   :  { %v525_v20 = vld [vmem:[#allocation2] sm:$0xff] }
 0x1aa   :  { %v526_v34 = vld [vmem:[#allocation2 + $0x8] sm:$0xff] }
 0x1ab   :  { %v3552_v8 = vpack.i.bf16 %v526_v34, %v525_v20 }
 0x1ad   :  { %3553 = vrot.lane.b32.xlu1 %v3552_v8, %s3820_s0  ;;  %v527_v37 = vld [vmem:[#allocation2 + $0x10] sm:$0xff] }
 0x1ae   :  { %v528_v38 = vld [vmem:[#allocation2 + $0x18] sm:$0xff]  ;;  %v3324_v9 = vpack.c.bf16 %v527_v37, %v525_v20 }
 0x1af   :  { %v3557_v39 = vpack.i.bf16 %v528_v38, %v527_v37  ;;  %v3322_v40 = vpack.c.bf16 %v528_v38, %v526_v34 }
 0x1b0   :  { %v498_v41 = vpop.permute.xlu0 %497 }
 0x1b1   :  { %3558 = vrot.lane.b32.xlu0 %v3557_v39, %s3820_s0  ;;  %3323 = vmatprep.subr.bf16.mxu0 %v3322_v40  ;;  %v496_v45 = vpop.permute.xlu1 %495 }
 0x1b2   :  { %v505_v46 = vsel %vm64_vm3, %v496_v45, %v498_v41  ;;  %521 = vst.msk [vmem:[#allocation2 + $0x20] sm:$0xff] %vm515_vm6, %v496_v45  ;;  %3325 = vmatpush1.bf16.msra.mxu0 %v3324_v9 }
 0x1b3   :  { %522 = vst.msk [vmem:[#allocation2 + $0x28] sm:$0xff] %vm517_vm7, %v505_v46 }
 0x1b4   :  { %v502_v47 = vpop.permute.xlu0 %501 }
 0x1b5   :  { %v500_v27 = vpop.permute.xlu1 %499 }
 0x1b6   :  { %v506_v48 = vsel %vm64_vm3, %v500_v27, %v502_v47  ;;  %523 = vst.msk [vmem:[#allocation2 + $0x30] sm:$0xff] %vm515_vm6, %v500_v27 }
 0x1b7   :  { %524 = vst.msk [vmem:[#allocation2 + $0x38] sm:$0xff] %vm517_vm7, %v506_v48 }
 0x1b9   :  { %v529_v49 = vld [vmem:[#allocation2 + $0x20] sm:$0xff] }
 0x1ba   :  { %v530_v50 = vld [vmem:[#allocation2 + $0x28] sm:$0xff] }
 0x1bb   :  { %v3562_v7 = vpack.i.bf16 %v530_v50, %v529_v49 }
 0x1bd   :  { %3563 = vrot.lane.b32.xlu1 %v3562_v7, %s3820_s0  ;;  %v531_v26 = vld [vmem:[#allocation2 + $0x30] sm:$0xff] }
 0x1be   :  { %v532_v51 = vld [vmem:[#allocation2 + $0x38] sm:$0xff]  ;;  %v3328_v53 = vpack.c.bf16 %v531_v26, %v529_v49 }
 0x1bf   :  { %v3567_v36 = vpack.i.bf16 %v532_v51, %v531_v26  ;;  %v3326_v52 = vpack.c.bf16 %v532_v51, %v530_v50 }
 0x1c1   :  { %3573 = vrot.lane.b32.xlu1 %v3552_v8, %s3821_s23  ;;  %3568 = vrot.lane.b32.xlu0 %v3567_v36, %s3820_s0 }
 0x1c2   :  { %3327 = vmatprep.subr.bf16.mxu0 %v3326_v52 }
 0x1c3   :  { %3329 = vmatpush1.bf16.msra.mxu0 %v3328_v53 }
 0x1c5   :  { %3583 = vrot.lane.b32.xlu1 %v3562_v7, %s3821_s23  ;;  %3578 = vrot.lane.b32.xlu0 %v3557_v39, %s3821_s23 }
 0x1c9   :  { %3593 = vrot.lane.b32.xlu1 %v3552_v8, %s3822_s24  ;;  %3588 = vrot.lane.b32.xlu0 %v3567_v36, %s3821_s23 }
 0x1cd   :  { %3603 = vrot.lane.b32.xlu1 %v3562_v7, %s3822_s24  ;;  %3598 = vrot.lane.b32.xlu0 %v3557_v39, %s3822_s24 }
 0x1d1   :  { %3613 = vrot.lane.b32.xlu1 %v3552_v8, %s3823_s25  ;;  %3608 = vrot.lane.b32.xlu0 %v3567_v36, %s3822_s24 }
 0x1d5   :  { %3623 = vrot.lane.b32.xlu1 %v3562_v7, %s3823_s25  ;;  %3618 = vrot.lane.b32.xlu0 %v3557_v39, %s3823_s25 }
 0x1d9   :  { %679 = vperm.xlu1 %3550, %v669_v54   ;;  %3628 = vrot.lane.b32.xlu0 %v3567_v36, %s3823_s25 }
 0x1dd   :  { %684 = vperm.xlu1 %3550, %v670_v29   ;;  %694 = vperm.xlu0 %3551, %v672_v55  }
 0x1e1   :  { %689 = vperm.xlu1 %3550, %v671_v35   ;;  %699 = vperm.xlu0 %3551, %v673_v56  }
 0x1e5   :  { %709 = vperm.xlu1 %3550, %v675_v57   ;;  %704 = vperm.xlu0 %3551, %v674_v58  }
 0x1e9   :  { %714 = vperm.xlu0 %3551, %v676_v59  }
 0x21f   :  { %v3554_v18 = vpop.permute.xlu1 %3553 }
 0x220   :  { %v3556_v6 = vunpack.i.h.bf16 %v3554_v18  ;;  %v3555_v60 = vunpack.i.l.bf16 %v3554_v18 }
 0x222   :  { %v557_v63 = vsel %vm192_vm0, %v3555_v60, %v3556_v6 }
 0x223   :  { %v3559_v61 = vpop.permute.xlu0 %3558 }
 0x224   :  { %v3561_v28 = vunpack.i.h.bf16 %v3559_v61  ;;  %v3560_v62 = vunpack.i.l.bf16 %v3559_v61 }
 0x226   :  { %v3330_v43 = vpack.c.bf16 %v3561_v28, %v3556_v6  ;;  %v558_v0 = vsel %vm192_vm0, %v3560_v62, %v3561_v28 }
 0x227   :  { %v3332_v1 = vpack.c.bf16 %v558_v0, %v557_v63 }
 0x228   :  { %3331 = vmatprep.subr.bf16.mxu0 %v3330_v43 }
 0x229   :  { %3333 = vmatpush1.bf16.msra.mxu0 %v3332_v1 }
 0x22f   :  { %v3564_v2 = vpop.permute.xlu1 %3563 }
 0x230   :  { %v3566_v4 = vunpack.i.h.bf16 %v3564_v2  ;;  %v3565_v42 = vunpack.i.l.bf16 %v3564_v2 }
 0x232   :  { %v559_v24 = vsel %vm192_vm0, %v3565_v42, %v3566_v4 }
 0x233   :  { %v3569_v5 = vpop.permute.xlu0 %3568  ;;  %v3574_v12 = vpop.permute.xlu1 %3573 }
 0x234   :  { %v3571_v17 = vunpack.i.h.bf16 %v3569_v5  ;;  %v3570_v21 = vunpack.i.l.bf16 %v3569_v5  ;;  %v3576_v22 = vunpack.i.h.bf16 %v3574_v12  ;;  %v3575_v23 = vunpack.i.l.bf16 %v3574_v12 }
 0x236   :  { %v3334_v10 = vpack.c.bf16 %v3571_v17, %v3566_v4  ;;  %v560_v25 = vsel %vm192_vm0, %v3570_v21, %v3571_v17  ;;  %v585_v3 = vsel %vm261_vm1, %v3575_v23, %v3576_v22 }
 0x237   :  { %v3579_v30 = vpop.permute.xlu0 %3578  ;;  %v3584_v11 = vpop.permute.xlu1 %3583  ;;  %v3336_v31 = vpack.c.bf16 %v560_v25, %v559_v24  ;;  %v653_v25 = vld [vmem:[%s5834_s5] sm:$0xff] }
 0x238   :  { %v3581_v32 = vunpack.i.h.bf16 %v3579_v30  ;;  %v3580_v33 = vunpack.i.l.bf16 %v3579_v30  ;;  %3335 = vmatprep.subr.bf16.mxu0 %v3334_v10  ;;  %v3586_v34 = vunpack.i.h.bf16 %v3584_v11  ;;  %v3585_v8 = vunpack.i.l.bf16 %v3584_v11  ;;  %v656_v30 = vld [vmem:[%s5834_s5 + $0x18] sm:$0xff]  ;;  %v655_v11 = vld [vmem:[%s5834_s5 + $0x10] sm:$0xff] }
 0x239   :  { %3337 = vmatpush1.bf16.msra.mxu0 %v3336_v31  ;;  %v658_v31 = vld [vmem:[%s5834_s5 + $0x28] sm:$0xff] }
 0x23a   :  { %v3338_v20 = vpack.c.bf16 %v3581_v32, %v3576_v22  ;;  %v586_v37 = vsel %vm261_vm1, %v3580_v33, %v3581_v32  ;;  %v587_v27 = vsel %vm261_vm1, %v3585_v8, %v3586_v34  ;;  %v657_v32 = vld [vmem:[%s5834_s5 + $0x20] sm:$0xff]  ;;  %v660_v33 = vld [vmem:[%s5834_s5 + $0x38] sm:$0xff] }
 0x23b   :  { %v3589_v38 = vpop.permute.xlu0 %3588  ;;  %v3594_v39 = vpop.permute.xlu1 %3593  ;;  %v3340_v40 = vpack.c.bf16 %v586_v37, %v585_v3  ;;  %v659_v3 = vld [vmem:[%s5834_s5 + $0x30] sm:$0xff]  ;;  %v664_v8 = vld [vmem:[%s5834_s5 + $0x58] sm:$0xff] }
 0x23c   :  { %v3591_v41 = vunpack.i.h.bf16 %v3589_v38  ;;  %v3590_v9 = vunpack.i.l.bf16 %v3589_v38  ;;  %3339 = vmatprep.subr.bf16.mxu0 %v3338_v20  ;;  %v3596_v45 = vunpack.i.h.bf16 %v3594_v39  ;;  %v3595_v46 = vunpack.i.l.bf16 %v3594_v39  ;;  %v662_v20 = vld [vmem:[%s5834_s5 + $0x48] sm:$0xff]  ;;  %v663_v37 = vld [vmem:[%s5834_s5 + $0x50] sm:$0xff]  ;;  %v665_v39 = vld [vmem:[%s5834_s5 + $0x60] sm:$0xff] }
 0x23d   :  { %3341 = vmatpush1.bf16.msra.mxu0 %v3340_v40  ;;  %v666_v38 = vld [vmem:[%s5834_s5 + $0x68] sm:$0xff]  ;;  %v668_v40 = vld [vmem:[%s5834_s5 + $0x78] sm:$0xff] }
 0x23e   :  { %v3342_v47 = vpack.c.bf16 %v3591_v41, %v3586_v34  ;;  %v588_v48 = vsel %vm261_vm1, %v3590_v9, %v3591_v41  ;;  %v613_v36 = vsel %vm330_vm2, %v3595_v46, %v3596_v45  ;;  %v661_v34 = vld [vmem:[%s5834_s5 + $0x40] sm:$0xff]  ;;  %v667_v41 = vld [vmem:[%s5834_s5 + $0x70] sm:$0xff]  ;;  %v3826_v9 = vmov 0.0|0.0   ;;  %v993_v46 = vld [vmem:[%s5836_s7 + $0x8] sm:$0xff]  ;;  %s3827_s5 = smov 7  }
 0x23f   :  { %v3599_v49 = vpop.permute.xlu0 %3598  ;;  %v3604_v50 = vpop.permute.xlu1 %3603  ;;  %v3344_v7 = vpack.c.bf16 %v588_v48, %v587_v27  ;;  %3506 = vmatprep.subr.bf16.mxu1 %v3826_v9  ;;  %v995_v48 = vld [vmem:[%s5836_s7 + $0x18] sm:$0xff] }
 0x240   :  { %v3601_v26 = vunpack.i.h.bf16 %v3599_v49  ;;  %v3600_v51 = vunpack.i.l.bf16 %v3599_v49  ;;  %3343 = vmatprep.subr.bf16.mxu0 %v3342_v47  ;;  %v3606_v53 = vunpack.i.h.bf16 %v3604_v50  ;;  %v3605_v19 = vunpack.i.l.bf16 %v3604_v50  ;;  %v994_v47 = vld [vmem:[%s5836_s7 + $0x10] sm:$0xff]  ;;  %v996_v50 = vld [vmem:[%s5836_s7 + $0x20] sm:$0xff] }
 0x241   :  { %3345 = vmatpush1.bf16.msra.mxu0 %v3344_v7  ;;  %v3366_v49 = vpack.c.bf16 %v995_v48, %v994_v47  ;;  %v997_v7 = vld [vmem:[%s5836_s7 + $0x28] sm:$0xff] }
 0x242   :  { %v3346_v52 = vpack.c.bf16 %v3601_v26, %v3596_v45  ;;  %v614_v54 = vsel %vm330_vm2, %v3600_v51, %v3601_v26  ;;  %v615_v6 = vsel %vm330_vm2, %v3605_v19, %v3606_v53  ;;  %v992_v45 = vld [vmem:[%s5836_s7] sm:$0xff]  ;;  %v3369_v26 = vpack.c.bf16 %v997_v7, %v996_v50  ;;  %v998_v51 = vld [vmem:[%s5836_s7 + $0x30] sm:$0xff]  ;;  %v1001_v19 = vld [vmem:[%s5836_s7 + $0x48] sm:$0xff] }
 0x243   :  { %v3609_v29 = vpop.permute.xlu0 %3608  ;;  %v3614_v55 = vpop.permute.xlu1 %3613  ;;  %v3348_v35 = vpack.c.bf16 %v614_v54, %v613_v36  ;;  %v3363_v27 = vpack.c.bf16 %v993_v46, %v992_v45  ;;  %v999_v36 = vld [vmem:[%s5836_s7 + $0x38] sm:$0xff] }
 0x244   :  { %v3611_v56 = vunpack.i.h.bf16 %v3609_v29  ;;  %v3610_v57 = vunpack.i.l.bf16 %v3609_v29  ;;  %3347 = vmatprep.subr.bf16.mxu0 %v3346_v52  ;;  %v3616_v58 = vunpack.i.h.bf16 %v3614_v55  ;;  %v3615_v59 = vunpack.i.l.bf16 %v3614_v55  ;;  %v1002_v55 = vld [vmem:[%s5836_s7 + $0x50] sm:$0xff] }
 0x245   :  { %3349 = vmatpush1.bf16.msra.mxu0 %v3348_v35  ;;  %3515 = vmatpush1.bf16.msra.mxu1 %v3363_v27  ;;  %v3372_v52 = vpack.c.bf16 %v999_v36, %v998_v51  ;;  %v1003_v35 = vld [vmem:[%s5836_s7 + $0x58] sm:$0xff] }
 0x246   :  { %v3350_v18 = vpack.c.bf16 %v3611_v56, %v3606_v53  ;;  %v616_v60 = vsel %vm330_vm2, %v3610_v57, %v3611_v56  ;;  %v641_v0 = vsel %vm399_vm5, %v3615_v59, %v3616_v58  ;;  %3507 = vmatprep.subr.bf16.mxu1 %v3826_v9  ;;  %v1000_v53 = vld [vmem:[%s5836_s7 + $0x40] sm:$0xff]  ;;  %v3378_v56 = vpack.c.bf16 %v1003_v35, %v1002_v55  ;;  %v1005_v59 = vld [vmem:[%s5836_s7 + $0x68] sm:$0xff] }
 0x247   :  { %v3619_v61 = vpop.permute.xlu0 %3618  ;;  %v3624_v28 = vpop.permute.xlu1 %3623  ;;  %v3352_v62 = vpack.c.bf16 %v616_v60, %v615_v6  ;;  %v3375_v54 = vpack.c.bf16 %v1001_v19, %v1000_v53 }
 0x248   :  { %v3621_v43 = vunpack.i.h.bf16 %v3619_v61  ;;  %v3620_v63 = vunpack.i.l.bf16 %v3619_v61  ;;  %3351 = vmatprep.subr.bf16.mxu0 %v3350_v18  ;;  %v3626_v2 = vunpack.i.h.bf16 %v3624_v28  ;;  %v3625_v4 = vunpack.i.l.bf16 %v3624_v28 }
 0x249   :  { %3353 = vmatpush1.bf16.msra.mxu0 %v3352_v62  ;;  %3516 = vmatpush1.bf16.msra.mxu1 %v3366_v49 }
 0x24a   :  { %v3354_v1 = vpack.c.bf16 %v3621_v43, %v3616_v58  ;;  %v642_v42 = vsel %vm399_vm5, %v3620_v63, %v3621_v43  ;;  %v643_v23 = vsel %vm399_vm5, %v3625_v4, %v3626_v2  ;;  %3508 = vmatprep.subr.bf16.mxu1 %v3826_v9  ;;  %v1004_v58 = vld [vmem:[%s5836_s7 + $0x60] sm:$0xff] }
 0x24b   :  { %v3629_v5 = vpop.permute.xlu0 %3628  ;;  %v3356_v12 = vpack.c.bf16 %v642_v42, %v641_v0  ;;  %v3381_v60 = vpack.c.bf16 %v1005_v59, %v1004_v58  ;;  %v1006_v0 = vld [vmem:[%s5836_s7 + $0x70] sm:$0xff] }
 0x24c   :  { %v3631_v17 = vunpack.i.h.bf16 %v3629_v5  ;;  %v3630_v21 = vunpack.i.l.bf16 %v3629_v5  ;;  %3355 = vmatprep.subr.bf16.mxu0 %v3354_v1  ;;  %v1007_v1 = vld [vmem:[%s5836_s7 + $0x78] sm:$0xff] }
 0x24d   :  { %3357 = vmatpush1.bf16.msra.mxu0 %v3356_v12  ;;  %3517 = vmatpush1.bf16.msra.mxu1 %v3369_v26  ;;  %v3384_v42 = vpack.c.bf16 %v1007_v1, %v1006_v0 }
 0x24e   :  { %v3358_v22 = vpack.c.bf16 %v3631_v17, %v3626_v2  ;;  %v644_v10 = vsel %vm399_vm5, %v3630_v21, %v3631_v17  ;;  %3509 = vmatprep.subr.bf16.mxu1 %v3826_v9 }
 0x24f   :  { %v3360_v24 = vpack.c.bf16 %v644_v10, %v643_v23 }
 0x250   :  { %3359 = vmatprep.subr.bf16.mxu0 %v3358_v22 }
 0x251   :  { %3361 = vmatpush1.bf16.msra.mxu0 %v3360_v24  ;;  %3518 = vmatpush1.bf16.msra.mxu1 %v3372_v52 }
 0x252   :  { %3362 = vmatprep.subr.bf16.mxu0 %v3826_v9  ;;  %3510 = vmatprep.subr.bf16.mxu1 %v3826_v9 }
 0x254   :  { %807 = vmatmul.mubr.f32.vlgmr.msra.gmra.mrb[0].mxu0 %v653_v25 }
 0x255   :  { %2996 = vmatprep.mubr.msk.f32.mxu0 %vm717_vm8, %v656_v30  ;;  %3364 = vmatpush1.bf16.msra.mxu0 %v3363_v27  ;;  %v1008_v30 = vld [vmem:[%s5836_s7 + $0x80] sm:$0xff] }
 0x256   :  { %3365 = vmatprep.subr.bf16.mxu0 %v3826_v9  ;;  %3519 = vmatpush1.bf16.msra.mxu1 %v3375_v54 }
 0x257   :  { %3511 = vmatprep.subr.bf16.mxu1 %v3826_v9 }
 0x258   :  { %813 = vmatmul.mubr.f32.gmra.mrb[2].mxu0 %v655_v11  ;;  %v680_v29 = vpop.permute.xlu1 %679 }
 0x259   :  { %2997 = vmatprep.mubr.msk.f32.mxu0 %vm717_vm8, %v658_v31  ;;  %3367 = vmatpush1.bf16.msra.mxu0 %v3366_v49 }
 0x25a   :  { %3368 = vmatprep.subr.bf16.mxu0 %v3826_v9  ;;  %3520 = vmatpush1.bf16.msra.mxu1 %v3378_v56 }
 0x25b   :  { %3512 = vmatprep.subr.bf16.mxu1 %v3826_v9 }
 0x25c   :  { %819 = vmatmul.mubr.f32.gmra.mrb[4].mxu0 %v657_v32  ;;  %v685_v61 = vpop.permute.xlu1 %684  ;;  %v695_v12 = vpop.permute.xlu0 %694 }
 0x25d   :  { %2998 = vmatprep.mubr.msk.f32.mxu0 %vm717_vm8, %v660_v33  ;;  %3370 = vmatpush1.bf16.msra.mxu0 %v3369_v26 }
 0x25e   :  { %3371 = vmatprep.subr.bf16.mxu0 %v3826_v9  ;;  %3521 = vmatpush1.bf16.msra.mxu1 %v3381_v60 }
 0x25f   :  { %3513 = vmatprep.subr.bf16.mxu1 %v3826_v9 }
 0x260   :  { %825 = vmatmul.mubr.f32.gmra.mrb[6].mxu0 %v659_v3  ;;  %v690_v21 = vpop.permute.xlu1 %689 }
 0x261   :  { %2999 = vmatprep.mubr.msk.f32.mxu0 %vm717_vm8, %v662_v20  ;;  %3373 = vmatpush1.bf16.msra.mxu0 %v3372_v52  ;;  %v700_v20 = vpop.permute.xlu0 %699 }
 0x262   :  { %3374 = vmatprep.subr.bf16.mxu0 %v3826_v9  ;;  %3522 = vmatpush1.bf16.msra.mxu1 %v3384_v42 }
 0x263   :  { %3514 = vmatprep.subr.mxu1 %v5853_v44 }
 0x264   :  { %831 = vmatmul.mubr.f32.gmra.mrb[8].mxu0 %v661_v34  ;;  %v710_v52 = vpop.permute.xlu1 %709 }
 0x265   :  { %3000 = vmatprep.mubr.msk.f32.mxu0 %vm717_vm8, %v664_v8  ;;  %3376 = vmatpush1.bf16.msra.mxu0 %v3375_v54  ;;  %v705_v45 = vpop.permute.xlu0 %704 }
 0x266   :  { %3377 = vmatprep.subr.bf16.mxu0 %v3826_v9  ;;  %3523 = vmatpush1.msra.mxu1 %v1008_v30 }
 0x268   :  { %837 = vmatmul.mubr.f32.gmra.mrb[10].mxu0 %v663_v37 }
 0x269   :  { %3001 = vmatprep.mubr.msk.f32.mxu0 %vm717_vm8, %v666_v38  ;;  %3379 = vmatpush1.bf16.msra.mxu0 %v3378_v56 }
 0x26a   :  { %3380 = vmatprep.subr.bf16.mxu0 %v3826_v9 }
 0x26c   :  { %843 = vmatmul.mubr.f32.gmra.mrb[12].mxu0 %v665_v39 }
 0x26d   :  { %3002 = vmatprep.mubr.msk.f32.mxu0 %vm717_vm8, %v668_v40  ;;  %3382 = vmatpush1.bf16.msra.mxu0 %v3381_v60 }
 0x26e   :  { %3383 = vmatprep.subr.bf16.mxu0 %v3826_v9 }
 0x270   :  { %849 = vmatmul.mubr.f32.gmra.mrb[14].mxu0 %v667_v41 }
 0x271   :  { %3385 = vmatpush1.bf16.msra.mxu0 %v3384_v42 }
 0x272   :  { %1066 = vmatprep.subr.mxu0 %v5853_v44 }
 0x275   :  { %1067 = vmatpush1.msra.mxu0 %v1008_v30 }
 0x276   :  { %3295 = vmatprep.subr.mxu0 %v5853_v44 }
 0x327   :  { %v808_v57 = vpop.f32.mrb[0].mxu0 }
 0x328   :  { %v809_v18 = vadd.f32 %v808_v57, %v680_v29  ;;  %v810_v6 = vpop.f32.mrb[1].mxu0  ;;  %v715_v57 = vpop.permute.xlu0 %714 }
 0x329   :  { %v4331_v28 = vadd.f32 %v810_v6, %v680_v29 }
 0x32a   :  { %v4333_v62 = vmax.f32 %v809_v18, 0.0 }
 0x32b   :  { %v856_v43 = vmax.f32 %v4331_v28, 0.0  ;;  %v814_v63 = vpop.f32.mrb[2].mxu0 }
 0x32c   :  { %v815_v2 = vadd.f32 %v814_v63, %v685_v61  ;;  %v816_v4 = vpop.f32.mrb[3].mxu0  ;;  %943 = vrot.lane.b32.xlu0 %v4333_v62, %s3827_s5 }
 0x32d   :  { %v4344_v5 = vadd.f32 %v816_v4, %v685_v61  ;;  %889 = vrot.lane.b32.xlu1 %v856_v43, %s3820_s0 }
 0x32e   :  { %v4349_v17 = vmax.f32 %v815_v2, 0.0 }
 0x32f   :  { %v858_v22 = vmax.f32 %v4344_v5, 0.0  ;;  %v820_v23 = vpop.f32.mrb[4].mxu0 }
 0x330   :  { %v821_v10 = vadd.f32 %v820_v23, %v690_v21  ;;  %v822_v24 = vpop.f32.mrb[5].mxu0 }
 0x331   :  { %v4354_v25 = vadd.f32 %v822_v24, %v690_v21  ;;  %945 = vrot.lane.b32.xlu1 %v4349_v17, %s3827_s5  ;;  %893 = vrot.lane.b32.xlu0 %v858_v22, %s3820_s0 }
 0x332   :  { %v4364_v11 = vmax.f32 %v821_v10, 0.0 }
 0x333   :  { %v860_v31 = vmax.f32 %v4354_v25, 0.0  ;;  %v826_v32 = vpop.f32.mrb[6].mxu0 }
 0x334   :  { %v827_v33 = vadd.f32 %v826_v32, %v695_v12  ;;  %v828_v3 = vpop.f32.mrb[7].mxu0 }
 0x335   :  { %v4368_v34 = vadd.f32 %v828_v3, %v695_v12  ;;  %897 = vrot.lane.b32.xlu1 %v860_v31, %s3820_s0  ;;  %947 = vrot.lane.b32.xlu0 %v4364_v11, %s3827_s5 }
 0x336   :  { %v4375_v8 = vmax.f32 %v827_v33, 0.0 }
 0x337   :  { %v862_v37 = vmax.f32 %v4368_v34, 0.0  ;;  %v832_v38 = vpop.f32.mrb[8].mxu0 }
 0x338   :  { %v3632_v39 = vpack.i.bf16 %v4375_v8, %v4333_v62  ;;  %v833_v40 = vadd.f32 %v832_v38, %v700_v20  ;;  %v834_v41 = vpop.f32.mrb[9].mxu0 }
 0x339   :  { %901 = vrot.lane.b32.xlu0 %v862_v37, %s3820_s0  ;;  %v4386_v47 = vadd.f32 %v834_v41, %v700_v20 }
 0x33a   :  { %v4383_v9 = vmax.f32 %v833_v40, 0.0  ;;  %3633 = vrot.lane.b32.xlu1 %v3632_v39, %s3820_s0 }
 0x33b   :  { %v838_v46 = vpop.f32.mrb[10].mxu0  ;;  %v864_v7 = vmax.f32 %v4386_v47, 0.0 }
 0x33c   :  { %v839_v27 = vadd.f32 %v838_v46, %v705_v45  ;;  %v840_v48 = vpop.f32.mrb[11].mxu0  ;;  %v3637_v49 = vpack.i.bf16 %v4383_v9, %v4349_v17 }
 0x33d   :  { %v4396_v51 = vadd.f32 %v840_v48, %v705_v45 }
 0x33e   :  { %949 = vrot.lane.b32.xlu1 %v4375_v8, %s3827_s5  ;;  %3638 = vrot.lane.b32.xlu0 %v3637_v49, %s3820_s0  ;;  %v4394_v26 = vmax.f32 %v839_v27, 0.0 }
 0x33f   :  { %v844_v50 = vpop.f32.mrb[12].mxu0  ;;  %v866_v54 = vmax.f32 %v4396_v51, 0.0 }
 0x340   :  { %v846_v36 = vpop.f32.mrb[13].mxu0  ;;  %v3642_v19 = vpack.i.bf16 %v4394_v26, %v4364_v11  ;;  %v845_v29 = vadd.f32 %v844_v50, %v710_v52 }
 0x341   :  { %v4412_v56 = vadd.f32 %v846_v36, %v710_v52 }
 0x342   :  { %905 = vrot.lane.b32.xlu1 %v864_v7, %s3820_s0  ;;  %951 = vrot.lane.b32.xlu0 %v4383_v9, %s3827_s5  ;;  %v4410_v35 = vmax.f32 %v845_v29, 0.0 }
 0x343   :  { %v850_v53 = vpop.f32.mrb[14].mxu0  ;;  %v868_v58 = vmax.f32 %v4412_v56, 0.0  ;;  %v1534_v56 = vld [vmem:[%s5837_s12] sm:$0xff] }
 0x344   :  { %v852_v55 = vpop.f32.mrb[15].mxu0  ;;  %v851_v59 = vadd.f32 %v850_v53, %v715_v57 }
 0x345   :  { %v4419_v18 = vadd.f32 %v852_v55, %v715_v57 }
 0x346   :  { %3643 = vrot.lane.b32.xlu1 %v3642_v19, %s3820_s0  ;;  %909 = vrot.lane.b32.xlu0 %v866_v54, %s3820_s0  ;;  %v4426_v6 = vmax.f32 %v851_v59, 0.0 }
 0x347   :  { %v870_v60 = vmax.f32 %v4419_v18, 0.0  ;;  %v1536_v18 = vld [vmem:[%s5837_s12 + $0x10] sm:$0xff] }
 0x34a   :  { %953 = vrot.lane.b32.xlu1 %v4394_v26, %s3827_s5  ;;  %911 = vrot.lane.b32.xlu0 %v4410_v35, %s3820_s0 }
 0x34e   :  { %955 = vrot.lane.b32.xlu1 %v4410_v35, %s3827_s5  ;;  %913 = vrot.lane.b32.xlu0 %v868_v58, %s3820_s0 }
 0x352   :  { %917 = vrot.lane.b32.xlu1 %v870_v60, %s3820_s0  ;;  %957 = vrot.lane.b32.xlu0 %v4426_v6, %s3827_s5 }
 0x356   :  { %915 = vrot.lane.b32.xlu1 %v4426_v6, %s3820_s0 }
 0x39e   :  { %v944_v61 = vpop.permute.xlu0 %943 }
 0x39f   :  { %v890_v63 = vpop.permute.xlu1 %889 }
 0x3a0   :  { %v968_v0 = vsel %vm967_vm9, %v890_v63, %v944_v61 }
 0x3a1   :  { %v977_v1 = vmax.f32 %v856_v43, %v968_v0 }
 0x3a3   :  { %v946_v2 = vpop.permute.xlu1 %945  ;;  %3003 = vmatprep.mubr.msk.f32.mxu0 %vm1009_vm10, %v977_v1  ;;  %v894_v4 = vpop.permute.xlu0 %893 }
 0x3a4   :  { %v969_v30 = vsel %vm967_vm9, %v894_v4, %v946_v2 }
 0x3a5   :  { %v979_v43 = vmax.f32 %v858_v22, %v969_v30  ;;  %v1542_v30 = vld [vmem:[%s5837_s12 + $0x40] sm:$0xff] }
 0x3a7   :  { %v898_v42 = vpop.permute.xlu1 %897  ;;  %v948_v12 = vpop.permute.xlu0 %947 }
 0x3a8   :  { %v970_v40 = vsel %vm967_vm9, %v898_v42, %v948_v12  ;;  %v1539_v12 = vld [vmem:[%s5837_s12 + $0x28] sm:$0xff] }
 0x3a9   :  { %v981_v48 = vmax.f32 %v860_v31, %v970_v40  ;;  %v3043_v40 = vld [vmem:[%s5839_s8 + $0x140] sm:$0xff] }
 0x3ab   :  { %v902_v21 = vpop.permute.xlu0 %901 }
 0x3ac   :  { %v3634_v23 = vpop.permute.xlu1 %3633 }
 0x3ad   :  { %v3636_v10 = vunpack.i.h.bf16 %v3634_v23  ;;  %v3635_v24 = vunpack.i.l.bf16 %v3634_v23  ;;  %v1540_v23 = vld [vmem:[%s5837_s12 + $0x30] sm:$0xff] }
 0x3af   :  { %v919_v32 = vsel %vm192_vm0, %v3635_v24, %v890_v63  ;;  %v922_v28 = vsel %vm192_vm0, %v3636_v10, %v902_v21  ;;  %v1541_v10 = vld [vmem:[%s5837_s12 + $0x38] sm:$0xff] }
 0x3b0   :  { %v976_v33 = vmax.f32 %v4333_v62, %v919_v32  ;;  %v950_v3 = vpop.permute.xlu1 %949  ;;  %v3639_v20 = vpop.permute.xlu0 %3638  ;;  %v982_v62 = vmax.f32 %v4375_v8, %v922_v28  ;;  %v3398_v24 = vpack.c.bf16 %v1541_v10, %v1540_v23  ;;  %v4514_v32 = vld [vmem:[%s5838_s13] sm:$0x3] }
 0x3b1   :  { %v971_v38 = vsel %vm967_vm9, %v902_v21, %v950_v3  ;;  %v3640_v39 = vunpack.i.l.bf16 %v3639_v20  ;;  %v3641_v45 = vunpack.i.h.bf16 %v3639_v20  ;;  %v3011_v3 = vld [vmem:[%s5839_s8 + $0x40] sm:$0xff] }
 0x3b2   :  { %1099 = vmatmul.mubr.f32.vlgmr.msra.gmra.mrb[16].mxu0 %v976_v33  ;;  %v983_v41 = vmax.f32 %v862_v37, %v971_v38  ;;  %v1139_v33 = vld [vmem:[%s5839_s8] sm:$0xff] }
 0x3b3   :  { %3004 = vmatprep.mubr.msk.f32.mxu0 %vm1009_vm10, %v979_v43  ;;  %v920_v46 = vsel %vm192_vm0, %v3640_v39, %v894_v4  ;;  %v1537_v4 = vld [vmem:[%s5837_s12 + $0x18] sm:$0xff]  ;;  %3296 = vmatpush3.msk.msra.mxu0 %vm1521_vm11, %v4514_v32  ;;  %v3019_v20 = vld [vmem:[%s5839_s8 + $0x80] sm:$0xff] }
 0x3b4   :  { %v906_v27 = vpop.permute.xlu1 %905  ;;  %3006 = vmatprep.mubr.msk.f32.mxu1 %vm1009_vm10, %v983_v41  ;;  %v952_v5 = vpop.permute.xlu0 %951  ;;  %v978_v22 = vmax.f32 %v4349_v17, %v920_v46  ;;  %v3027_v28 = vld [vmem:[%s5839_s8 + $0xc0] sm:$0xff] }
 0x3b5   :  { %v923_v49 = vsel %vm192_vm0, %v3641_v45, %v906_v27  ;;  %v972_v34 = vsel %vm967_vm9, %v906_v27, %v952_v5  ;;  %1114 = vmatmul.mubr.f32.vlgmr.msra.gmra.mrb[0].mxu1 %v982_v62  ;;  %v3035_v43 = vld [vmem:[%s5839_s8 + $0x100] sm:$0xff] }
 0x3b6   :  { %v984_v37 = vmax.f32 %v4383_v9, %v923_v49  ;;  %v985_v8 = vmax.f32 %v864_v7, %v972_v34  ;;  %1104 = vmatmul.mubr.f32.gmra.mrb[18].mxu0 %v978_v22  ;;  %v3067_v38 = vld [vmem:[%s5839_s8 + $0x200] sm:$0xff] }
 0x3b7   :  { %3005 = vmatprep.mubr.msk.f32.mxu0 %vm1009_vm10, %v981_v48  ;;  %v3051_v27 = vld [vmem:[%s5839_s8 + $0x180] sm:$0xff]  ;;  %v1142_v48 = vld [vmem:[%s5839_s8 + $0x18] sm:$0xff] }
 0x3b8   :  { %v3644_v50 = vpop.permute.xlu1 %3643  ;;  %3007 = vmatprep.mubr.msk.f32.mxu1 %vm1009_vm10, %v985_v8  ;;  %v910_v17 = vpop.permute.xlu0 %909  ;;  %v3075_v5 = vld [vmem:[%s5839_s8 + $0x240] sm:$0xff]  ;;  %v3022_v8 = vld [vmem:[%s5839_s8 + $0x98] sm:$0xff] }
 0x3b9   :  { %v3646_v36 = vunpack.i.h.bf16 %v3644_v50  ;;  %v3645_v25 = vunpack.i.l.bf16 %v3644_v50  ;;  %1119 = vmatmul.mubr.f32.gmra.mrb[2].mxu1 %v984_v37  ;;  %v3014_v37 = vld [vmem:[%s5839_s8 + $0x58] sm:$0xff] }
 0x3bb   :  { %v921_v31 = vsel %vm192_vm0, %v3645_v25, %v898_v42  ;;  %v924_v52 = vsel %vm192_vm0, %v3646_v36, %v910_v17  ;;  %v3390_v42 = vpack.c.bf16 %v1537_v4, %v1536_v18  ;;  %v3030_v36 = vld [vmem:[%s5839_s8 + $0xd8] sm:$0xff] }
 0x3bc   :  { %v954_v53 = vpop.permute.xlu1 %953  ;;  %v912_v19 = vpop.permute.xlu0 %911  ;;  %v980_v9 = vmax.f32 %v4364_v11, %v921_v31  ;;  %v986_v29 = vmax.f32 %v4394_v26, %v924_v52  ;;  %v3038_v25 = vld [vmem:[%s5839_s8 + $0x118] sm:$0xff] }
 0x3bd   :  { %v973_v47 = vsel %vm967_vm9, %v910_v17, %v954_v53  ;;  %v3070_v31 = vld [vmem:[%s5839_s8 + $0x218] sm:$0xff] }
 0x3be   :  { %v987_v7 = vmax.f32 %v866_v54, %v973_v47  ;;  %1109 = vmatmul.mubr.f32.gmra.mrb[20].mxu0 %v980_v9 }
 0x3c0   :  { %v956_v55 = vpop.permute.xlu1 %955  ;;  %v914_v57 = vpop.permute.xlu0 %913  ;;  %3008 = vmatprep.mubr.msk.f32.mxu1 %vm1009_vm10, %v987_v7  ;;  %v1140_v7 = vld [vmem:[%s5839_s8 + $0x8] sm:$0xff] }
 0x3c1   :  { %v925_v59 = vsel %vm192_vm0, %v912_v19, %v914_v57  ;;  %v974_v61 = vsel %vm967_vm9, %v914_v57, %v956_v55  ;;  %1124 = vmatmul.mubr.f32.gmra.mrb[4].mxu1 %v986_v29  ;;  %v3012_v29 = vld [vmem:[%s5839_s8 + $0x48] sm:$0xff] }
 0x3c2   :  { %v988_v63 = vmax.f32 %v4410_v35, %v925_v59  ;;  %v989_v11 = vmax.f32 %v868_v58, %v974_v61  ;;  %v1535_v58 = vld [vmem:[%s5837_s12 + $0x8] sm:$0xff] }
 0x3c3   :  { %v3020_v55 = vld [vmem:[%s5839_s8 + $0x88] sm:$0xff] }
 0x3c4   :  { %v918_v0 = vpop.permute.xlu1 %917  ;;  %v958_v51 = vpop.permute.xlu0 %957  ;;  %3009 = vmatprep.mubr.msk.f32.mxu1 %vm1009_vm10, %v989_v11 }
 0x3c5   :  { %v975_v26 = vsel %vm967_vm9, %v918_v0, %v958_v51  ;;  %1129 = vmatmul.mubr.f32.gmra.mrb[6].mxu1 %v988_v63  ;;  %vm1529_vm9 = vcmask 1045504  }
 0x3c6   :  { %v991_v54 = vmax.f32 %v870_v60, %v975_v26  ;;  %v3386_v60 = vpack.c.bf16 %v1535_v58, %v1534_v56  ;;  %v3036_v56 = vld [vmem:[%s5839_s8 + $0x108] sm:$0xff] }
 0x3c7   :  { %v3068_v58 = vld [vmem:[%s5839_s8 + $0x208] sm:$0xff] }
 0x3c8   :  { %v916_v1 = vpop.permute.xlu1 %915  ;;  %3010 = vmatprep.mubr.msk.f32.mxu1 %vm1009_vm10, %v991_v54  ;;  %3387 = vmatprep.subr.bf16.mxu1 %v3386_v60  ;;  %vm1531_vm10 = vcmask 1046528  }
 0x3c9   :  { %v926_v2 = vsel %vm192_vm0, %v916_v1, %v918_v0  ;;  %3389 = vmatpush3.bf16.msra.mxu1 %v3386_v60  ;;  %v3028_v0 = vld [vmem:[%s5839_s8 + $0xc8] sm:$0xff] }
 0x3ca   :  { %v990_v35 = vmax.f32 %v4426_v6, %v926_v2  ;;  %v1538_v6 = vld [vmem:[%s5837_s12 + $0x20] sm:$0xff]  ;;  %3391 = vmatprep.subr.bf16.mxu1 %v3390_v42 }
 0x3cb   :  { %v3394_v21 = vpack.c.bf16 %v1539_v12, %v1538_v6 }
 0x3cc   :  { %1134 = vmatmul.mubr.f32.gmra.mrb[8].mxu1 %v990_v35  ;;  %v3078_v35 = vld [vmem:[%s5839_s8 + $0x258] sm:$0xff] }
 0x3cd   :  { %3393 = vmatpush3.bf16.msra.mxu1 %v3390_v42 }
 0x3ce   :  { %3395 = vmatprep.subr.bf16.mxu1 %v3394_v21 }
 0x3d1   :  { %3397 = vmatpush3.bf16.msra.mxu1 %v3394_v21 }
 0x3d2   :  { %3399 = vmatprep.subr.bf16.mxu1 %v3398_v24 }
 0x3d5   :  { %3401 = vmatpush3.bf16.msra.mxu1 %v3398_v24 }
 0x3d6   :  { %3285 = vmatprep.subr.mxu1 %v1542_v30 }
 0x3d9   :  { %3286 = vmatpush3.msra.mxu1 %v1542_v30 }
 0x3da   :  { %3290 = vmatprep.subr.msk.mxu1 %vm1521_vm11, %v4514_v32 }
 0x485   :  { %v4538_v39 = vpop.f32.mrb[16].mxu0 }
 0x486   :  { %v1147_v41 = vmul.f32 %v1139_v33, %v4538_v39  ;;  %v1186_v45 = vmul.f32 %v3011_v3, %v4538_v39  ;;  %v1224_v62 = vmul.f32 %v3019_v20, %v4538_v39  ;;  %v1262_v46 = vmul.f32 %v3027_v28, %v4538_v39  ;;  %v1102_v22 = vpop.f32.mrb[17].mxu0  ;;  %v3044_v20 = vld [vmem:[%s5839_s8 + $0x148] sm:$0xff] }
 0x487   :  { %v1300_v49 = vmul.f32 %v3035_v43, %v4538_v39  ;;  %v1452_v34 = vmul.f32 %v3067_v38, %v4538_v39  ;;  %v4565_v50 = vmul.f32 %v3043_v40, %v4538_v39  ;;  %v4580_v53 = vmul.f32 %v3051_v27, %v4538_v39  ;;  %v3052_v28 = vld [vmem:[%s5839_s8 + $0x188] sm:$0xff]  ;;  %v1141_v27 = vld [vmem:[%s5839_s8 + $0x10] sm:$0xff] }
 0x488   :  { %v4567_v17 = vpop.f32.mrb[0].mxu1  ;;  %v1156_v52 = vsel %vm1155_vm12, %v1147_v41, 0.0  ;;  %v1490_v19 = vmul.f32 %v3075_v5, %v4538_v39  ;;  %v1194_v59 = vsel %vm1155_vm12, %v1186_v45, 0.0  ;;  %v1232_v61 = vsel %vm1155_vm12, %v1224_v62, 0.0  ;;  %v3076_v38 = vld [vmem:[%s5839_s8 + $0x248] sm:$0xff]  ;;  %v3013_v5 = vld [vmem:[%s5839_s8 + $0x50] sm:$0xff] }
 0x489   :  { %v1150_v9 = vmul.f32 %v1142_v48, %v4567_v17  ;;  %v4584_v47 = vpop.f32.mrb[18].mxu0  ;;  %v1117_v57 = vpop.f32.mrb[1].mxu1  ;;  %v1270_v63 = vsel %vm1155_vm12, %v1262_v46, 0.0  ;;  %v4599_v11 = vsel %vm1155_vm12, %v1300_v49, 0.0  ;;  %v4605_v26 = vsel %vm1155_vm12, %v1452_v34, 0.0  ;;  %v1143_v46 = vld [vmem:[%s5839_s8 + $0x20] sm:$0xff] }
 0x48a   :  { %v1107_v51 = vpop.f32.mrb[19].mxu0  ;;  %v1189_v54 = vmul.f32 %v3014_v37, %v4567_v17  ;;  %v1227_v1 = vmul.f32 %v3022_v8, %v4567_v17  ;;  %v1265_v2 = vmul.f32 %v3030_v36, %v4567_v17  ;;  %v4620_v18 = vsel %vm1155_vm12, %v1490_v19, 0.0  ;;  %v3015_v37 = vld [vmem:[%s5839_s8 + $0x60] sm:$0xff]  ;;  %v3021_v8 = vld [vmem:[%s5839_s8 + $0x90] sm:$0xff] }
 0x48b   :  { %v4623_v60 = vsel %vm1155_vm12, %v1150_v9, 0.0  ;;  %v4626_v4 = vmul.f32 %v3038_v25, %v4567_v17  ;;  %v1148_v42 = vmul.f32 %v1140_v7, %v4584_v47  ;;  %v4632_v12 = vmul.f32 %v3070_v31, %v4567_v17  ;;  %v3023_v19 = vld [vmem:[%s5839_s8 + $0xa0] sm:$0xff]  ;;  %v3029_v7 = vld [vmem:[%s5839_s8 + $0xd0] sm:$0xff] }
 0x48c   :  { %v4629_v6 = vpop.f32.mrb[2].mxu1  ;;  %v1187_v21 = vmul.f32 %v3012_v29, %v4584_v47  ;;  %v1225_v23 = vmul.f32 %v3020_v55, %v4584_v47  ;;  %v1263_v10 = vmul.f32 %v3028_v0, %v4584_v47  ;;  %v4638_v30 = vmul.f32 %v3078_v35, %v4567_v17  ;;  %v3031_v57 = vld [vmem:[%s5839_s8 + $0xe0] sm:$0xff] }
 0x48d   :  { %v1122_v24 = vpop.f32.mrb[3].mxu1  ;;  %v1157_v33 = vsel %vm1155_vm12, %v1148_v42, 0.0  ;;  %v1301_v3 = vmul.f32 %v3036_v56, %v4584_v47  ;;  %v1453_v43 = vmul.f32 %v3068_v58, %v4584_v47  ;;  %v1199_v22 = vsel %vm1155_vm12, %v1189_v54, 0.0 }
 0x48e   :  { %v1158_v40 = vadd.f32 %v1157_v33, %v1156_v52  ;;  %v1195_v41 = vsel %vm1155_vm12, %v1187_v21, 0.0  ;;  %v1233_v45 = vsel %vm1155_vm12, %v1225_v23, 0.0  ;;  %v1271_v62 = vsel %vm1155_vm12, %v1263_v10, 0.0  ;;  %v1144_v33 = vld [vmem:[%s5839_s8 + $0x28] sm:$0xff] }
 0x48f   :  { %v1196_v48 = vadd.f32 %v1195_v41, %v1194_v59  ;;  %v1234_v49 = vadd.f32 %v1233_v45, %v1232_v61  ;;  %v1272_v34 = vadd.f32 %v1271_v62, %v1270_v63  ;;  %v1237_v36 = vsel %vm1155_vm12, %v1227_v1, 0.0  ;;  %v1145_v45 = vld [vmem:[%s5839_s8 + $0x30] sm:$0xff] }
 0x490   :  { %v4673_v25 = vsel %vm1155_vm12, %v1265_v2, 0.0  ;;  %v4676_v31 = vmul.f32 %v3044_v20, %v4584_v47  ;;  %v4679_v52 = vmul.f32 %v3052_v28, %v4584_v47  ;;  %v1491_v29 = vmul.f32 %v3076_v38, %v4584_v47  ;;  %v3024_v20 = vld [vmem:[%s5839_s8 + $0xa8] sm:$0xff]  ;;  %v3017_v62 = vld [vmem:[%s5839_s8 + $0x70] sm:$0xff] }
 0x491   :  { %v4684_v9 = vpop.f32.mrb[20].mxu0  ;;  %v1151_v55 = vmul.f32 %v1143_v46, %v4629_v6  ;;  %v4697_v0 = vsel %vm1155_vm12, %v1301_v3, 0.0  ;;  %v4700_v51 = vsel %vm1155_vm12, %v1453_v43, 0.0  ;;  %v1190_v54 = vmul.f32 %v3015_v37, %v4629_v6  ;;  %v3016_v3 = vld [vmem:[%s5839_s8 + $0x68] sm:$0xff]  ;;  %v3025_v46 = vld [vmem:[%s5839_s8 + $0xb0] sm:$0xff] }
 0x492   :  { %v1149_v59 = vmul.f32 %v1141_v27, %v4684_v9  ;;  %v1188_v61 = vmul.f32 %v3013_v5, %v4684_v9  ;;  %v1112_v63 = vpop.f32.mrb[21].mxu0  ;;  %v1226_v1 = vmul.f32 %v3021_v8, %v4684_v9  ;;  %v1228_v2 = vmul.f32 %v3023_v19, %v4629_v6  ;;  %v3032_v37 = vld [vmem:[%s5839_s8 + $0xe8] sm:$0xff] }
 0x493   :  { %v1264_v58 = vmul.f32 %v3029_v7, %v4684_v9  ;;  %v1266_v21 = vmul.f32 %v3031_v57, %v4629_v6  ;;  %v4722_v43 = vsel %vm1155_vm12, %v1491_v29, 0.0  ;;  %v1163_v38 = vsel %vm1155_vm12, %v1151_v55, 0.0  ;;  %v3033_v63 = vld [vmem:[%s5839_s8 + $0xf0] sm:$0xff] }
 0x494   :  { %v1159_v35 = vsel %vm1155_vm12, %v1149_v59, 0.0  ;;  %v1197_v56 = vsel %vm1155_vm12, %v1188_v61, 0.0  ;;  %v4708_v42 = vpop.f32.mrb[4].mxu1  ;;  %v1235_v24 = vsel %vm1155_vm12, %v1226_v1, 0.0  ;;  %v1201_v27 = vsel %vm1155_vm12, %v1190_v54, 0.0 }
 0x495   :  { %v1160_v23 = vadd.f32 %v1159_v35, %v1158_v40  ;;  %v1198_v10 = vadd.f32 %v1197_v56, %v1196_v48  ;;  %v1127_v28 = vpop.f32.mrb[5].mxu1  ;;  %v1236_v40 = vadd.f32 %v1235_v24, %v1234_v49  ;;  %v1273_v41 = vsel %vm1155_vm12, %v1264_v58, 0.0 }
 0x496   :  { %v1274_v49 = vadd.f32 %v1273_v41, %v1272_v34  ;;  %v1239_v8 = vsel %vm1155_vm12, %v1228_v2, 0.0  ;;  %v1152_v19 = vmul.f32 %v1144_v33, %v4708_v42  ;;  %v1191_v7 = vmul.f32 %v3016_v3, %v4708_v42  ;;  %v3039_v28 = vld [vmem:[%s5839_s8 + $0x120] sm:$0xff]  ;;  %v3026_v41 = vld [vmem:[%s5839_s8 + $0xb8] sm:$0xff] }
 0x497   :  { %v1162_v5 = vadd.f32 %v4623_v60, %v1160_v23  ;;  %v1200_v48 = vadd.f32 %v1199_v22, %v1198_v10  ;;  %v1229_v29 = vmul.f32 %v3024_v20, %v4708_v42  ;;  %v3037_v60 = vld [vmem:[%s5839_s8 + $0x110] sm:$0xff]  ;;  %v1267_v1 = vmul.f32 %v3032_v37, %v4708_v42 }
 0x498   :  { %v4744_v55 = vpop.f32.mrb[6].mxu1  ;;  %v1165_v54 = vsel %vm1155_vm12, %v1152_v19, 0.0  ;;  %v1238_v35 = vadd.f32 %v1237_v36, %v1236_v40  ;;  %v1203_v56 = vsel %vm1155_vm12, %v1191_v7, 0.0  ;;  %v1302_v24 = vmul.f32 %v3037_v60, %v4684_v9  ;;  %v1146_v36 = vld [vmem:[%s5839_s8 + $0x38] sm:$0xff]  ;;  %v3040_v19 = vld [vmem:[%s5839_s8 + $0x128] sm:$0xff] }
 0x499   :  { %v1153_v22 = vmul.f32 %v1145_v45, %v4744_v55  ;;  %v1192_v34 = vmul.f32 %v3017_v62, %v4744_v55  ;;  %v1230_v57 = vmul.f32 %v3025_v46, %v4744_v55  ;;  %v1132_v59 = vpop.f32.mrb[7].mxu1  ;;  %v1164_v61 = vadd.f32 %v1163_v38, %v1162_v5  ;;  %v3018_v38 = vld [vmem:[%s5839_s8 + $0x78] sm:$0xff] }
 0x49a   :  { %v1202_v2 = vadd.f32 %v1201_v27, %v1200_v48  ;;  %v1240_v3 = vadd.f32 %v1239_v8, %v1238_v35  ;;  %v1268_v20 = vmul.f32 %v3033_v63, %v4744_v55  ;;  %v1241_v45 = vsel %vm1155_vm12, %v1229_v29, 0.0  ;;  %v3034_v48 = vld [vmem:[%s5839_s8 + $0xf8] sm:$0xff] }
 0x49b   :  { %v1166_v58 = vadd.f32 %v1165_v54, %v1164_v61  ;;  %v1167_v23 = vsel %vm1155_vm12, %v1153_v22, 0.0  ;;  %v1205_v10 = vsel %vm1155_vm12, %v1192_v34, 0.0  ;;  %v1243_v62 = vsel %vm1155_vm12, %v1230_v57, 0.0  ;;  %v3041_v54 = vld [vmem:[%s5839_s8 + $0x130] sm:$0xff] }
 0x49c   :  { %v1204_v33 = vadd.f32 %v1203_v56, %v1202_v2  ;;  %v1276_v46 = vadd.f32 %v4673_v25, %v1274_v49  ;;  %v1242_v5 = vadd.f32 %v1241_v45, %v1240_v3  ;;  %v1277_v37 = vsel %vm1155_vm12, %v1266_v21, 0.0 }
 0x49d   :  { %v1168_v40 = vadd.f32 %v1167_v23, %v1166_v58  ;;  %v1279_v8 = vsel %vm1155_vm12, %v1267_v1, 0.0  ;;  %v1281_v60 = vsel %vm1155_vm12, %v1268_v20, 0.0  ;;  %v1304_v25 = vmul.f32 %v3039_v28, %v4629_v6  ;;  %v3042_v1 = vld [vmem:[%s5839_s8 + $0x138] sm:$0xff]  ;;  %v3045_v23 = vld [vmem:[%s5839_s8 + $0x150] sm:$0xff] }
 0x49e   :  { %v1206_v27 = vadd.f32 %v1205_v10, %v1204_v33  ;;  %v1278_v29 = vadd.f32 %v1277_v37, %v1276_v46  ;;  %v1310_v49 = vadd.f32 %v4697_v0, %v4599_v11  ;;  %v1244_v59 = vadd.f32 %v1243_v62, %v1242_v5 }
 0x49f   :  { %v4785_v7 = vpop.f32.mrb[8].mxu1  ;;  %v1305_v11 = vmul.f32 %v3040_v19, %v4708_v42  ;;  %v1311_v0 = vsel %vm1155_vm12, %v1302_v24, 0.0 }
 0x4a0   :  { %v1154_v22 = vmul.f32 %v1146_v36, %v4785_v7  ;;  %v1193_v21 = vmul.f32 %v3018_v38, %v4785_v7  ;;  %v1137_v34 = vpop.f32.mrb[9].mxu1  ;;  %v1231_v57 = vmul.f32 %v3026_v41, %v4785_v7  ;;  %v1269_v61 = vmul.f32 %v3034_v48, %v4785_v7 }
 0x4a1   :  { %v1280_v63 = vadd.f32 %v1279_v8, %v1278_v29  ;;  %v1312_v58 = vadd.f32 %v1311_v0, %v1310_v49  ;;  %v1306_v36 = vmul.f32 %v3041_v54, %v4744_v55  ;;  %v1307_v24 = vmul.f32 %v3042_v1, %v4785_v7 }
 0x4a2   :  { %v1169_v2 = vsel %vm1155_vm12, %v1154_v22, 0.0  ;;  %v1207_v35 = vsel %vm1155_vm12, %v1193_v21, 0.0  ;;  %v1245_v56 = vsel %vm1155_vm12, %v1231_v57, 0.0  ;;  %v1283_v28 = vsel %vm1155_vm12, %v1269_v61, 0.0 }
 0x4a3   :  { %v1170_v10 = vadd.f32 %v1169_v2, %v1168_v40  ;;  %v1208_v33 = vadd.f32 %v1207_v35, %v1206_v27  ;;  %v1246_v3 = vadd.f32 %v1245_v56, %v1244_v59  ;;  %v1282_v20 = vadd.f32 %v1281_v60, %v1280_v63  ;;  %v3046_v40 = vld [vmem:[%s5839_s8 + $0x158] sm:$0xff]  ;;  %v3048_v63 = vld [vmem:[%s5839_s8 + $0x168] sm:$0xff]  ;;  %v3069_v2 = vld [vmem:[%s5839_s8 + $0x210] sm:$0xff] }
 0x4a4   :  { %v1313_v38 = vsel %vm1155_vm12, %v4626_v4, 0.0  ;;  %v1340_v27 = vmul.f32 %v3045_v23, %v4684_v9  ;;  %v1315_v48 = vsel %vm1155_vm12, %v1304_v25, 0.0  ;;  %v1317_v37 = vsel %vm1155_vm12, %v1305_v11, 0.0  ;;  %v3047_v4 = vld [vmem:[%s5839_s8 + $0x160] sm:$0xff] }
 0x4a5   :  { %v1171_v41 = vrot.slane %v1170_v10, 4  ;;  %v1209_v45 = vrot.slane %v1208_v33, 4  ;;  %v1247_v62 = vrot.slane %v1246_v3, 4  ;;  %v1284_v46 = vadd.f32 %v1283_v28, %v1282_v20 }
 0x4a6   :  { %v1314_v5 = vadd.f32 %v1313_v38, %v1312_v58  ;;  %v1319_v22 = vsel %vm1155_vm12, %v1306_v36, 0.0  ;;  %v1321_v21 = vsel %vm1155_vm12, %v1307_v24, 0.0  ;;  %v1341_v34 = vmul.f32 %v3046_v40, %v4567_v17 }
 0x4a7   :  { %v1172_v8 = vadd.f32 %v1171_v41, %v1170_v10  ;;  %v1210_v19 = vadd.f32 %v1209_v45, %v1208_v33  ;;  %v1248_v29 = vadd.f32 %v1247_v62, %v1246_v3  ;;  %v1285_v60 = vrot.slane %v1284_v46, 4  ;;  %v3049_v10 = vld [vmem:[%s5839_s8 + $0x170] sm:$0xff] }
 0x4a8   :  { %v1316_v49 = vadd.f32 %v1315_v48, %v1314_v5  ;;  %v1342_v1 = vmul.f32 %v3047_v4, %v4629_v6  ;;  %v1346_v11 = vsel %vm1155_vm12, %v4565_v50, 0.0  ;;  %v1347_v0 = vsel %vm1155_vm12, %v4676_v31, 0.0  ;;  %v3077_v33 = vld [vmem:[%s5839_s8 + $0x250] sm:$0xff]  ;;  %v3050_v31 = vld [vmem:[%s5839_s8 + $0x178] sm:$0xff] }
 0x4a9   :  { %v1173_v57 = vrot.slane %v1172_v8, 2  ;;  %v1211_v59 = vrot.slane %v1210_v19, 2  ;;  %v1249_v25 = vrot.slane %v1248_v29, 2  ;;  %v1286_v61 = vadd.f32 %v1285_v60, %v1284_v46  ;;  %v3053_v5 = vld [vmem:[%s5839_s8 + $0x190] sm:$0xff] }
 0x4aa   :  { %v1318_v54 = vadd.f32 %v1317_v37, %v1316_v49  ;;  %v1343_v3 = vmul.f32 %v3048_v63, %v4708_v42  ;;  %v1348_v20 = vadd.f32 %v1347_v0, %v1346_v11  ;;  %v1349_v28 = vsel %vm1155_vm12, %v1340_v27, 0.0  ;;  %v3058_v11 = vld [vmem:[%s5839_s8 + $0x1b8] sm:$0xff] }
 0x4ab   :  { %v1174_v35 = vadd.f32 %v1173_v57, %v1172_v8  ;;  %v1212_v56 = vadd.f32 %v1211_v59, %v1210_v19  ;;  %v1250_v58 = vadd.f32 %v1249_v25, %v1248_v29  ;;  %v1287_v23 = vrot.slane %v1286_v61, 2  ;;  %v3054_v19 = vld [vmem:[%s5839_s8 + $0x198] sm:$0xff]  ;;  %v3056_v59 = vld [vmem:[%s5839_s8 + $0x1a8] sm:$0xff] }
 0x4ac   :  { %v1320_v50 = vadd.f32 %v1319_v22, %v1318_v54  ;;  %v4849_v45 = vmul.f32 %v3069_v2, %v4684_v9  ;;  %v1344_v46 = vmul.f32 %v3049_v10, %v4744_v55  ;;  %v1350_v40 = vadd.f32 %v1349_v28, %v1348_v20  ;;  %v3055_v22 = vld [vmem:[%s5839_s8 + $0x1a0] sm:$0xff] }
 0x4ad   :  { %v1175_v36 = vrot.slane %v1174_v35, 1  ;;  %v1213_v24 = vrot.slane %v1212_v56, 1  ;;  %v1251_v38 = vrot.slane %v1250_v58, 1  ;;  %v1288_v41 = vadd.f32 %v1287_v23, %v1286_v61  ;;  %v3059_v23 = vld [vmem:[%s5839_s8 + $0x1c0] sm:$0xff] }
 0x4ae   :  { %v1322_v62 = vadd.f32 %v1321_v21, %v1320_v50  ;;  %v4856_v48 = vmul.f32 %v3077_v33, %v4684_v9  ;;  %v1345_v27 = vmul.f32 %v3050_v31, %v4785_v7  ;;  %v1351_v37 = vsel %vm1155_vm12, %v1341_v34, 0.0 }
 0x4af   :  { %v1353_v8 = vsel %vm1155_vm12, %v1342_v1, 0.0  ;;  %v4864_v29 = vadd.f32 %v1175_v36, %v1174_v35  ;;  %v1352_v4 = vadd.f32 %v1351_v37, %v1350_v40  ;;  %v1355_v49 = vsel %vm1155_vm12, %v1343_v3, 0.0  ;;  %v3057_v1 = vld [vmem:[%s5839_s8 + $0x1b0] sm:$0xff]  ;;  %v3060_v3 = vld [vmem:[%s5839_s8 + $0x1c8] sm:$0xff]  ;;  %v3063_v40 = vld [vmem:[%s5839_s8 + $0x1e0] sm:$0xff] }
 0x4b0   :  { %v1323_v60 = vrot.slane %v1322_v62, 4  ;;  %v4870_v21 = vadd.f32 %v1213_v24, %v1212_v56  ;;  %v4872_v57 = vadd.f32 %v1251_v38, %v1250_v58  ;;  %v1289_v34 = vrot.slane %v1288_v41, 1  ;;  %v3062_v24 = vld [vmem:[%s5839_s8 + $0x1d8] sm:$0xff] }
 0x4b1   :  { %v1378_v25 = vmul.f32 %v3053_v5, %v4684_v9  ;;  %v1354_v63 = vadd.f32 %v1353_v8, %v1352_v4  ;;  %v1357_v54 = vsel %vm1155_vm12, %v1344_v46, 0.0  ;;  %v1379_v0 = vmul.f32 %v3054_v19, %v4567_v17 }
 0x4b2   :  { %v1324_v61 = vadd.f32 %v1323_v60, %v1322_v62  ;;  %v1380_v2 = vmul.f32 %v3055_v22, %v4629_v6  ;;  %v1384_v35 = vsel %vm1155_vm12, %v4580_v53, 0.0  ;;  %v1385_v56 = vsel %vm1155_vm12, %v4679_v52, 0.0  ;;  %v3061_v53 = vld [vmem:[%s5839_s8 + $0x1d0] sm:$0xff] }
 0x4b3   :  { %v1387_v58 = vsel %vm1155_vm12, %v1378_v25, 0.0  ;;  %v1356_v33 = vadd.f32 %v1355_v49, %v1354_v63  ;;  %v1381_v50 = vmul.f32 %v3056_v59, %v4708_v42  ;;  %v1386_v31 = vadd.f32 %v1385_v56, %v1384_v35  ;;  %v3064_v49 = vld [vmem:[%s5839_s8 + $0x1e8] sm:$0xff] }
 0x4b4   :  { %v1325_v10 = vrot.slane %v1324_v61, 2  ;;  %v1290_v52 = vadd.f32 %v1289_v34, %v1288_v41  ;;  %v1359_v20 = vsel %vm1155_vm12, %v1345_v27, 0.0  ;;  %v1382_v28 = vmul.f32 %v3057_v1, %v4744_v55 }
 0x4b5   :  { %v1383_v36 = vmul.f32 %v3058_v11, %v4785_v7  ;;  %v1358_v62 = vadd.f32 %v1357_v54, %v1356_v33  ;;  %v1388_v46 = vadd.f32 %v1387_v58, %v1386_v31  ;;  %v1414_v41 = vmul.f32 %v3059_v23, %v4538_v39  ;;  %v3065_v39 = vld [vmem:[%s5839_s8 + $0x1f0] sm:$0xff] }
 0x4b6   :  { %v1326_v38 = vadd.f32 %v1325_v10, %v1324_v61  ;;  %v1389_v5 = vsel %vm1155_vm12, %v1379_v0, 0.0  ;;  %v1391_v27 = vsel %vm1155_vm12, %v1380_v2, 0.0  ;;  %v1415_v37 = vmul.f32 %v3060_v3, %v4584_v47  ;;  %v3066_v47 = vld [vmem:[%s5839_s8 + $0x1f8] sm:$0xff]  ;;  %v3071_v10 = vld [vmem:[%s5839_s8 + $0x220] sm:$0xff] }
 0x4b7   :  { %v1416_v8 = vmul.f32 %v3061_v53, %v4684_v9  ;;  %v1360_v19 = vadd.f32 %v1359_v20, %v1358_v62  ;;  %v1390_v60 = vadd.f32 %v1389_v5, %v1388_v46  ;;  %v1393_v4 = vsel %vm1155_vm12, %v1381_v50, 0.0 }
 0x4b8   :  { %v1417_v22 = vmul.f32 %v3062_v24, %v4567_v17  ;;  %v1327_v34 = vrot.slane %v1326_v38, 1  ;;  %v1418_v9 = vmul.f32 %v3063_v40, %v4629_v6  ;;  %v1422_v59 = vsel %vm1155_vm12, %v1414_v41, 0.0  ;;  %v3072_v24 = vld [vmem:[%s5839_s8 + $0x228] sm:$0xff] }
 0x4b9   :  { %v1423_v25 = vsel %vm1155_vm12, %v1415_v37, 0.0  ;;  %v1361_v61 = vrot.slane %v1360_v19, 4  ;;  %v1392_v63 = vadd.f32 %v1391_v27, %v1390_v60  ;;  %v1395_v54 = vsel %vm1155_vm12, %v1382_v28, 0.0  ;;  %v3074_v27 = vld [vmem:[%s5839_s8 + $0x238] sm:$0xff] }
 0x4ba   :  { %v1424_v1 = vadd.f32 %v1423_v25, %v1422_v59  ;;  %v1397_v11 = vsel %vm1155_vm12, %v1383_v36, 0.0  ;;  %v1419_v17 = vmul.f32 %v3064_v49, %v4708_v42  ;;  %v1420_v0 = vmul.f32 %v3065_v39, %v4744_v55  ;;  %v3079_v49 = vld [vmem:[%s5839_s8 + $0x260] sm:$0xff] }
 0x4bb   :  { %v1425_v2 = vsel %vm1155_vm12, %v1416_v8, 0.0  ;;  %v1362_v35 = vadd.f32 %v1361_v61, %v1360_v19  ;;  %v1394_v56 = vadd.f32 %v1393_v4, %v1392_v63  ;;  %v1421_v58 = vmul.f32 %v3066_v47, %v4785_v7  ;;  %v3080_v61 = vld [vmem:[%s5839_s8 + $0x268] sm:$0xff]  ;;  %v3081_v63 = vld [vmem:[%s5839_s8 + $0x270] sm:$0xff] }
 0x4bc   :  { %v1426_v23 = vadd.f32 %v1425_v2, %v1424_v1  ;;  %v1328_v33 = vadd.f32 %v1327_v34, %v1326_v38  ;;  %v1427_v50 = vsel %vm1155_vm12, %v1417_v22, 0.0  ;;  %v1429_v31 = vsel %vm1155_vm12, %v1418_v9, 0.0 }
 0x4bd   :  { %v1520_v3 = vsel %vm1519_vm13, %v4864_v29, %v4870_v21  ;;  %v1363_v53 = vrot.slane %v1362_v35, 2  ;;  %v1396_v20 = vadd.f32 %v1395_v54, %v1394_v56  ;;  %v1431_v38 = vsel %vm1155_vm12, %v1419_v17, 0.0  ;;  %v3082_v56 = vld [vmem:[%s5839_s8 + $0x278] sm:$0xff] }
 0x4be   :  { %v1428_v28 = vadd.f32 %v1427_v50, %v1426_v23  ;;  %v1522_v36 = vsel %vm1521_vm11, %v1520_v3, %v4872_v57  ;;  %v1456_v46 = vmul.f32 %v3071_v10, %v4629_v6  ;;  %v1462_v40 = vadd.f32 %v4700_v51, %v4605_v26  ;;  %v3073_v57 = vld [vmem:[%s5839_s8 + $0x230] sm:$0xff] }
 0x4bf   :  { %v1524_v62 = vsel %vm1523_vm14, %v1522_v36, %v1290_v52  ;;  %v1364_v29 = vadd.f32 %v1363_v53, %v1362_v35  ;;  %v1398_v21 = vadd.f32 %v1397_v11, %v1396_v20  ;;  %v1433_v52 = vsel %vm1155_vm12, %v1420_v0, 0.0 }
 0x4c0   :  { %v1430_v41 = vadd.f32 %v1429_v31, %v1428_v28  ;;  %v1526_v5 = vsel %vm1525_vm15, %v1524_v62, %v1328_v33  ;;  %v1435_v37 = vsel %vm1155_vm12, %v1421_v58, 0.0  ;;  %v1457_v8 = vmul.f32 %v3072_v24, %v4708_v42 }
 0x4c1   :  { %v1463_v26 = vsel %vm1155_vm12, %v4849_v45, 0.0  ;;  %v1365_v51 = vrot.slane %v1364_v29, 1  ;;  %v1399_v19 = vrot.slane %v1398_v21, 4  ;;  %v1458_v39 = vmul.f32 %v3073_v57, %v4744_v55 }
 0x4c2   :  { %v1432_v60 = vadd.f32 %v1431_v38, %v1430_v41  ;;  %v1464_v4 = vadd.f32 %v1463_v26, %v1462_v40  ;;  %v1459_v22 = vmul.f32 %v3074_v27, %v4785_v7  ;;  %v1465_v34 = vsel %vm1155_vm12, %v4632_v12, 0.0 }
 0x4c3   :  { %v1467_v47 = vsel %vm1155_vm12, %v1456_v46, 0.0  ;;  %v1366_v9 = vadd.f32 %v1365_v51, %v1364_v29  ;;  %v1400_v59 = vadd.f32 %v1399_v19, %v1398_v21  ;;  %v1469_v54 = vsel %vm1155_vm12, %v1457_v8, 0.0 }
 0x4c4   :  { %v1434_v45 = vadd.f32 %v1433_v52, %v1432_v60  ;;  %v1466_v25 = vadd.f32 %v1465_v34, %v1464_v4  ;;  %v1494_v1 = vmul.f32 %v3079_v49, %v4629_v6  ;;  %v1500_v12 = vadd.f32 %v4722_v43, %v4620_v18 }
 0x4c5   :  { %v1501_v11 = vsel %vm1155_vm12, %v4856_v48, 0.0  ;;  %v1401_v17 = vrot.slane %v1400_v59, 2  ;;  %v1528_v2 = vsel %vm1527_vm4, %v1526_v5, %v1366_v9  ;;  %v1471_v58 = vsel %vm1155_vm12, %v1458_v39, 0.0  ;;  %v1709_v9 = vld [vmem:[%s5840_s1] sm:$0xf] }
 0x4c6   :  { %v1436_v0 = vadd.f32 %v1435_v37, %v1434_v45  ;;  %v1468_v35 = vadd.f32 %v1467_v47, %v1466_v25  ;;  %v1495_v23 = vmul.f32 %v3080_v61, %v4708_v42  ;;  %v1496_v6 = vmul.f32 %v3081_v63, %v4744_v55 }
 0x4c7   :  { %v1502_v10 = vadd.f32 %v1501_v11, %v1500_v12  ;;  %v1402_v18 = vadd.f32 %v1401_v17, %v1400_v59  ;;  %v1503_v48 = vsel %vm1155_vm12, %v4638_v30, 0.0  ;;  %v1473_v50 = vsel %vm1155_vm12, %v1459_v22, 0.0 }
 0x4c8   :  { %v1437_v43 = vrot.slane %v1436_v0, 4  ;;  %v1470_v33 = vadd.f32 %v1469_v54, %v1468_v35  ;;  %v1497_v31 = vmul.f32 %v3082_v56, %v4785_v7  ;;  %v1505_v36 = vsel %vm1155_vm12, %v1494_v1, 0.0  ;;  %v2081_v1 = vld [vmem:[%s5841_s10 + $0x8] sm:$0xff]  ;;  %v2080_v56 = vld [vmem:[%s5841_s10] sm:$0xff] }
 0x4c9   :  { %v1504_v3 = vadd.f32 %v1503_v48, %v1502_v10  ;;  %v1403_v53 = vrot.slane %v1402_v18, 1  ;;  %v1507_v55 = vsel %vm1155_vm12, %v1495_v23, 0.0  ;;  %v1509_v46 = vsel %vm1155_vm12, %v1496_v6, 0.0  ;;  %v3179_v35 = vld [vmem:[%s5841_s10 + $0xc8] sm:$0xff]  ;;  %v3170_v23 = vld [vmem:[%s5841_s10 + $0x80] sm:$0xff] }
 0x4ca   :  { %v1438_v20 = vadd.f32 %v1437_v43, %v1436_v0  ;;  %v1472_v28 = vadd.f32 %v1471_v58, %v1470_v33  ;;  %v1511_v7 = vsel %vm1155_vm12, %v1497_v31, 0.0  ;;  %vm3828_vm14 = vmmov 0   ;;  %v3163_v0 = vld [vmem:[%s5841_s10 + $0x48] sm:$0xff]  ;;  %v3162_v58 = vld [vmem:[%s5841_s10 + $0x40] sm:$0xff]  ;;  %v3165_v43 = vld [vmem:[%s5841_s10 + $0x58] sm:$0xff] }
 0x4cb   :  { %v1506_v42 = vadd.f32 %v1505_v36, %v1504_v3  ;;  %v1404_v24 = vadd.f32 %v1403_v53, %v1402_v18  ;;  %3297 = vmatprep.mubr.msk.f32.mxu0 %vm3828_vm14, %v5853_v44  ;;  %v1888_v63 = vsub.s32 3, %v3955_v14  ;;  %v1917_v6 = vsub.s32 4, %v3955_v14  ;;  %v3178_v10 = vld [vmem:[%s5841_s10 + $0xc0] sm:$0xff]  ;;  %v2083_v18 = vld [vmem:[%s5841_s10 + $0x18] sm:$0xff] }
 0x4cc   :  { %v1439_v38 = vrot.slane %v1438_v20, 2  ;;  %v1474_v62 = vadd.f32 %v1473_v50, %v1472_v28  ;;  %3298 = vmatmul.mubr.msk.f32.vlgmr.msra.gmra.mrb[22].mxu0 %vm64_vm3, %v1709_v9  ;;  %v1946_v33 = vsub.s32 5, %v3955_v14  ;;  %v1975_v48 = vsub.s32 6, %v3955_v14  ;;  %v3173_v3 = vld [vmem:[%s5841_s10 + $0x98] sm:$0xff] }
 0x4cd   :  { %v1508_v30 = vadd.f32 %v1507_v55, %v1506_v42  ;;  %v1530_v29 = vsel %vm1529_vm9, %v1528_v2, %v1404_v24  ;;  %v3171_v2 = vld [vmem:[%s5841_s10 + $0x88] sm:$0xff]  ;;  %v2004_v50 = vsub.s32 7, %v3955_v14  ;;  %v3181_v53 = vld [vmem:[%s5841_s10 + $0xd8] sm:$0xff]  ;;  %v3164_v24 = vld [vmem:[%s5841_s10 + $0x50] sm:$0xff]  ;;  %vm2384_vm15 = vcmask 523264  }
 0x4ce   :  { %v1440_v40 = vadd.f32 %v1439_v38, %v1438_v20  ;;  %v1475_v21 = vrot.slane %v1474_v62, 4  ;;  %v2082_v20 = vld [vmem:[%s5841_s10 + $0x10] sm:$0xff] }
 0x4cf   :  { %v1510_v41 = vadd.f32 %v1509_v46, %v1508_v30 }
 0x4d0   :  { %v1441_v5 = vrot.slane %v1440_v40, 1  ;;  %v1476_v57 = vadd.f32 %v1475_v21, %v1474_v62  ;;  %v1792_v62 = vld [vmem:[%s5842_s9 + $0x8] sm:$0xff] }
 0x4d1   :  { %v1512_v27 = vadd.f32 %v1511_v7, %v1510_v41  ;;  %v1784_v7 = vld [vmem:[%s5843_s11 + $0x8] sm:$0xff] }
 0x4d2   :  { %v1442_v52 = vadd.f32 %v1441_v5, %v1440_v40  ;;  %v1477_v37 = vrot.slane %v1476_v57, 2  ;;  %v3091_v41 = vld [vmem:[%s5842_s9 + $0x48] sm:$0xff] }
 0x4d3   :  { %v1513_v8 = vrot.slane %v1512_v27, 4 }
 0x4d4   :  { %v1532_v26 = vsel %vm1531_vm10, %v1530_v29, %v1442_v52  ;;  %v1478_v51 = vadd.f32 %v1477_v37, %v1476_v57  ;;  %v3172_v37 = vld [vmem:[%s5841_s10 + $0x90] sm:$0xff] }
 0x4d5   :  { %3287 = vmatprep.mubr.msk.f32.mxu1 %vm1155_vm12, %v1532_v26  ;;  %v1514_v19 = vadd.f32 %v1513_v8, %v1512_v27  ;;  %v3180_v8 = vld [vmem:[%s5841_s10 + $0xd0] sm:$0xff] }
 0x4d6   :  { %v1479_v60 = vrot.slane %v1478_v51, 1 }
 0x4d7   :  { %v1515_v4 = vrot.slane %v1514_v19, 2 }
 0x4d8   :  { %v1480_v39 = vadd.f32 %v1479_v60, %v1478_v51  ;;  %v3099_v60 = vld [vmem:[%s5842_s9 + $0x88] sm:$0xff] }
 0x4d9   :  { %v1516_v49 = vadd.f32 %v1515_v4, %v1514_v19 }
 0x4db   :  { %v1517_v22 = vrot.slane %v1516_v49, 1 }
 0x4dd   :  { %v1518_v34 = vadd.f32 %v1517_v22, %v1516_v49  ;;  %v2085_v49 = vld [vmem:[%s5841_s10 + $0x28] sm:$0xff] }
 0x4df   :  { %v1533_v47 = vsel %vm1519_vm13, %v1480_v39, %v1518_v34  ;;  %vm82_vm13 = vcmask 622160   ;;  %v3167_v39 = vld [vmem:[%s5841_s10 + $0x68] sm:$0xff] }
 0x4e0   :  { %3288 = vmatmul.mubr.msk.f32.vlgmr.msra.gmra.mrb[10].mxu1 %vm1155_vm12, %v1533_v47  ;;  %84 = vst.msk [vmem:[#allocation3 + $0x8] sm:$0xff] %vm82_vm13, %v5853_v44  ;;  %83 = vst.msk [vmem:[#allocation3] sm:$0xff] %vm82_vm13, %v5853_v44 }
 0x4e1   :  { %3291 = vmatpush3.msk.msra.mxu1 %vm1521_vm11, %v4514_v32  ;;  %85 = vst.msk [vmem:[#allocation3 + $0x10] sm:$0xff] %vm82_vm13, %v5853_v44  ;;  %86 = vst.msk [vmem:[#allocation3 + $0x18] sm:$0xff] %vm82_vm13, %v5853_v44  ;;  %v1859_v32 = vsub.s32 2, %v3955_v14  ;;  %vm2227_vm11 = vcmask 605200  }
 0x4e2   :  { %87 = vst.msk [vmem:[#allocation3 + $0x20] sm:$0xff] %vm82_vm13, %v5853_v44  ;;  %88 = vst.msk [vmem:[#allocation3 + $0x28] sm:$0xff] %vm82_vm13, %v5853_v44 }
 0x4e3   :  { %89 = vst.msk [vmem:[#allocation3 + $0x30] sm:$0xff] %vm82_vm13, %v5853_v44  ;;  %90 = vst.msk [vmem:[#allocation3 + $0x38] sm:$0xff] %vm82_vm13, %v5853_v44  ;;  %v1793_v44 = vld [vmem:[%s5842_s9 + $0x10] sm:$0xff] }
 0x59f   :  { %v1779_v25 = vpop.f32.mrb[22].mxu0 }
 0x5a0   :  { %v3299_v61 = vpop.f32.mrb[23].mxu0  ;;  %v5024_v54 = vrot.slane %v1779_v25, %v3958_v15  ;;  %v5030_v12 = vrot.slane %v1779_v25, %v3961_v16  ;;  %v5032_v11 = vrot.slane %v1779_v25, %v1859_v32  ;;  %v5034_v17 = vrot.slane %v1779_v25, %v1888_v63  ;;  %v1791_v25 = vld [vmem:[%s5842_s9] sm:$0xff] }
 0x5a2   :  { %5874 = vst [vmem:[#allocation8_spill] sm:$0xff] %v5024_v54  ;;  %5875 = vst [vmem:[#allocation9_spill] sm:$0xff] %v5030_v12  ;;  %v5068_v31 = vmul.f32 %v5024_v54, %v2081_v1  ;;  %v5080_v28 = vmul.f32 %v3163_v0, %v5030_v12  ;;  %v5083_v36 = vmul.f32 %v3171_v2, %v5032_v11  ;;  %v3139_v0 = vld [vmem:[%s5842_s9 + $0x1c8] sm:$0xff] }
 0x5a3   :  { %v5086_v42 = vmul.f32 %v3179_v35, %v5034_v17  ;;  %v5089_v55 = vmul.f32 %v5024_v54, %v2080_v56  ;;  %v5098_v46 = vmul.f32 %v3162_v58, %v5030_v12  ;;  %v5101_v30 = vmul.f32 %v3170_v23, %v5032_v11  ;;  %v3147_v23 = vld [vmem:[%s5842_s9 + $0x208] sm:$0xff] }
 0x5a4   :  { %v5104_v40 = vmul.f32 %v3178_v10, %v5034_v17  ;;  %v5107_v29 = vmul.f32 %v5024_v54, %v2083_v18  ;;  %v5116_v5 = vmul.f32 %v3165_v43, %v5030_v12  ;;  %v5119_v57 = vmul.f32 %v3173_v3, %v5032_v11  ;;  %v3090_v10 = vld [vmem:[%s5842_s9 + $0x40] sm:$0xff]  ;;  %v3155_v3 = vld [vmem:[%s5842_s9 + $0x248] sm:$0xff] }
 0x5a5   :  { %v5122_v27 = vmul.f32 %v3181_v53, %v5034_v17  ;;  %v5125_v52 = vmul.f32 %v5024_v54, %v2082_v20  ;;  %v5145_v4 = vmul.f32 %v3164_v24, %v5030_v12  ;;  %v5183_v2 = vmul.f32 %v3172_v37, %v5032_v11  ;;  %v3098_v20 = vld [vmem:[%s5842_s9 + $0x80] sm:$0xff]  ;;  %v1794_v24 = vld [vmem:[%s5842_s9 + $0x18] sm:$0xff] }
 0x5a6   :  { %v5186_v35 = vmul.f32 %v3180_v8, %v5034_v17  ;;  %v5204_v18 = vmul.f32 %v5024_v54, %v2085_v49  ;;  %v5207_v43 = vmul.f32 %v3167_v39, %v5030_v12  ;;  %v3114_v37 = vld [vmem:[%s5842_s9 + $0x100] sm:$0xff] }
 0x5a7   :  { %v3122_v8 = vld [vmem:[%s5842_s9 + $0x140] sm:$0xff] }
 0x5a8   :  { %5876 = vst [vmem:[#allocation10_spill] sm:$0xff] %v5207_v43 }
 0x5b3   :  { %v3289_v59 = vpop.f32.mrb[10].mxu1 }
 0x5b4   :  { %v1615_v45 = vpop.f32.mrb[11].mxu1 }
 0x5b5   :  { %3292 = vmatprep.mubr.msk.f32.mxu1 %vm64_vm3, %v1615_v45  ;;  %v3115_v45 = vld [vmem:[%s5842_s9 + $0x108] sm:$0xff] }
 0x5b6   :  { %3293 = vmatmul.mubr.msk.f32.vlgmr.msra.gmra.mrb[12].mxu1 %vm64_vm3, %v3289_v59  ;;  %v3107_v59 = vld [vmem:[%s5842_s9 + $0xc8] sm:$0xff] }
 0x689   :  { %v3294_v38 = vpop.f32.mrb[12].mxu1 }
 0x68a   :  { %v1700_v21 = vpop.f32.mrb[13].mxu1  ;;  %v5189_v56 = vrot.slane %v3294_v38, %v3958_v15  ;;  %v5192_v58 = vrot.slane %v3294_v38, %v3961_v16 }
 0x68b   :  { %v5134_v26 = vrot.slane %v1700_v21, %v3958_v15  ;;  %v5137_v51 = vrot.slane %v1700_v21, %v3961_v16  ;;  %v5139_v19 = vrot.slane %v1700_v21, %v1917_v6  ;;  %v5153_v22 = vrot.slane %v1700_v21, %v1946_v33  ;;  %v1783_v6 = vld [vmem:[%s5843_s11] sm:$0xff] }
 0x68c   :  { %v5155_v34 = vrot.slane %v1700_v21, %v1975_v48  ;;  %v5157_v47 = vrot.slane %v1700_v21, %v1859_v32  ;;  %v5159_v9 = vrot.slane %v1700_v21, %v1888_v63  ;;  %v5170_v61 = vrot.slane %v1700_v21, %v2004_v50  ;;  %v3123_v32 = vld [vmem:[%s5842_s9 + $0x148] sm:$0xff] }
 0x68d   :  { %v1804_v1 = vmul.f32 %v5134_v26, %v1792_v62  ;;  %v3131_v63 = vld [vmem:[%s5842_s9 + $0x188] sm:$0xff]  ;;  %v1833_v48 = vmul.f32 %v3091_v41, %v5137_v51  ;;  %v1920_v50 = vmul.f32 %v3115_v45, %v5139_v19  ;;  %v1803_v53 = vmul.f32 %v5134_v26, %v1791_v25  ;;  %v3106_v41 = vld [vmem:[%s5842_s9 + $0xc0] sm:$0xff]  ;;  %v1786_v25 = vld [vmem:[%s5843_s11 + $0x18] sm:$0xff] }
 0x68e   :  { %v1862_v38 = vmul.f32 %v3099_v60, %v5157_v47  ;;  %v1891_v62 = vmul.f32 %v3107_v59, %v5159_v9  ;;  %v1949_v21 = vmul.f32 %v3123_v32, %v5153_v22  ;;  %v5237_v49 = vmul.f32 %v3139_v0, %v5170_v61  ;;  %v3130_v45 = vld [vmem:[%s5842_s9 + $0x180] sm:$0xff] }
 0x68f   :  { %v1812_v33 = vadd.f32 %v1804_v1, %v1784_v7  ;;  %v5225_v7 = vmul.f32 %v3131_v63, %v5155_v34  ;;  %v1811_v39 = vadd.f32 %v1803_v53, %v1783_v6  ;;  %v1832_v59 = vmul.f32 %v3090_v10, %v5137_v51  ;;  %v3093_v1 = vld [vmem:[%s5842_s9 + $0x58] sm:$0xff]  ;;  %v3138_v6 = vld [vmem:[%s5842_s9 + $0x1c0] sm:$0xff] }
 0x690   :  { %v5250_v32 = vmul.f32 %v3147_v23, %v5189_v56  ;;  %v5253_v63 = vmul.f32 %v3155_v3, %v5192_v58  ;;  %v1861_v0 = vmul.f32 %v3098_v20, %v5157_v47  ;;  %v3146_v10 = vld [vmem:[%s5842_s9 + $0x200] sm:$0xff]  ;;  %v1890_v23 = vmul.f32 %v3106_v41, %v5159_v9  ;;  %v3101_v20 = vld [vmem:[%s5842_s9 + $0x98] sm:$0xff] }
 0x691   :  { %v1841_v60 = vadd.f32 %v1833_v48, %v1812_v33  ;;  %v1806_v33 = vmul.f32 %v5134_v26, %v1794_v24  ;;  %v1840_v53 = vadd.f32 %v1832_v59, %v1811_v39  ;;  %v1919_v13 = vmul.f32 %v3114_v37, %v5139_v19  ;;  %v3154_v3 = vld [vmem:[%s5842_s9 + $0x240] sm:$0xff]  ;;  %v3109_v37 = vld [vmem:[%s5842_s9 + $0xd8] sm:$0xff] }
 0x692   :  { %v1948_v24 = vmul.f32 %v3122_v8, %v5153_v22  ;;  %v1835_v41 = vmul.f32 %v3093_v1, %v5137_v51  ;;  %v3117_v39 = vld [vmem:[%s5842_s9 + $0x118] sm:$0xff]  ;;  %v2006_v15 = vmul.f32 %v3138_v6, %v5170_v61  ;;  %v5285_v16 = vmul.f32 %v3146_v10, %v5189_v56 }
 0x693   :  { %v1870_v48 = vadd.f32 %v1862_v38, %v1841_v60  ;;  %v1977_v38 = vmul.f32 %v3130_v45, %v5155_v34  ;;  %v1814_v60 = vadd.f32 %v1806_v33, %v1786_v25  ;;  %v1869_v14 = vadd.f32 %v1861_v0, %v1840_v53  ;;  %v3125_v8 = vld [vmem:[%s5842_s9 + $0x158] sm:$0xff]  ;;  %v1785_v45 = vld [vmem:[%s5843_s11 + $0x10] sm:$0xff] }
 0x694   :  { %v3092_v25 = vld [vmem:[%s5842_s9 + $0x50] sm:$0xff]  ;;  %v1864_v0 = vmul.f32 %v3101_v20, %v5157_v47  ;;  %v3133_v6 = vld [vmem:[%s5842_s9 + $0x198] sm:$0xff]  ;;  %v1805_v33 = vmul.f32 %v5134_v26, %v1793_v44  ;;  %v1893_v12 = vmul.f32 %v3109_v37, %v5159_v9  ;;  %v1951_v54 = vmul.f32 %v3125_v8, %v5153_v22 }
 0x695   :  { %v1899_v59 = vadd.f32 %v1891_v62, %v1870_v48  ;;  %v5297_v62 = vmul.f32 %v3154_v3, %v5192_v58  ;;  %v1843_v1 = vadd.f32 %v1835_v41, %v1814_v60  ;;  %v3141_v10 = vld [vmem:[%s5842_s9 + $0x1d8] sm:$0xff]  ;;  %v1898_v53 = vadd.f32 %v1890_v23, %v1869_v14  ;;  %v3100_v60 = vld [vmem:[%s5842_s9 + $0x90] sm:$0xff]  ;;  %v1796_v23 = vld [vmem:[%s5842_s9 + $0x28] sm:$0xff] }
 0x696   :  { %v1922_v3 = vmul.f32 %v3117_v39, %v5139_v19  ;;  %v3149_v20 = vld [vmem:[%s5842_s9 + $0x218] sm:$0xff]  ;;  %v1813_v14 = vadd.f32 %v1805_v33, %v1785_v45  ;;  %v2009_v43 = vmul.f32 %v3141_v10, %v5170_v61  ;;  %v3108_v8 = vld [vmem:[%s5842_s9 + $0xd0] sm:$0xff]  ;;  %v1863_v33 = vmul.f32 %v3100_v60, %v5157_v47 }
 0x697   :  { %v1928_v48 = vadd.f32 %v1920_v50, %v1899_v59  ;;  %v1872_v41 = vadd.f32 %v1864_v0, %v1843_v1  ;;  %v3157_v44 = vld [vmem:[%s5842_s9 + $0x258] sm:$0xff]  ;;  %v1834_v50 = vmul.f32 %v3092_v25, %v5137_v51  ;;  %v1927_v39 = vadd.f32 %v1919_v13, %v1898_v53  ;;  %v3116_v45 = vld [vmem:[%s5842_s9 + $0x110] sm:$0xff]  ;;  %v1788_v13 = vld [vmem:[%s5843_s11 + $0x28] sm:$0xff] }
 0x698   :  { %v1980_v59 = vmul.f32 %v3133_v6, %v5155_v34  ;;  %v2038_v25 = vmul.f32 %v3149_v20, %v5189_v56  ;;  %v3132_v53 = vld [vmem:[%s5842_s9 + $0x190] sm:$0xff]  ;;  %v1808_v20 = vmul.f32 %v5134_v26, %v1796_v23 }
 0x699   :  { %v1957_v37 = vadd.f32 %v1949_v21, %v1928_v48  ;;  %v1901_v1 = vadd.f32 %v1893_v12, %v1872_v41  ;;  %v1842_v0 = vadd.f32 %v1834_v50, %v1813_v14  ;;  %v3095_v21 = vld [vmem:[%s5842_s9 + $0x68] sm:$0xff]  ;;  %v1956_v10 = vadd.f32 %v1948_v24, %v1927_v39  ;;  %v3124_v12 = vld [vmem:[%s5842_s9 + $0x150] sm:$0xff] }
 0x69a   :  { %v2067_v48 = vmul.f32 %v3157_v44, %v5192_v58  ;;  %v1892_v14 = vmul.f32 %v3108_v8, %v5159_v9  ;;  %v1921_v50 = vmul.f32 %v3116_v45, %v5139_v19  ;;  %v1816_v23 = vadd.f32 %v1808_v20, %v1788_v13 }
 0x69b   :  { %v1986_v6 = vadd.f32 %v5225_v7, %v1957_v37  ;;  %v1930_v60 = vadd.f32 %v1922_v3, %v1901_v1  ;;  %v1871_v41 = vadd.f32 %v1863_v33, %v1842_v0  ;;  %v3103_v7 = vld [vmem:[%s5842_s9 + $0xa8] sm:$0xff]  ;;  %v1985_v44 = vadd.f32 %v1977_v38, %v1956_v10  ;;  %v3140_v37 = vld [vmem:[%s5842_s9 + $0x1d0] sm:$0xff] }
 0x69c   :  { %v3148_v3 = vld [vmem:[%s5842_s9 + $0x210] sm:$0xff]  ;;  %v1837_v39 = vmul.f32 %v3095_v21, %v5137_v51  ;;  %v1950_v1 = vmul.f32 %v3124_v12, %v5153_v22  ;;  %v1979_v0 = vmul.f32 %v3132_v53, %v5155_v34  ;;  %v1866_v21 = vmul.f32 %v3103_v7, %v5157_v47 }
 0x69d   :  { %v2015_v24 = vadd.f32 %v5237_v49, %v1986_v6  ;;  %v1959_v8 = vadd.f32 %v1951_v54, %v1930_v60  ;;  %v1900_v45 = vadd.f32 %v1892_v14, %v1871_v41  ;;  %v3111_v49 = vld [vmem:[%s5842_s9 + $0xe8] sm:$0xff]  ;;  %v2014_v33 = vadd.f32 %v2006_v15, %v1985_v44  ;;  %v3156_v6 = vld [vmem:[%s5842_s9 + $0x250] sm:$0xff]  ;;  %v1795_v54 = vld [vmem:[%s5842_s9 + $0x20] sm:$0xff] }
 0x69e   :  { %v1845_v13 = vadd.f32 %v1837_v39, %v1816_v23  ;;  %v2008_v53 = vmul.f32 %v3140_v37, %v5170_v61  ;;  %v2037_v20 = vmul.f32 %v3148_v3, %v5189_v56  ;;  %v3119_v15 = vld [vmem:[%s5842_s9 + $0x128] sm:$0xff]  ;;  %v1895_v14 = vmul.f32 %v3111_v49, %v5159_v9 }
 0x69f   :  { %v2044_v38 = vadd.f32 %v5250_v32, %v2015_v24  ;;  %v1988_v10 = vadd.f32 %v1980_v59, %v1959_v8  ;;  %v1929_v12 = vadd.f32 %v1921_v50, %v1900_v45  ;;  %v2043_v60 = vadd.f32 %v5285_v16, %v2014_v33  ;;  %v1787_v59 = vld [vmem:[%s5843_s11 + $0x20] sm:$0xff] }
 0x6a0   :  { %v1874_v41 = vadd.f32 %v1866_v21, %v1845_v13  ;;  %v3094_v50 = vld [vmem:[%s5842_s9 + $0x60] sm:$0xff]  ;;  %v2066_v44 = vmul.f32 %v3156_v6, %v5192_v58  ;;  %v1807_v16 = vmul.f32 %v5134_v26, %v1795_v54  ;;  %v1924_v39 = vmul.f32 %v3119_v15, %v5139_v19  ;;  %v3143_v21 = vld [vmem:[%s5842_s9 + $0x1e8] sm:$0xff] }
 0x6a1   :  { %v2073_v32 = vadd.f32 %v5253_v63, %v2044_v38  ;;  %v2017_v7 = vadd.f32 %v2009_v43, %v1988_v10  ;;  %v1958_v24 = vadd.f32 %v1950_v1, %v1929_v12  ;;  %v3127_v63 = vld [vmem:[%s5842_s9 + $0x168] sm:$0xff]  ;;  %v2072_v3 = vadd.f32 %v5297_v62, %v2043_v60  ;;  %v3102_v43 = vld [vmem:[%s5842_s9 + $0xa0] sm:$0xff] }
 0x6a2   :  { %v1903_v23 = vadd.f32 %v1895_v14, %v1874_v41  ;;  %v3135_v1 = vld [vmem:[%s5842_s9 + $0x1a8] sm:$0xff]  ;;  %v1815_v49 = vadd.f32 %v1807_v16, %v1787_v59  ;;  %v1836_v38 = vmul.f32 %v3094_v50, %v5137_v51  ;;  %v1953_v6 = vmul.f32 %v3127_v63, %v5153_v22  ;;  %v3110_v13 = vld [vmem:[%s5842_s9 + $0xe0] sm:$0xff] }
 0x6a3   :  { %v2101_v37 = vadd.f32 %v5068_v31, %v2073_v32  ;;  %v2046_v8 = vadd.f32 %v2038_v25, %v2017_v7  ;;  %v1987_v45 = vadd.f32 %v1979_v0, %v1958_v24  ;;  %v2100_v62 = vadd.f32 %v5089_v55, %v2072_v3  ;;  %v3118_v32 = vld [vmem:[%s5842_s9 + $0x120] sm:$0xff]  ;;  %v3151_v60 = vld [vmem:[%s5842_s9 + $0x228] sm:$0xff] }
 0x6a4   :  { %v1932_v33 = vadd.f32 %v1924_v39, %v1903_v23  ;;  %v1844_v54 = vadd.f32 %v1836_v38, %v1815_v49  ;;  %v1865_v10 = vmul.f32 %v3102_v43, %v5157_v47  ;;  %v1982_v15 = vmul.f32 %v3135_v1, %v5155_v34  ;;  %v3159_v63 = vld [vmem:[%s5842_s9 + $0x268] sm:$0xff]  ;;  %v3134_v23 = vld [vmem:[%s5842_s9 + $0x1a0] sm:$0xff]  ;;  %v3105_v49 = vld [vmem:[%s5842_s9 + $0xb8] sm:$0xff] }
 0x6a5   :  { %v2130_v31 = vadd.f32 %v5080_v28, %v2101_v37  ;;  %v2075_v25 = vadd.f32 %v2067_v48, %v2046_v8  ;;  %v2016_v0 = vadd.f32 %v2008_v53, %v1987_v45  ;;  %v2129_v55 = vadd.f32 %v5098_v46, %v2100_v62  ;;  %v3175_v45 = vld [vmem:[%s5841_s10 + $0xa8] sm:$0xff] }
 0x6a6   :  { %v1961_v12 = vadd.f32 %v1953_v6, %v1932_v33  ;;  %v1873_v41 = vadd.f32 %v1865_v10, %v1844_v54  ;;  %v1894_v14 = vmul.f32 %v3110_v13, %v5159_v9  ;;  %v2011_v7 = vmul.f32 %v3143_v21, %v5170_v61  ;;  %v3113_v21 = vld [vmem:[%s5842_s9 + $0xf8] sm:$0xff]  ;;  %v1797_v54 = vld [vmem:[%s5842_s9 + $0x30] sm:$0xff] }
 0x6a7   :  { %v2159_v28 = vadd.f32 %v5083_v36, %v2130_v31  ;;  %v2103_v48 = vadd.f32 %v5107_v29, %v2075_v25  ;;  %v2045_v53 = vadd.f32 %v2037_v20, %v2016_v0  ;;  %v1798_v36 = vld [vmem:[%s5842_s9 + $0x38] sm:$0xff]  ;;  %v2158_v59 = vadd.f32 %v5101_v30, %v2129_v55  ;;  %v3126_v29 = vld [vmem:[%s5842_s9 + $0x160] sm:$0xff] }
 0x6a8   :  { %v1990_v50 = vadd.f32 %v1982_v15, %v1961_v12  ;;  %v1902_v16 = vadd.f32 %v1894_v14, %v1873_v41  ;;  %v1923_v37 = vmul.f32 %v3118_v32, %v5139_v19  ;;  %v3097_v30 = vld [vmem:[%s5842_s9 + $0x78] sm:$0xff]  ;;  %v2040_v3 = vmul.f32 %v3151_v60, %v5189_v56  ;;  %v1789_v60 = vld [vmem:[%s5843_s11 + $0x30] sm:$0xff] }
 0x6a9   :  { %v2188_v46 = vadd.f32 %v5086_v42, %v2159_v28  ;;  %v2132_v20 = vadd.f32 %v5116_v5, %v2103_v48  ;;  %v2074_v24 = vadd.f32 %v2066_v44, %v2045_v53  ;;  %v1790_v42 = vld [vmem:[%s5843_s11 + $0x38] sm:$0xff]  ;;  %v2187_v5 = vadd.f32 %v5104_v40, %v2158_v59  ;;  %v3096_v41 = vld [vmem:[%s5842_s9 + $0x70] sm:$0xff] }
 0x6aa   :  { %v2019_v44 = vadd.f32 %v2011_v7, %v1990_v50  ;;  %v1810_v39 = vmul.f32 %v5134_v26, %v1798_v36  ;;  %v1931_v1 = vadd.f32 %v1923_v37, %v1902_v16  ;;  %v1952_v40 = vmul.f32 %v3126_v29, %v5153_v22  ;;  %v3121_v12 = vld [vmem:[%s5842_s9 + $0x138] sm:$0xff]  ;;  %v3158_v36 = vld [vmem:[%s5842_s9 + $0x260] sm:$0xff]  ;;  %v5877_v16 = vld [vmem:[#allocation10_spill] sm:$0xff] }
 0x6ab   :  { %2205 = vrot.lane.b32.xlu1 %v2188_v46, %s3825_s28  ;;  %v2161_v43 = vadd.f32 %v5119_v57, %v2132_v20  ;;  %v2102_v8 = vadd.f32 %v5125_v52, %v2074_v24  ;;  %2203 = vrot.lane.b32.xlu0 %v2187_v5, %s3825_s28  ;;  %v2069_v31 = vmul.f32 %v3159_v63, %v5192_v58  ;;  %v3183_v57 = vld [vmem:[%s5841_s10 + $0xe8] sm:$0xff]  ;;  %v3142_v52 = vld [vmem:[%s5842_s9 + $0x1e0] sm:$0xff] }
 0x6ac   :  { %v2048_v38 = vadd.f32 %v2040_v3, %v2019_v44  ;;  %v1818_v62 = vadd.f32 %v1810_v39, %v1790_v42  ;;  %v1839_v33 = vmul.f32 %v3097_v30, %v5137_v51  ;;  %v1960_v25 = vadd.f32 %v1952_v40, %v1931_v1  ;;  %v3129_v50 = vld [vmem:[%s5842_s9 + $0x178] sm:$0xff]  ;;  %v3104_v63 = vld [vmem:[%s5842_s9 + $0xb0] sm:$0xff] }
 0x6ad   :  { %v2190_v6 = vadd.f32 %v5122_v27, %v2161_v43  ;;  %v2131_v13 = vadd.f32 %v5145_v4, %v2102_v8  ;;  %v1981_v0 = vmul.f32 %v3134_v23, %v5155_v34  ;;  %v2155_v28 = vmul.f32 %v3175_v45, %v5032_v11  ;;  %v3150_v27 = vld [vmem:[%s5842_s9 + $0x220] sm:$0xff]  ;;  %v3137_v30 = vld [vmem:[%s5842_s9 + $0x1b8] sm:$0xff]  ;;  %v3112_v43 = vld [vmem:[%s5842_s9 + $0xf0] sm:$0xff] }
 0x6ae   :  { %v2077_v10 = vadd.f32 %v2069_v31, %v2048_v38  ;;  %v1847_v55 = vadd.f32 %v1839_v33, %v1818_v62  ;;  %v1868_v4 = vmul.f32 %v3105_v49, %v5157_v47  ;;  %v2184_v32 = vmul.f32 %v3183_v57, %v5034_v17  ;;  %v5878_v3 = vld [vmem:[#allocation8_spill] sm:$0xff]  ;;  %v3120_v57 = vld [vmem:[%s5842_s9 + $0x130] sm:$0xff] }
 0x6af   :  { %2209 = vrot.lane.b32.xlu1 %v2190_v6, %s3825_s28  ;;  %v2160_v15 = vadd.f32 %v5183_v2, %v2131_v13  ;;  %v1989_v48 = vadd.f32 %v1981_v0, %v1960_v25  ;;  %v2010_v53 = vmul.f32 %v3142_v52, %v5170_v61  ;;  %v2084_v2 = vld [vmem:[%s5841_s10 + $0x20] sm:$0xff]  ;;  %v1897_v59 = vmul.f32 %v3113_v21, %v5159_v9  ;;  %v3145_v31 = vld [vmem:[%s5842_s9 + $0x1f8] sm:$0xff] }
 0x6b0   :  { %v2105_v14 = vadd.f32 %v5204_v18, %v2077_v10  ;;  %v1876_v46 = vadd.f32 %v1868_v4, %v1847_v55  ;;  %v1809_v7 = vmul.f32 %v5134_v26, %v1797_v54  ;;  %v2039_v20 = vmul.f32 %v3150_v27, %v5189_v56  ;;  %v3166_v45 = vld [vmem:[%s5841_s10 + $0x60] sm:$0xff]  ;;  %v3153_v21 = vld [vmem:[%s5842_s9 + $0x238] sm:$0xff]  ;;  %v3128_v54 = vld [vmem:[%s5842_s9 + $0x170] sm:$0xff] }
 0x6b1   :  { %v2189_v29 = vadd.f32 %v5186_v35, %v2160_v15  ;;  %v2018_v18 = vadd.f32 %v2010_v53, %v1989_v48  ;;  %v1926_v24 = vmul.f32 %v3121_v12, %v5139_v19  ;;  %v1838_v26 = vmul.f32 %v3096_v41, %v5137_v51  ;;  %v3174_v62 = vld [vmem:[%s5841_s10 + $0xa0] sm:$0xff]  ;;  %v2087_v27 = vld [vmem:[%s5841_s10 + $0x38] sm:$0xff]  ;;  %v3136_v48 = vld [vmem:[%s5842_s9 + $0x1b0] sm:$0xff] }
 0x6b2   :  { %v2134_v37 = vadd.f32 %v5877_v16, %v2105_v14  ;;  %v1905_v42 = vadd.f32 %v1897_v59, %v1876_v46  ;;  %v1817_v5 = vadd.f32 %v1809_v7, %v1789_v60  ;;  %v2068_v44 = vmul.f32 %v3158_v36, %v5192_v58  ;;  %v5879_v25 = vld [vmem:[#allocation9_spill] sm:$0xff]  ;;  %v3144_v46 = vld [vmem:[%s5842_s9 + $0x1f0] sm:$0xff] }
 0x6b3   :  { %2207 = vrot.lane.b32.xlu0 %v2189_v29, %s3825_s28  ;;  %v2047_v35 = vadd.f32 %v2039_v20, %v2018_v18  ;;  %v2096_v23 = vmul.f32 %v5878_v3, %v2084_v2  ;;  %v1955_v39 = vmul.f32 %v3129_v50, %v5153_v22  ;;  %v1867_v40 = vmul.f32 %v3104_v63, %v5157_v47  ;;  %v3182_v10 = vld [vmem:[%s5841_s10 + $0xe0] sm:$0xff]  ;;  %v3152_v20 = vld [vmem:[%s5842_s9 + $0x230] sm:$0xff]  ;;  %v3177_v63 = vld [vmem:[%s5841_s10 + $0xb8] sm:$0xff] }
 0x6b4   :  { %v2163_v8 = vadd.f32 %v2155_v28, %v2134_v37  ;;  %v1934_v1 = vadd.f32 %v1926_v24, %v1905_v42  ;;  %v1846_v51 = vadd.f32 %v1838_v26, %v1817_v5  ;;  %v1984_v38 = vmul.f32 %v3137_v30, %v5155_v34  ;;  %v2086_v42 = vld [vmem:[%s5841_s10 + $0x30] sm:$0xff] }
 0x6b5   :  { %v2076_v49 = vadd.f32 %v2068_v44, %v2047_v35  ;;  %v1896_v47 = vmul.f32 %v3112_v43, %v5159_v9  ;;  %v2125_v0 = vmul.f32 %v3166_v45, %v5879_v25  ;;  %v2013_v9 = vmul.f32 %v3145_v31, %v5170_v61  ;;  %v3168_v45 = vld [vmem:[%s5841_s10 + $0x70] sm:$0xff] }
 0x6b6   :  { %v2192_v52 = vadd.f32 %v2184_v32, %v2163_v8  ;;  %v1963_v33 = vadd.f32 %v1955_v39, %v1934_v1  ;;  %v1875_v6 = vadd.f32 %v1867_v40, %v1846_v51  ;;  %v1925_v4 = vmul.f32 %v3120_v57, %v5139_v19  ;;  %v3161_v32 = vld [vmem:[%s5842_s9 + $0x278] sm:$0xff]  ;;  %v3176_v40 = vld [vmem:[%s5841_s10 + $0xb0] sm:$0xff] }
 0x6b7   :  { %v2104_v13 = vadd.f32 %v2096_v23, %v2076_v49  ;;  %v2154_v15 = vmul.f32 %v3174_v62, %v5032_v11  ;;  %v2042_v60 = vmul.f32 %v3153_v21, %v5189_v56  ;;  %v1954_v14 = vmul.f32 %v3128_v54, %v5153_v22  ;;  %v3169_v22 = vld [vmem:[%s5841_s10 + $0x78] sm:$0xff] }
 0x6b8   :  { %2213 = vrot.lane.b32.xlu1 %v2192_v52, %s3825_s28  ;;  %v1992_v28 = vadd.f32 %v1984_v38, %v1963_v33  ;;  %v1904_v55 = vadd.f32 %v1896_v47, %v1875_v6  ;;  %v2183_v19 = vmul.f32 %v3182_v10, %v5034_v17  ;;  %v2099_v2 = vmul.f32 %v5878_v3, %v2087_v27 }
 0x6b9   :  { %v2133_v12 = vadd.f32 %v2125_v0, %v2104_v13  ;;  %v2071_v50 = vmul.f32 %v3161_v32, %v5192_v58  ;;  %v1983_v29 = vmul.f32 %v3136_v48, %v5155_v34  ;;  %v2012_v37 = vmul.f32 %v3144_v46, %v5170_v61  ;;  %v3160_v34 = vld [vmem:[%s5842_s9 + $0x270] sm:$0xff]  ;;  %v3185_v61 = vld [vmem:[%s5841_s10 + $0xf8] sm:$0xff]  ;;  %v2349_v46 = vld [vmem:[%s5845_s14 + $0x8] sm:$0xff] }
 0x6ba   :  { %v2021_v53 = vadd.f32 %v2013_v9, %v1992_v28  ;;  %v1933_v41 = vadd.f32 %v1925_v4, %v1904_v55  ;;  %v2128_v5 = vmul.f32 %v3169_v22, %v5879_v25  ;;  %v2041_v35 = vmul.f32 %v3152_v20, %v5189_v56  ;;  %2461 = vmatprep.mubr.f32.mxu1 %v2349_v46 }
 0x6bb   :  { %v2162_v36 = vadd.f32 %v2154_v15, %v2133_v12  ;;  %v2157_v44 = vmul.f32 %v3177_v63, %v5032_v11  ;;  %v2070_v43 = vmul.f32 %v3160_v34, %v5192_v58  ;;  %v2098_v8 = vmul.f32 %v5878_v3, %v2086_v42  ;;  %v3184_v58 = vld [vmem:[%s5841_s10 + $0xf0] sm:$0xff] }
 0x6bc   :  { %v2050_v59 = vadd.f32 %v2042_v60, %v2021_v53  ;;  %v1962_v7 = vadd.f32 %v1954_v14, %v1933_v41  ;;  %v2186_v51 = vmul.f32 %v3185_v61, %v5034_v17  ;;  %v2127_v31 = vmul.f32 %v3168_v45, %v5879_v25 }
 0x6bd   :  { %v2191_v18 = vadd.f32 %v2183_v19, %v2162_v36  ;;  %v2156_v57 = vmul.f32 %v3176_v40, %v5032_v11  ;;  %v2185_v62 = vmul.f32 %v3184_v58, %v5034_v17  ;;  %v2360_v19 = vld [vmem:[%s5844_s15] sm:$0xff] }
 0x6be   :  { %v2079_v24 = vadd.f32 %v2071_v50, %v2050_v59  ;;  %v1991_v16 = vadd.f32 %v1983_v29, %v1962_v7  ;;  %v2350_v59 = vld [vmem:[%s5845_s14 + $0x10] sm:$0xff]  ;;  %v2361_v50 = vld [vmem:[%s5844_s15 + $0x8] sm:$0xff]  ;;  %v2363_v7 = vld [vmem:[%s5844_s15 + $0x18] sm:$0xff] }
 0x6bf   :  { %2211 = vrot.lane.b32.xlu0 %v2191_v18, %s3825_s28  ;;  %3316 = vmatprep.mubr.msk.f32.mxu0 %vm2384_vm15, %v2350_v59  ;;  %v2572_v59 = vld [vmem:[%s5846_s16 + $0x8] sm:$0xff] }
 0x6c0   :  { %v2107_v30 = vadd.f32 %v2099_v2, %v2079_v24  ;;  %v2020_v26 = vadd.f32 %v2012_v37, %v1991_v16  ;;  %v2362_v2 = vld [vmem:[%s5844_s15 + $0x10] sm:$0xff] }
 0x6c2   :  { %v2136_v23 = vadd.f32 %v2128_v5, %v2107_v30  ;;  %v2049_v39 = vadd.f32 %v2041_v35, %v2020_v26 }
 0x6c4   :  { %v2165_v1 = vadd.f32 %v2157_v44, %v2136_v23  ;;  %v2078_v56 = vadd.f32 %v2070_v43, %v2049_v39 }
 0x6c6   :  { %v2194_v49 = vadd.f32 %v2186_v51, %v2165_v1  ;;  %v2106_v38 = vadd.f32 %v2098_v8, %v2078_v56 }
 0x6c8   :  { %2217 = vrot.lane.b32.xlu1 %v2194_v49, %s3825_s28  ;;  %v2135_v3 = vadd.f32 %v2127_v31, %v2106_v38 }
 0x6ca   :  { %v2164_v52 = vadd.f32 %v2156_v57, %v2135_v3 }
 0x6cc   :  { %v2193_v33 = vadd.f32 %v2185_v62, %v2164_v52 }
 0x6ce   :  { %2215 = vrot.lane.b32.xlu0 %v2193_v33, %s3825_s28 }
 0x71d   :  { %v2206_v6 = vpop.permute.xlu1 %2205  ;;  %v2204_v47 = vpop.permute.xlu0 %2203 }
 0x71e   :  { %2229 = vst.msk [vmem:[#allocation3 + $0x8] sm:$0xff] %vm2227_vm11, %v2206_v6  ;;  %2228 = vst.msk [vmem:[#allocation3] sm:$0xff] %vm2227_vm11, %v2204_v47 }
 0x721   :  { %v2210_v13 = vpop.permute.xlu1 %2209 }
 0x722   :  { %2231 = vst.msk [vmem:[#allocation3 + $0x18] sm:$0xff] %vm2227_vm11, %v2210_v13 }
 0x725   :  { %v2237_v25 = vld [vmem:[#allocation3 + $0x8] sm:$0xff]  ;;  %v2208_v0 = vpop.permute.xlu0 %2207  ;;  %v2236_v11 = vld [vmem:[#allocation3] sm:$0xff] }
 0x726   :  { %2230 = vst.msk [vmem:[#allocation3 + $0x10] sm:$0xff] %vm2227_vm11, %v2208_v0  ;;  %v3647_v21 = vpack.i.bf16 %v2237_v25, %v2236_v11  ;;  %v3404_v17 = vpack.c.bf16 %v2237_v25, %v2236_v11 }
 0x728   :  { %3648 = vrot.lane.b32.xlu0 %v3647_v21, %s3821_s23 }
 0x729   :  { %v2239_v10 = vld [vmem:[#allocation3 + $0x18] sm:$0xff] }
 0x72a   :  { %v2214_v54 = vpop.permute.xlu1 %2213 }
 0x72b   :  { %2233 = vst.msk [vmem:[#allocation3 + $0x28] sm:$0xff] %vm2227_vm11, %v2214_v54 }
 0x72d   :  { %v2238_v28 = vld [vmem:[#allocation3 + $0x10] sm:$0xff] }
 0x72e   :  { %v3652_v9 = vpack.i.bf16 %v2239_v10, %v2238_v28  ;;  %v3408_v27 = vpack.c.bf16 %v2239_v10, %v2238_v28 }
 0x730   :  { %3653 = vrot.lane.b32.xlu1 %v3652_v9, %s3821_s23 }
 0x731   :  { %v2212_v55 = vpop.permute.xlu0 %2211 }
 0x732   :  { %2232 = vst.msk [vmem:[#allocation3 + $0x20] sm:$0xff] %vm2227_vm11, %v2212_v55  ;;  %v2241_v4 = vld [vmem:[#allocation3 + $0x28] sm:$0xff] }
 0x739   :  { %v2240_v12 = vld [vmem:[#allocation3 + $0x20] sm:$0xff] }
 0x73a   :  { %v2218_v15 = vpop.permute.xlu1 %2217  ;;  %v3657_v32 = vpack.i.bf16 %v2241_v4, %v2240_v12  ;;  %v3412_v48 = vpack.c.bf16 %v2241_v4, %v2240_v12 }
 0x73b   :  { %2235 = vst.msk [vmem:[#allocation3 + $0x38] sm:$0xff] %vm2227_vm11, %v2218_v15 }
 0x73c   :  { %3658 = vrot.lane.b32.xlu0 %v3657_v32, %s3821_s23 }
 0x740   :  { %v2216_v53 = vpop.permute.xlu0 %2215  ;;  %3668 = vrot.lane.b32.xlu0 %v3647_v21, %s3822_s24 }
 0x741   :  { %2234 = vst.msk [vmem:[#allocation3 + $0x30] sm:$0xff] %vm2227_vm11, %v2216_v53 }
 0x742   :  { %v5626_v60 = vld [vmem:[#allocation3 + $0x38] sm:$0xff] }
 0x744   :  { %3678 = vrot.lane.b32.xlu0 %v3652_v9, %s3822_s24 }
 0x748   :  { %v5628_v41 = vld [vmem:[#allocation3 + $0x30] sm:$0xff]  ;;  %3688 = vrot.lane.b32.xlu0 %v3652_v9, %s3820_s0 }
 0x749   :  { %v3662_v14 = vpack.i.bf16 %v5626_v60, %v5628_v41  ;;  %v3416_v36 = vpack.c.bf16 %v5626_v60, %v5628_v41 }
 0x74b   :  { %3663 = vrot.lane.b32.xlu1 %v3662_v14, %s3821_s23 }
 0x74c   :  { %3698 = vrot.lane.b32.xlu0 %v3652_v9, %s3823_s25 }
 0x74f   :  { %3673 = vrot.lane.b32.xlu1 %v3647_v21, %s3820_s0 }
 0x750   :  { %3708 = vrot.lane.b32.xlu0 %v3662_v14, %s3822_s24 }
 0x753   :  { %3683 = vrot.lane.b32.xlu1 %v3647_v21, %s3823_s25 }
 0x754   :  { %3718 = vrot.lane.b32.xlu0 %v3662_v14, %s3820_s0 }
 0x757   :  { %3693 = vrot.lane.b32.xlu1 %v3657_v32, %s3822_s24 }
 0x758   :  { %2366 = vperm.xlu0 %3551, %v2360_v19  }
 0x75b   :  { %3703 = vrot.lane.b32.xlu1 %v3657_v32, %s3820_s0 }
 0x75c   :  { %2376 = vperm.xlu0 %3551, %v2362_v2  }
 0x75f   :  { %3713 = vrot.lane.b32.xlu1 %v3657_v32, %s3823_s25 }
 0x763   :  { %3723 = vrot.lane.b32.xlu1 %v3662_v14, %s3823_s25 }
 0x767   :  { %2371 = vperm.xlu1 %3550, %v2361_v50   ;;  %v2574_v50 = vld [vmem:[%s5846_s16 + $0x18] sm:$0xff] }
 0x76b   :  { %2381 = vperm.xlu1 %3550, %v2363_v7  }
 0x79a   :  { %v3649_v29 = vpop.permute.xlu0 %3648 }
 0x79b   :  { %v3651_v18 = vunpack.i.h.bf16 %v3649_v29  ;;  %v3650_v22 = vunpack.i.l.bf16 %v3649_v29 }
 0x79d   :  { %v3402_v20 = vpack.c.bf16 %v3651_v18, %v3650_v22  ;;  %v2348_v18 = vld [vmem:[%s5845_s14] sm:$0xff] }
 0x79e   :  { %v2352_v22 = vld [vmem:[%s5845_s14 + $0x20] sm:$0xff] }
 0x79f   :  { %3403 = vmatprep.subr.bf16.mxu1 %v3402_v20 }
 0x7a0   :  { %3405 = vmatpush3.bf16.msra.mxu1 %v3404_v17 }
 0x7a2   :  { %v3654_v24 = vpop.permute.xlu1 %3653 }
 0x7a3   :  { %v3656_v63 = vunpack.i.h.bf16 %v3654_v24  ;;  %v3655_v16 = vunpack.i.l.bf16 %v3654_v24  ;;  %v3450_v24 = vpack.c.bf16 %v2574_v50, %v2572_v59 }
 0x7a5   :  { %v3406_v37 = vpack.c.bf16 %v3656_v63, %v3655_v16  ;;  %v2571_v63 = vld [vmem:[%s5846_s16] sm:$0xff]  ;;  %v2573_v16 = vld [vmem:[%s5846_s16 + $0x10] sm:$0xff] }
 0x7a7   :  { %3407 = vmatprep.subr.bf16.mxu1 %v3406_v37  ;;  %v2576_v37 = vld [vmem:[%s5846_s16 + $0x28] sm:$0xff] }
 0x7a8   :  { %3409 = vmatpush3.bf16.msra.mxu1 %v3408_v27 }
 0x7ae   :  { %v3659_v34 = vpop.permute.xlu0 %3658 }
 0x7af   :  { %v3661_v42 = vunpack.i.h.bf16 %v3659_v34  ;;  %v3660_v30 = vunpack.i.l.bf16 %v3659_v34  ;;  %v2578_v34 = vld [vmem:[%s5846_s16 + $0x38] sm:$0xff] }
 0x7b1   :  { %v3410_v5 = vpack.c.bf16 %v3661_v42, %v3660_v30  ;;  %v2351_v42 = vld [vmem:[%s5845_s14 + $0x18] sm:$0xff]  ;;  %v2353_v30 = vld [vmem:[%s5845_s14 + $0x28] sm:$0xff] }
 0x7b2   :  { %v3669_v26 = vpop.permute.xlu0 %3668 }
 0x7b3   :  { %3411 = vmatprep.subr.bf16.mxu1 %v3410_v5  ;;  %v3671_v23 = vunpack.i.h.bf16 %v3669_v26  ;;  %v3670_v39 = vunpack.i.l.bf16 %v3669_v26  ;;  %v2355_v5 = vld [vmem:[%s5845_s14 + $0x38] sm:$0xff]  ;;  %v3452_v26 = vpack.c.bf16 %v2573_v16, %v2571_v63 }
 0x7b4   :  { %3413 = vmatpush3.bf16.msra.mxu1 %v3412_v48 }
 0x7b5   :  { %v3418_v51 = vpack.c.bf16 %v3671_v23, %v3670_v39  ;;  %v2577_v23 = vld [vmem:[%s5846_s16 + $0x30] sm:$0xff] }
 0x7b6   :  { %v3679_v35 = vpop.permute.xlu0 %3678  ;;  %v2354_v39 = vld [vmem:[%s5845_s14 + $0x30] sm:$0xff] }
 0x7b7   :  { %v3681_v38 = vunpack.i.h.bf16 %v3679_v35  ;;  %v3680_v31 = vunpack.i.l.bf16 %v3679_v35  ;;  %v2356_v35 = vld [vmem:[%s5845_s14 + $0x40] sm:$0xff] }
 0x7b9   :  { %v3422_v47 = vpack.c.bf16 %v3681_v38, %v3680_v31  ;;  %v2581_v31 = vld [vmem:[%s5846_s16 + $0x50] sm:$0xff] }
 0x7ba   :  { %v3689_v44 = vpop.permute.xlu0 %3688 }
 0x7bb   :  { %v3691_v58 = vunpack.i.h.bf16 %v3689_v44  ;;  %v3690_v3 = vunpack.i.l.bf16 %v3689_v44  ;;  %v3454_v44 = vpack.c.bf16 %v2578_v34, %v2576_v37 }
 0x7bd   :  { %v3664_v61 = vpop.permute.xlu1 %3663  ;;  %v3424_v0 = vpack.c.bf16 %v3691_v58, %v3690_v3  ;;  %v2584_v3 = vld [vmem:[%s5846_s16 + $0x68] sm:$0xff] }
 0x7be   :  { %v3666_v43 = vunpack.i.h.bf16 %v3664_v61  ;;  %v3665_v8 = vunpack.i.l.bf16 %v3664_v61  ;;  %v3699_v45 = vpop.permute.xlu0 %3698  ;;  %v2575_v61 = vld [vmem:[%s5846_s16 + $0x20] sm:$0xff] }
 0x7bf   :  { %v3701_v52 = vunpack.i.h.bf16 %v3699_v45  ;;  %v3700_v62 = vunpack.i.l.bf16 %v3699_v45  ;;  %v3456_v45 = vpack.c.bf16 %v2577_v23, %v2575_v61 }
 0x7c0   :  { %v3414_v1 = vpack.c.bf16 %v3666_v43, %v3665_v8  ;;  %v2358_v43 = vld [vmem:[%s5845_s14 + $0x50] sm:$0xff]  ;;  %v2359_v8 = vld [vmem:[%s5845_s14 + $0x58] sm:$0xff] }
 0x7c1   :  { %v3674_v56 = vpop.permute.xlu1 %3673  ;;  %v3438_v21 = vpack.c.bf16 %v3701_v52, %v3700_v62  ;;  %v2583_v52 = vld [vmem:[%s5846_s16 + $0x60] sm:$0xff] }
 0x7c2   :  { %v3676_v40 = vunpack.i.h.bf16 %v3674_v56  ;;  %v3675_v49 = vunpack.i.l.bf16 %v3674_v56  ;;  %3415 = vmatprep.subr.bf16.mxu1 %v3414_v1  ;;  %v3709_v6 = vpop.permute.xlu0 %3708  ;;  %v2357_v1 = vld [vmem:[%s5845_s14 + $0x48] sm:$0xff] }
 0x7c3   :  { %3417 = vmatpush3.bf16.msra.mxu1 %v3416_v36  ;;  %v3711_v28 = vunpack.i.h.bf16 %v3709_v6  ;;  %v3710_v9 = vunpack.i.l.bf16 %v3709_v6  ;;  %v2580_v56 = vld [vmem:[%s5846_s16 + $0x48] sm:$0xff] }
 0x7c4   :  { %v3420_v57 = vpack.c.bf16 %v3676_v40, %v3675_v49  ;;  %3419 = vmatprep.subr.bf16.mxu1 %v3418_v51  ;;  %v5880_v51 = vmov 0.0   ;;  %v2582_v40 = vld [vmem:[%s5846_s16 + $0x58] sm:$0xff]  ;;  %v2579_v49 = vld [vmem:[%s5846_s16 + $0x40] sm:$0xff] }
 0x7c5   :  { %v3684_v33 = vpop.permute.xlu1 %3683  ;;  %v3430_v53 = vpack.c.bf16 %v3711_v28, %v3710_v9  ;;  %v3458_v38 = vpack.c.bf16 %v2582_v40, %v2580_v56  ;;  %v3460_v58 = vpack.c.bf16 %v2581_v31, %v2579_v49 }
 0x7c6   :  { %v3686_v13 = vunpack.i.h.bf16 %v3684_v33  ;;  %v3685_v25 = vunpack.i.l.bf16 %v3684_v33  ;;  %v3719_v27 = vpop.permute.xlu0 %3718  ;;  %v2585_v33 = vld [vmem:[%s5846_s16 + $0x70] sm:$0xff] }
 0x7c7   :  { %3421 = vmatpush3.bf16.msra.mxu1 %v3420_v57  ;;  %v3721_v32 = vunpack.i.h.bf16 %v3719_v27  ;;  %v3720_v48 = vunpack.i.l.bf16 %v3719_v27  ;;  %v2586_v57 = vld [vmem:[%s5846_s16 + $0x78] sm:$0xff]  ;;  %v3464_v6 = vpack.c.bf16 %v2585_v33, %v2583_v52 }
 0x7c8   :  { %v3434_v11 = vpack.c.bf16 %v3686_v13, %v3685_v25  ;;  %3423 = vmatprep.subr.bf16.mxu1 %v3422_v47  ;;  %v3462_v62 = vpack.c.bf16 %v2586_v57, %v2584_v3  ;;  %v2588_v47 = vld [vmem:[%s5846_s16 + $0x88] sm:$0xff]  ;;  %v2587_v13 = vld [vmem:[%s5846_s16 + $0x80] sm:$0xff] }
 0x7c9   :  { %v3694_v17 = vpop.permute.xlu1 %3693  ;;  %v3432_v19 = vpack.c.bf16 %v3721_v32, %v3720_v48 }
 0x7ca   :  { %v3696_v54 = vunpack.i.h.bf16 %v3694_v17  ;;  %v3695_v10 = vunpack.i.l.bf16 %v3694_v17  ;;  %3435 = vmatprep.subr.bf16.mxu0 %v3434_v11 }
 0x7cb   :  { %3425 = vmatpush3.bf16.msra.mxu1 %v3424_v0  ;;  %3437 = vmatpush3.bf16.msra.mxu0 %v3434_v11 }
 0x7cc   :  { %v3426_v55 = vpack.c.bf16 %v3696_v54, %v3695_v10  ;;  %3439 = vmatprep.subr.bf16.mxu0 %v3438_v21 }
 0x7cd   :  { %v3704_v4 = vpop.permute.xlu1 %3703 }
 0x7ce   :  { %v3706_v12 = vunpack.i.h.bf16 %v3704_v4  ;;  %v3705_v15 = vunpack.i.l.bf16 %v3704_v4  ;;  %3427 = vmatprep.subr.bf16.mxu1 %v3426_v55 }
 0x7cf   :  { %3441 = vmatpush3.bf16.msra.mxu0 %v3438_v21 }
 0x7d0   :  { %v3428_v60 = vpack.c.bf16 %v3706_v12, %v3705_v15 }
 0x7d1   :  { %v3714_v41 = vpop.permute.xlu1 %3713 }
 0x7d2   :  { %v3716_v14 = vunpack.i.h.bf16 %v3714_v41  ;;  %v3715_v36 = vunpack.i.l.bf16 %v3714_v41  ;;  %3429 = vmatpush3.bf16.msra.mxu1 %v3428_v60 }
 0x7d3   :  { %3431 = vmatprep.subr.bf16.mxu1 %v3430_v53 }
 0x7d4   :  { %v3442_v2 = vpack.c.bf16 %v3716_v14, %v3715_v36 }
 0x7d5   :  { %v3724_v46 = vpop.permute.xlu1 %3723 }
 0x7d6   :  { %v3726_v7 = vunpack.i.h.bf16 %v3724_v46  ;;  %v3725_v29 = vunpack.i.l.bf16 %v3724_v46  ;;  %3433 = vmatpush3.bf16.msra.mxu1 %v3432_v19  ;;  %3443 = vmatprep.subr.bf16.mxu0 %v3442_v2 }
 0x7d7   :  { %3445 = vmatpush3.bf16.msra.mxu0 %v3442_v2  ;;  %v2367_v21 = vpop.permute.xlu0 %2366 }
 0x7d8   :  { %v3446_v20 = vpack.c.bf16 %v3726_v7, %v3725_v29 }
 0x7d9   :  { %2462 = vmatmul.mubr.f32.vlgmr.msra.gmra.mrb[14].mxu1 %v2348_v18 }
 0x7da   :  { %3447 = vmatprep.subr.bf16.mxu0 %v3446_v20  ;;  %2466 = vmatprep.mubr.f32.mxu1 %v2352_v22 }
 0x7db   :  { %3449 = vmatpush3.bf16.msra.mxu0 %v3446_v20  ;;  %v2377_v36 = vpop.permute.xlu0 %2376 }
 0x7dc   :  { %3451 = vmatprep.subr.bf16.mxu0 %v3450_v24 }
 0x7dd   :  { %2467 = vmatmul.mubr.f32.gmra.mrb[16].mxu1 %v2351_v42 }
 0x7de   :  { %3317 = vmatmul.mubr.msk.f32.vlgmr.msra.gmra.mrb[24].mxu0 %vm2384_vm15, %v2353_v30  ;;  %2471 = vmatprep.mubr.f32.mxu1 %v2355_v5 }
 0x7df   :  { %3319 = vmatprep.mubr.msk.f32.mxu0 %vm2384_vm15, %v2356_v35  ;;  %3453 = vmatpush1.bf16.msra.mxu0 %v3452_v26  ;;  %v24_v35 = vstv %s5847_s18 }
 0x7e0   :  { %3455 = vmatprep.subr.bf16.mxu0 %v3454_v44  ;;  %25 = vst [vmem:[#allocation4] sm:$0x1] %v24_v35 }
 0x7e1   :  { %2472 = vmatmul.mubr.f32.gmra.mrb[18].mxu1 %v2354_v39 }
 0x7e2   :  { %2476 = vmatprep.mubr.f32.mxu1 %v2358_v43  ;;  %3320 = vmatmul.mubr.msk.f32.gmra.mrb[26].mxu0 %vm2384_vm15, %v2359_v8 }
 0x7e3   :  { %3457 = vmatpush1.bf16.msra.mxu0 %v3456_v45  ;;  %2665 = vmatprep.mubr.f32.mxu0 %v5880_v51 }
 0x7e4   :  { %3459 = vmatprep.subr.bf16.mxu0 %v3458_v38 }
 0x7e5   :  { %2477 = vmatmul.mubr.f32.gmra.mrb[20].mxu1 %v2357_v1 }
 0x7e6   :  { %v2372_v55 = vpop.permute.xlu1 %2371 }
 0x7e7   :  { %3461 = vmatpush1.bf16.msra.mxu0 %v3460_v58 }
 0x7e8   :  { %3463 = vmatprep.subr.bf16.mxu0 %v3462_v62 }
 0x7ea   :  { %v2382_v29 = vpop.permute.xlu1 %2381 }
 0x7eb   :  { %3465 = vmatpush1.bf16.msra.mxu0 %v3464_v6 }
 0x7ec   :  { %2617 = vmatprep.subr.mxu0 %v2588_v47 }
 0x7ef   :  { %2618 = vmatpush1.msra.mxu0 %v2587_v13 }
 0x8ac   :  { %v3245_v25 = vpop.f32.mrb[14].mxu1 }
 0x8ad   :  { %v3246_v0 = vpop.f32.mrb[15].mxu1 }
 0x8ae   :  { %v3247_v11 = vadd.f32 %v3246_v0, %v3245_v25 }
 0x8b0   :  { %v3248_v17 = vpop.f32.mrb[16].mxu1  ;;  %v2464_v54 = vadd.f32 %v3247_v11, %v2367_v21 }
 0x8b1   :  { %v3249_v10 = vpop.f32.mrb[17].mxu1  ;;  %v3318_v28 = vpop.f32.mrb[24].mxu0 }
 0x8b2   :  { %v3250_v9 = vadd.f32 %v3249_v10, %v3248_v17  ;;  %v2548_v27 = vpop.f32.mrb[25].mxu0  ;;  %v5881_v10 = vld [vmem:[#allocation7_spill] sm:$0xff] }
 0x8b3   :  { %v2549_v4 = vadd.f32 %v2548_v27, %v2464_v54  ;;  %v5798_v54 = vld [vmem:[%s5848_s17] sm:$0x3] }
 0x8b4   :  { %v2469_v12 = vadd.f32 %v3250_v9, %v2372_v55  ;;  %v3251_v15 = vpop.f32.mrb[18].mxu1  ;;  %v2863_v9 = vld [vmem:[#allocation4] sm:$0x1] }
 0x8b5   :  { %v2567_v32 = vmax.f32 %v2549_v4, 0.0  ;;  %v3252_v48 = vpop.f32.mrb[19].mxu1  ;;  %v3321_v53 = vpop.f32.mrb[26].mxu0 }
 0x8b6   :  { %v2554_v60 = vadd.f32 %v3318_v28, %v2469_v12  ;;  %v3253_v41 = vadd.f32 %v3252_v48, %v3251_v15  ;;  %v2558_v14 = vpop.f32.mrb[27].mxu0  ;;  %v2881_v28 = vrot.slane %v5798_v54, %v5881_v10 }
 0x8b7   :  { %3190 = vmatmul.mubr.msk.f32.vlgmr.msra.gmra.mrb[28].mxu0 %vm1155_vm12, %v2567_v32 }
 0x8b8   :  { %v2568_v19 = vmax.f32 %v2554_v60, 0.0  ;;  %v3254_v2 = vpop.f32.mrb[20].mxu1  ;;  %v2474_v46 = vadd.f32 %v3253_v41, %v2377_v36  ;;  %2671 = vmatprep.mubr.f32.mxu0 %v5880_v51  ;;  %3194 = vmatprep.mubr.msk.f32.mxu1 %vm717_vm8, %v2881_v28 }
 0x8b9   :  { %v3255_v59 = vpop.f32.mrb[21].mxu1 }
 0x8ba   :  { %v3256_v50 = vadd.f32 %v3255_v59, %v3254_v2  ;;  %v2559_v7 = vadd.f32 %v2558_v14, %v2474_v46 }
 0x8bb   :  { %3191 = vmatmul.mubr.msk.f32.gmra.mrb[30].mxu0 %vm1155_vm12, %v2568_v19 }
 0x8bc   :  { %v2479_v18 = vadd.f32 %v3256_v50, %v2382_v29  ;;  %v2569_v22 = vmax.f32 %v2559_v7, 0.0  ;;  %2677 = vmatprep.mubr.f32.mxu0 %v5880_v51 }
 0x8be   :  { %v2564_v20 = vadd.f32 %v3321_v53, %v2479_v18 }
 0x8bf   :  { %3192 = vmatmul.mubr.msk.f32.gmra.mrb[32].mxu0 %vm1155_vm12, %v2569_v22 }
 0x8c0   :  { %v2570_v24 = vmax.f32 %v2564_v20, 0.0  ;;  %2683 = vmatprep.mubr.f32.mxu0 %v5880_v51 }
 0x8c3   :  { %3193 = vmatmul.mubr.msk.f32.gmra.mrb[34].mxu0 %vm1155_vm12, %v2570_v24 }
 0x98a   :  { %v2667_v63 = vpop.f32.mrb[28].mxu0 }
 0x98b   :  { %2698 = vrot.lane.b32.xlu0 %v2667_v63, %s3825_s28  ;;  %v2669_v16 = vpop.f32.mrb[29].mxu0 }
 0x98c   :  { %2700 = vrot.lane.b32.xlu1 %v2669_v16, %s3825_s28 }
 0x98e   :  { %v2673_v37 = vpop.f32.mrb[30].mxu0 }
 0x98f   :  { %2702 = vrot.lane.b32.xlu0 %v2673_v37, %s3825_s28  ;;  %v2675_v34 = vpop.f32.mrb[31].mxu0 }
 0x990   :  { %2704 = vrot.lane.b32.xlu1 %v2675_v34, %s3825_s28 }
 0x992   :  { %v2679_v42 = vpop.f32.mrb[32].mxu0 }
 0x993   :  { %2706 = vrot.lane.b32.xlu0 %v2679_v42, %s3825_s28  ;;  %v2681_v30 = vpop.f32.mrb[33].mxu0 }
 0x994   :  { %2708 = vrot.lane.b32.xlu1 %v2681_v30, %s3825_s28 }
 0x996   :  { %v2685_v5 = vpop.f32.mrb[34].mxu0 }
 0x997   :  { %2710 = vrot.lane.b32.xlu0 %v2685_v5, %s3825_s28  ;;  %v2687_v26 = vpop.f32.mrb[35].mxu0 }
 0x998   :  { %2712 = vrot.lane.b32.xlu1 %v2687_v26, %s3825_s28 }
 0x9fd   :  { %v2699_v44 = vpop.permute.xlu0 %2698 }
 0x9fe   :  { %2726 = vst.msk [vmem:[#allocation2] sm:$0xff] %vm515_vm6, %v2699_v44  ;;  %v2701_v61 = vpop.permute.xlu1 %2700 }
 0x9ff   :  { %v2714_v23 = vsel %vm64_vm3, %v2699_v44, %v2701_v61 }
 0xa00   :  { %2727 = vst.msk [vmem:[#allocation2 + $0x8] sm:$0xff] %vm517_vm7, %v2714_v23 }
 0xa01   :  { %v2703_v39 = vpop.permute.xlu0 %2702 }
 0xa02   :  { %2728 = vst.msk [vmem:[#allocation2 + $0x10] sm:$0xff] %vm515_vm6, %v2703_v39  ;;  %v2705_v43 = vpop.permute.xlu1 %2704 }
 0xa03   :  { %v2715_v8 = vsel %vm64_vm3, %v2703_v39, %v2705_v43 }
 0xa04   :  { %2729 = vst.msk [vmem:[#allocation2 + $0x18] sm:$0xff] %vm517_vm7, %v2715_v8 }
 0xa05   :  { %v2707_v45 = vpop.permute.xlu0 %2706  ;;  %v2734_v56 = vld [vmem:[#allocation2] sm:$0xff] }
 0xa06   :  { %2730 = vst.msk [vmem:[#allocation2 + $0x20] sm:$0xff] %vm515_vm6, %v2707_v45  ;;  %v2709_v1 = vpop.permute.xlu1 %2708 }
 0xa07   :  { %v2716_v51 = vsel %vm64_vm3, %v2707_v45, %v2709_v1  ;;  %v2735_v40 = vld [vmem:[#allocation2 + $0x8] sm:$0xff] }
 0xa08   :  { %2731 = vst.msk [vmem:[#allocation2 + $0x28] sm:$0xff] %vm517_vm7, %v2716_v51  ;;  %v3727_v49 = vpack.i.bf16 %v2735_v40, %v2734_v56 }
 0xa09   :  { %v2711_v38 = vpop.permute.xlu0 %2710  ;;  %v2736_v58 = vld [vmem:[#allocation2 + $0x10] sm:$0xff] }
 0xa0a   :  { %2732 = vst.msk [vmem:[#allocation2 + $0x30] sm:$0xff] %vm515_vm6, %v2711_v38  ;;  %3728 = vrot.lane.b32.xlu0 %v3727_v49, %s3820_s0  ;;  %v2713_v31 = vpop.permute.xlu1 %2712  ;;  %v3468_v33 = vpack.c.bf16 %v2736_v58, %v2734_v56 }
 0xa0b   :  { %v2717_v3 = vsel %vm64_vm3, %v2711_v38, %v2713_v31  ;;  %v2737_v57 = vld [vmem:[#allocation2 + $0x18] sm:$0xff] }
 0xa0c   :  { %2733 = vst.msk [vmem:[#allocation2 + $0x38] sm:$0xff] %vm517_vm7, %v2717_v3  ;;  %v3466_v52 = vpack.c.bf16 %v2737_v57, %v2735_v40  ;;  %v3732_v62 = vpack.i.bf16 %v2737_v57, %v2736_v58 }
 0xa0d   :  { %v2738_v6 = vld [vmem:[#allocation2 + $0x20] sm:$0xff] }
 0xa0e   :  { %3467 = vmatprep.subr.bf16.mxu1 %v3466_v52  ;;  %3733 = vrot.lane.b32.xlu1 %v3732_v62, %s3820_s0 }
 0xa0f   :  { %3469 = vmatpush1.bf16.msra.mxu1 %v3468_v33  ;;  %v2739_v47 = vld [vmem:[#allocation2 + $0x28] sm:$0xff] }
 0xa10   :  { %v3737_v13 = vpack.i.bf16 %v2739_v47, %v2738_v6 }
 0xa11   :  { %v2740_v25 = vld [vmem:[#allocation2 + $0x30] sm:$0xff] }
 0xa12   :  { %3738 = vrot.lane.b32.xlu0 %v3737_v13, %s3820_s0  ;;  %v3472_v17 = vpack.c.bf16 %v2740_v25, %v2738_v6 }
 0xa13   :  { %v2741_v0 = vld [vmem:[#allocation2 + $0x38] sm:$0xff] }
 0xa14   :  { %v3747_v11 = vpack.i.bf16 %v2741_v0, %v2740_v25  ;;  %v3470_v21 = vpack.c.bf16 %v2741_v0, %v2739_v47 }
 0xa16   :  { %3743 = vrot.lane.b32.xlu0 %v3727_v49, %s3821_s23  ;;  %3748 = vrot.lane.b32.xlu1 %v3747_v11, %s3820_s0 }
 0xa17   :  { %3471 = vmatprep.subr.bf16.mxu1 %v3470_v21 }
 0xa18   :  { %3473 = vmatpush1.bf16.msra.mxu1 %v3472_v17 }
 0xa1a   :  { %3758 = vrot.lane.b32.xlu0 %v3737_v13, %s3821_s23  ;;  %3753 = vrot.lane.b32.xlu1 %v3732_v62, %s3821_s23 }
 0xa1e   :  { %3763 = vrot.lane.b32.xlu0 %v3727_v49, %s3822_s24  ;;  %3768 = vrot.lane.b32.xlu1 %v3747_v11, %s3821_s23 }
 0xa22   :  { %3778 = vrot.lane.b32.xlu0 %v3737_v13, %s3822_s24  ;;  %3773 = vrot.lane.b32.xlu1 %v3732_v62, %s3822_s24 }
 0xa26   :  { %3783 = vrot.lane.b32.xlu0 %v3727_v49, %s3823_s25  ;;  %3788 = vrot.lane.b32.xlu1 %v3747_v11, %s3822_s24 }
 0xa2a   :  { %3798 = vrot.lane.b32.xlu0 %v3737_v13, %s3823_s25  ;;  %3793 = vrot.lane.b32.xlu1 %v3732_v62, %s3823_s25 }
 0xa2e   :  { %2866 = vperm.xlu0 %3551, %v2863_v9   ;;  %3803 = vrot.lane.b32.xlu1 %v3747_v11, %s3823_s25 }
 0xa7c   :  { %v3729_v27 = vpop.permute.xlu0 %3728 }
 0xa7d   :  { %v3731_v55 = vunpack.i.h.bf16 %v3729_v27  ;;  %v3730_v4 = vunpack.i.l.bf16 %v3729_v27 }
 0xa7f   :  { %v2766_v48 = vsel %vm192_vm0, %v3730_v4, %v3731_v55 }
 0xa80   :  { %v3734_v12 = vpop.permute.xlu1 %3733 }
 0xa81   :  { %v3736_v15 = vunpack.i.h.bf16 %v3734_v12  ;;  %v3735_v32 = vunpack.i.l.bf16 %v3734_v12 }
 0xa83   :  { %v3474_v53 = vpack.c.bf16 %v3736_v15, %v3731_v55  ;;  %v2767_v60 = vsel %vm192_vm0, %v3735_v32, %v3736_v15 }
 0xa84   :  { %v3476_v41 = vpack.c.bf16 %v2767_v60, %v2766_v48  ;;  %v3739_v14 = vpop.permute.xlu0 %3738 }
 0xa85   :  { %3475 = vmatprep.subr.bf16.mxu1 %v3474_v53  ;;  %v3741_v36 = vunpack.i.h.bf16 %v3739_v14  ;;  %v3740_v19 = vunpack.i.l.bf16 %v3739_v14 }
 0xa86   :  { %3477 = vmatpush1.bf16.msra.mxu1 %v3476_v41 }
 0xa87   :  { %v2768_v18 = vsel %vm192_vm0, %v3740_v19, %v3741_v36 }
 0xa88   :  { %v3744_v2 = vpop.permute.xlu0 %3743  ;;  %v3749_v46 = vpop.permute.xlu1 %3748 }
 0xa89   :  { %v3751_v59 = vunpack.i.h.bf16 %v3749_v46  ;;  %v3750_v50 = vunpack.i.l.bf16 %v3749_v46  ;;  %v3746_v7 = vunpack.i.h.bf16 %v3744_v2  ;;  %v3745_v29 = vunpack.i.l.bf16 %v3744_v2 }
 0xa8b   :  { %v3478_v22 = vpack.c.bf16 %v3751_v59, %v3741_v36  ;;  %v2769_v20 = vsel %vm192_vm0, %v3750_v50, %v3751_v59  ;;  %v2794_v42 = vsel %vm261_vm1, %v3745_v29, %v3746_v7 }
 0xa8c   :  { %v3480_v24 = vpack.c.bf16 %v2769_v20, %v2768_v18  ;;  %v3759_v63 = vpop.permute.xlu0 %3758  ;;  %v3754_v16 = vpop.permute.xlu1 %3753 }
 0xa8d   :  { %v3756_v37 = vunpack.i.h.bf16 %v3754_v16  ;;  %v3755_v34 = vunpack.i.l.bf16 %v3754_v16  ;;  %3479 = vmatprep.subr.bf16.mxu1 %v3478_v22  ;;  %v3761_v30 = vunpack.i.h.bf16 %v3759_v63  ;;  %v3760_v5 = vunpack.i.l.bf16 %v3759_v63 }
 0xa8e   :  { %3481 = vmatpush1.bf16.msra.mxu1 %v3480_v24 }
 0xa8f   :  { %v3482_v26 = vpack.c.bf16 %v3756_v37, %v3746_v7  ;;  %v2795_v35 = vsel %vm261_vm1, %v3755_v34, %v3756_v37  ;;  %v2796_v1 = vsel %vm261_vm1, %v3760_v5, %v3761_v30  ;;  %v5882_v7 = vld [vmem:[#allocation6_spill] sm:$0xff] }
 0xa90   :  { %v3484_v44 = vpack.c.bf16 %v2795_v35, %v2794_v42  ;;  %v3764_v61 = vpop.permute.xlu0 %3763  ;;  %v3769_v23 = vpop.permute.xlu1 %3768  ;;  %v2877_v29 = vrot.slane %v5798_v54, %v5882_v7  ;;  %v3829_v54 = vmov 1966171168  }
 0xa91   :  { %v3771_v39 = vunpack.i.h.bf16 %v3769_v23  ;;  %v3770_v43 = vunpack.i.l.bf16 %v3769_v23  ;;  %3483 = vmatprep.subr.bf16.mxu1 %v3482_v26  ;;  %v3766_v8 = vunpack.i.h.bf16 %v3764_v61  ;;  %v3765_v45 = vunpack.i.l.bf16 %v3764_v61  ;;  %v5883_v23 = vld [vmem:[#allocation5_spill] sm:$0xff] }
 0xa92   :  { %3485 = vmatpush1.bf16.msra.mxu1 %v3484_v44  ;;  %v2972_v35 = vunpack.c.l.s4 %v3829_v54 }
 0xa93   :  { %v3486_v51 = vpack.c.bf16 %v3771_v39, %v3761_v30  ;;  %v2797_v56 = vsel %vm261_vm1, %v3770_v43, %v3771_v39  ;;  %v2822_v3 = vsel %vm330_vm2, %v3765_v45, %v3766_v8 }
 0xa94   :  { %v3488_v40 = vpack.c.bf16 %v2797_v56, %v2796_v1  ;;  %v3779_v49 = vpop.permute.xlu0 %3778  ;;  %v3774_v38 = vpop.permute.xlu1 %3773  ;;  %v2973_v44 = vunpack.c.0.s8 %v2972_v35  ;;  %v5884_v1 = vlaneseq }
 0xa95   :  { %v3776_v31 = vunpack.i.h.bf16 %v3774_v38  ;;  %v3775_v58 = vunpack.i.l.bf16 %v3774_v38  ;;  %3487 = vmatprep.subr.bf16.mxu1 %v3486_v51  ;;  %v3781_v57 = vunpack.i.h.bf16 %v3779_v49  ;;  %v3780_v52 = vunpack.i.l.bf16 %v3779_v49 }
 0xa96   :  { %3489 = vmatpush1.bf16.msra.mxu1 %v3488_v40  ;;  %v2976_v39 = vsub.s32 %v2973_v44, %v5883_v23  ;;  %vm2988_vm0 = vcmp.lt.s32.totalorder %v5884_v1, 136 }
 0xa97   :  { %v3490_v62 = vpack.c.bf16 %v3776_v31, %v3766_v8  ;;  %v2823_v33 = vsel %vm330_vm2, %v3775_v58, %v3776_v31  ;;  %v2824_v17 = vsel %vm330_vm2, %v3780_v52, %v3781_v57 }
 0xa98   :  { %v3492_v6 = vpack.c.bf16 %v2823_v33, %v2822_v3  ;;  %v3784_v47 = vpop.permute.xlu0 %3783  ;;  %v3789_v13 = vpop.permute.xlu1 %3788 }
 0xa99   :  { %v3791_v25 = vunpack.i.h.bf16 %v3789_v13  ;;  %v3790_v0 = vunpack.i.l.bf16 %v3789_v13  ;;  %3491 = vmatprep.subr.bf16.mxu1 %v3490_v62  ;;  %v3786_v11 = vunpack.i.h.bf16 %v3784_v47  ;;  %v3785_v21 = vunpack.i.l.bf16 %v3784_v47 }
 0xa9a   :  { %3493 = vmatpush1.bf16.msra.mxu1 %v3492_v6 }
 0xa9b   :  { %v3494_v10 = vpack.c.bf16 %v3791_v25, %v3781_v57  ;;  %v2825_v28 = vsel %vm330_vm2, %v3790_v0, %v3791_v25  ;;  %v2850_v15 = vsel %vm399_vm5, %v3785_v21, %v3786_v11 }
 0xa9c   :  { %v3496_v9 = vpack.c.bf16 %v2825_v28, %v2824_v17  ;;  %v3799_v27 = vpop.permute.xlu0 %3798  ;;  %v3794_v55 = vpop.permute.xlu1 %3793 }
 0xa9d   :  { %v3796_v4 = vunpack.i.h.bf16 %v3794_v55  ;;  %v3795_v12 = vunpack.i.l.bf16 %v3794_v55  ;;  %3495 = vmatprep.subr.bf16.mxu1 %v3494_v10  ;;  %v3801_v32 = vunpack.i.h.bf16 %v3799_v27  ;;  %v3800_v48 = vunpack.i.l.bf16 %v3799_v27 }
 0xa9e   :  { %3497 = vmatpush1.bf16.msra.mxu1 %v3496_v9 }
 0xa9f   :  { %v3498_v53 = vpack.c.bf16 %v3796_v4, %v3786_v11  ;;  %v2851_v60 = vsel %vm399_vm5, %v3795_v12, %v3796_v4  ;;  %v2852_v2 = vsel %vm399_vm5, %v3800_v48, %v3801_v32 }
 0xaa0   :  { %v3500_v41 = vpack.c.bf16 %v2851_v60, %v2850_v15  ;;  %v3804_v14 = vpop.permute.xlu1 %3803 }
 0xaa1   :  { %v3806_v36 = vunpack.i.h.bf16 %v3804_v14  ;;  %v3805_v19 = vunpack.i.l.bf16 %v3804_v14  ;;  %3499 = vmatprep.subr.bf16.mxu1 %v3498_v53 }
 0xaa2   :  { %3501 = vmatpush1.bf16.msra.mxu1 %v3500_v41 }
 0xaa3   :  { %v3502_v46 = vpack.c.bf16 %v3806_v36, %v3801_v32  ;;  %v2853_v59 = vsel %vm399_vm5, %v3805_v19, %v3806_v36 }
 0xaa4   :  { %v3504_v50 = vpack.c.bf16 %v2853_v59, %v2852_v2 }
 0xaa5   :  { %3503 = vmatprep.subr.bf16.mxu1 %v3502_v46 }
 0xaa6   :  { %3505 = vmatpush1.bf16.msra.mxu1 %v3504_v50 }
 0xaa9   :  { %2950 = vmatmul.mubr.f32.vlgmr.msra.gmra.mrb[22].mxu1 %v2877_v29 }
 0xaad   :  { %v2867_v18 = vpop.permute.xlu0 %2866 }
 0xaae   :  { %v2872_v22 = vrot.slane %v2867_v18, %v5882_v7 }
 0xb7c   :  { %v2951_v20 = vpop.f32.mrb[22].mxu1 }
 0xb7d   :  { %v2952_v24 = vadd.f32 %v2951_v20, %v2872_v22  ;;  %v2953_v63 = vpop.f32.mrb[23].mxu1 }
 0xb7e   :  { %v2954_v16 = vadd.f32 %v2953_v63, %v2872_v22 }
 0xb7f   :  { %v3195_v37 = vmul.f32 -1.442695, %v2952_v24 }
 0xb80   :  { %v3196_v34 = vmul.f32 -1.442695, %v2954_v16 }
 0xb81   :  { %3807 = vpow2.f32 %v3195_v37 }
 0xb82   :  { %3809 = vpow2.f32 %v3196_v34 }
 0xb8b   :  { %v3808_v42 = vpop.eup %3807 }
 0xb8c   :  { %v3810_v30 = vpop.eup %3809  ;;  %v2962_v5 = vadd.f32 1.0, %v3808_v42 }
 0xb8d   :  { %v2963_v26 = vadd.f32 1.0, %v3810_v30 }
 0xb8e   :  { %3811 = vrcp.f32 %v2962_v5 }
 0xb8f   :  { %3813 = vrcp.f32 %v2963_v26 }
 0xb98   :  { %v3812_v61 = vpop.eup %3811 }
 0xb99   :  { %v3814_v43 = vpop.eup %3813 }
 0xb9a   :  { %v2970_v8 = vcombine.low %v3812_v61, %v3814_v43 }
 0xb9c   :  { %v2977_v45 = vrot.slane %v2970_v8, %v2976_v39 }
 0xb9e   :  { %v2984_v51 = vrot.slane %v2977_v45, %v2976_v39 }
 0xba0   :  { %2990 = vst.msk [vmem:[%s5849_s19] sm:$0x3] %vm2988_vm0, %v2984_v51 }

</bundles_post_ra>
